<compile_context>
chip_gen: v5e
topology: v5e:2x2
jax: 0.10.0
libtpu: 0.0.40
codegen_flags: <defaults>
</compile_context>

<pallas_src>
import math

import numpy as np
import jax
import jax.numpy as jnp
from jax import lax
from jax.experimental import pallas as pl
from jax.experimental.pallas import tpu as pltpu

# ---------------------------------------------------------------------------
# Model constants (mirroring app/model_quanv_qnn.py)
# ---------------------------------------------------------------------------
N_LAYERS = 2
N_QUBITS = 4                      # quanv circuit qubits
VAR_PER_QUBIT = N_QUBITS          # 4 encoding gates per qubit in ql1
QNN_QUBITS = 8
QNN_LAYERS = 3
QNN_VAR_PER_QUBIT = 9             # int(64 / 8) + 1, as computed in qnn_circuit
IMAGE_DIM = 14
KERNEL_SIZE = N_QUBITS
STRIDE = N_QUBITS
N_CLASS = 3

N_PATCH = 16                      # 4x4 grid of (possibly clipped) patches
D1 = 1 << N_QUBITS                # 16 quanv basis states
D2 = 1 << QNN_QUBITS              # 256 qnn basis states
L1 = N_PATCH * D1                 # 256 per-state lanes for stage 1 (p*16 + d)
QP = N_QUBITS * N_PATCH           # 64 compact lanes for stage-1 encoding (q*16 + p)
ANG_W = VAR_PER_QUBIT * QP        # 256 compact angle columns (g*64 + q*16 + p)
ANG2_W = 128                      # padded stage-2 angle width (col = g*8 + j)
OUT_PAD = 128                     # lane-dense padded output width

# ---------------------------------------------------------------------------
# Host-side (numpy) gate matrices -- used to precompute the weight-only layer
# unitaries / fold matrices, and for the independent reference simulation.
# ---------------------------------------------------------------------------
_P0 = np.array([[1.0, 0.0], [0.0, 0.0]], dtype=np.complex128)
_P1 = np.array([[0.0, 0.0], [0.0, 1.0]], dtype=np.complex128)


def _rz_mat(t):
    return np.array([[np.exp(-0.5j * t), 0.0], [0.0, np.exp(0.5j * t)]],
                    dtype=np.complex128)


def _rx_mat(t):
    c, s = np.cos(0.5 * t), np.sin(0.5 * t)
    return np.array([[c, -1j * s], [-1j * s, c]], dtype=np.complex128)


def _ry_mat(t):
    c, s = np.cos(0.5 * t), np.sin(0.5 * t)
    return np.array([[c, -s], [s, c]], dtype=np.complex128)


def _embed(gate, wire, n):
    # wire 0 is the most-significant bit (PennyLane default.qubit convention).
    out = np.array([[1.0 + 0.0j]])
    for w in range(n):
        out = np.kron(out, gate if w == wire else np.eye(2, dtype=np.complex128))
    return out


def _crz_full(theta, control, target, n):
    return _embed(_P0, control, n) + _embed(_P1, control, n) @ _embed(_rz_mat(theta), target, n)


def build_layer_unitary(weights, n_qubits, n_layers):
    """Dense unitary for the (input-independent) variational layers."""
    D = 1 << n_qubits
    U = np.eye(D, dtype=np.complex128)
    for l in range(n_layers):
        for i in range(n_qubits):
            U = _crz_full(weights[l, i], i, (i + 1) % n_qubits, n_qubits) @ U
        for j in range(n_qubits, 2 * n_qubits):
            U = _embed(_ry_mat(weights[l, j]), j % n_qubits, n_qubits) @ U
    return U


def zsign_matrix(n_qubits):
    D = 1 << n_qubits
    idx = np.arange(D)
    cols = [1 - 2 * ((idx >> (n_qubits - 1 - q)) & 1) for q in range(n_qubits)]
    return np.stack(cols, axis=1).astype(np.float32)          # (D, n_qubits)


# ---------------------------------------------------------------------------
# Fused Pallas kernel: quanv (16 circuits/image) -> qnn -> Linear(8,3)
# ---------------------------------------------------------------------------
def fused_net_kernel(ang_ref, x0_ref, x1_ref, m1t_ref, m1b_ref, zs_ref,
                     m2t_ref, m2b_ref, mo_ref, bo_ref, out_ref):
    f32 = jnp.float32
    BB = ang_ref.shape[0]
    inv_sqrt2 = 1.0 / math.sqrt(2.0)

    def cmul(ar, ai, br, bi):
        return ar * br - ai * bi, ar * bi + ai * br

    # ---- stage-1 transcendentals over the COMPACT (BB, 256) angle block ----
    ang = ang_ref[...]                          # col = g*64 + q*16 + p
    c1 = jnp.cos(0.5 * ang)
    s1 = jnp.sin(0.5 * ang)

    # ---- stage-1 encoding at compact width (BB, 64), lane = q*16 + p -------
    # Each lane carries one qubit-of-one-patch 2-amplitude state through
    # H then its 4 alternating RZ/RX gates (gate type depends only on g).
    re0 = jnp.full((BB, QP), inv_sqrt2, f32)
    im0 = jnp.zeros((BB, QP), f32)
    re1 = jnp.full((BB, QP), inv_sqrt2, f32)
    im1 = jnp.zeros((BB, QP), f32)
    for g in range(VAR_PER_QUBIT):
        c = c1[:, g * QP:(g + 1) * QP]
        s = s1[:, g * QP:(g + 1) * QP]
        if g % 2 == 0:                          # RZ(theta)
            re0, im0, re1, im1 = (re0 * c + im0 * s, im0 * c - re0 * s,
                                  re1 * c - im1 * s, im1 * c + re1 * s)
        else:                                   # RX(theta)
            re0, im0, re1, im1 = (c * re0 + s * im1, c * im0 - s * re1,
                                  c * re1 + s * im0, c * im1 - s * re0)

    # ---- expand to per-(patch, state) lanes on the (idle) MXU --------------
    # e[:, q*256 + p*16 + d] = amp of qubit q, patch p for bit_q(d) in {0,1}.
    x0 = x0_ref[...]
    x1 = x1_ref[...]
    e_re = (jnp.dot(re0, x0, preferred_element_type=f32)
            + jnp.dot(re1, x1, preferred_element_type=f32))     # (BB, 1024)
    e_im = (jnp.dot(im0, x0, preferred_element_type=f32)
            + jnp.dot(im1, x1, preferred_element_type=f32))

    # ---- stage-1 product state, balanced tree: psi1[b, p*16 + d] -----------
    q01 = cmul(e_re[:, 0 * L1:1 * L1], e_im[:, 0 * L1:1 * L1],
               e_re[:, 1 * L1:2 * L1], e_im[:, 1 * L1:2 * L1])
    q23 = cmul(e_re[:, 2 * L1:3 * L1], e_im[:, 2 * L1:3 * L1],
               e_re[:, 3 * L1:4 * L1], e_im[:, 3 * L1:4 * L1])
    psi1_re, psi1_im = cmul(*q01, *q23)                          # (BB, 256)

    # ---- stage-1 variational layers: real-embedded block-diag unitary ------
    phi1 = (jnp.dot(psi1_re, m1t_ref[...], preferred_element_type=f32)
            + jnp.dot(psi1_im, m1b_ref[...], preferred_element_type=f32))  # (BB, 512)
    ph_re = phi1[:, :L1]
    ph_im = phi1[:, L1:]
    probs1 = ph_re * ph_re + ph_im * ph_im                       # (BB, 256)

    # ---- fold PauliZ signs + pi scale + (qubit,gate) permutation ------------
    # ang2[b, g*8 + j] = pi * feats[b, j*9 + g]  (0 for missing gates / pad)
    ang2 = jnp.dot(probs1, zs_ref[...], preferred_element_type=f32)   # (BB, 128)
    c2 = jnp.cos(0.5 * ang2)
    s2 = jnp.sin(0.5 * ang2)

    # ---- stage-2 encoding (8 qubits, 9 gates per qubit) ---------------------
    r0 = jnp.full((BB, QNN_QUBITS), inv_sqrt2, f32)
    i0 = jnp.zeros((BB, QNN_QUBITS), f32)
    r1 = jnp.full((BB, QNN_QUBITS), inv_sqrt2, f32)
    i1 = jnp.zeros((BB, QNN_QUBITS), f32)
    for g in range(QNN_VAR_PER_QUBIT):
        c = c2[:, g * QNN_QUBITS:(g + 1) * QNN_QUBITS]
        s = s2[:, g * QNN_QUBITS:(g + 1) * QNN_QUBITS]
        if g % 2 == 0:                          # RZ
            r0, i0, r1, i1 = (r0 * c + i0 * s, i0 * c - r0 * s,
                              r1 * c - i1 * s, i1 * c + r1 * s)
        else:                                   # RX
            r0, i0, r1, i1 = (c * r0 + s * i1, c * i0 - s * r1,
                              c * r1 + s * i0, c * i1 - s * r0)

    # ---- stage-2 product state: balanced tree over the 8 qubits ------------
    lane2 = lax.broadcasted_iota(jnp.int32, (BB, D2), 1)

    def qubit_amp(j):
        bit0 = ((lane2 >> (QNN_QUBITS - 1 - j)) & 1) == 0
        return (jnp.where(bit0, r0[:, j:j + 1], r1[:, j:j + 1]),
                jnp.where(bit0, i0[:, j:j + 1], i1[:, j:j + 1]))

    p01 = cmul(*qubit_amp(0), *qubit_amp(1))
    p23 = cmul(*qubit_amp(2), *qubit_amp(3))
    p0123 = cmul(*p01, *p23)
    p45 = cmul(*qubit_amp(4), *qubit_amp(5))
    p67 = cmul(*qubit_amp(6), *qubit_amp(7))
    p4567 = cmul(*p45, *p67)
    psi2_re, psi2_im = cmul(*p0123, *p4567)                      # (BB, 256)

    # ---- stage-2 variational layers + (zsign @ W_fc^T) + bias ---------------
    phi2 = (jnp.dot(psi2_re, m2t_ref[...], preferred_element_type=f32)
            + jnp.dot(psi2_im, m2b_ref[...], preferred_element_type=f32))  # (BB, 512)
    g_re = phi2[:, :D2]
    g_im = phi2[:, D2:]
    probs2 = g_re * g_re + g_im * g_im                           # (BB, 256)

    out_ref[...] = (jnp.dot(probs2, mo_ref[...], preferred_element_type=f32)
                    + bo_ref[...])                               # (BB, 128)


def _pick_bb(bs):
    """Batch-tile size: bb <= 32, prefer >= 4 grid steps (2 per v7x core)."""
    if bs % 8 != 0:
        return bs
    for bb in (32, 24, 16, 8):
        if bs % bb == 0 and bs // bb >= 4:
            return bb
    for bb in (8, 16, 24, 32):
        if bs % bb == 0:
            return bb
    return bs


def pallas_net(ang, params):
    bs = ang.shape[0]
    bb = _pick_bb(bs)
    grid = (bs // bb,)
    const = lambda i: (0, 0)
    w = params
    return pl.pallas_call(
        fused_net_kernel,
        out_shape=jax.ShapeDtypeStruct((bs, OUT_PAD), jnp.float32),
        grid=grid,
        in_specs=[
            pl.BlockSpec((bb, ANG_W), lambda i: (i, 0)),
            pl.BlockSpec(w["x0"].shape, const),
            pl.BlockSpec(w["x1"].shape, const),
            pl.BlockSpec(w["m1t"].shape, const),
            pl.BlockSpec(w["m1b"].shape, const),
            pl.BlockSpec(w["zs"].shape, const),
            pl.BlockSpec(w["m2t"].shape, const),
            pl.BlockSpec(w["m2b"].shape, const),
            pl.BlockSpec(w["mo"].shape, const),
            pl.BlockSpec(w["bo"].shape, const),
        ],
        out_specs=pl.BlockSpec((bb, OUT_PAD), lambda i: (i, 0)),
        compiler_params=pltpu.CompilerParams(
            dimension_semantics=("parallel",),
            vmem_limit_bytes=32 * 1024 * 1024),
    )(ang, w["x0"], w["x1"], w["m1t"], w["m1b"], w["zs"],
      w["m2t"], w["m2b"], w["mo"], w["bo"])


# ---------------------------------------------------------------------------
# Parameters (deterministic init) + host-side precomputed fold matrices
# ---------------------------------------------------------------------------
def make_params(key):
    k1, k2, k3, k4 = jax.random.split(key, 4)
    w1 = jax.random.uniform(k1, (N_LAYERS, 2 * N_QUBITS), minval=0.0, maxval=2.0 * np.pi)
    w2 = jax.random.uniform(k2, (QNN_LAYERS, 2 * QNN_QUBITS), minval=0.0, maxval=2.0 * np.pi)
    w_fc = 0.1 * jax.random.normal(k3, (N_CLASS, QNN_QUBITS))   # torch Linear weight (out, in)
    b_fc = 0.1 * jax.random.normal(k4, (N_CLASS,))

    w1_np = np.asarray(w1, np.float64)
    w2_np = np.asarray(w2, np.float64)
    wfc_np = np.asarray(w_fc, np.float64)
    bfc_np = np.asarray(b_fc, np.float64)

    U1 = build_layer_unitary(w1_np, N_QUBITS, N_LAYERS)        # 16x16 complex
    U2 = build_layer_unitary(w2_np, QNN_QUBITS, QNN_LAYERS)    # 256x256 complex

    # 0/1 selection matrices: compact (q*16+p) amplitudes -> per-(patch,state)
    # lanes, one 256-lane block per qubit.  col = q*256 + p*16 + d.
    X0 = np.zeros((QP, N_QUBITS * L1), np.float64)
    X1 = np.zeros((QP, N_QUBITS * L1), np.float64)
    for q in range(N_QUBITS):
        for p in range(N_PATCH):
            for d in range(D1):
                col = q * L1 + p * D1 + d
                row = q * N_PATCH + p
                if ((d >> (N_QUBITS - 1 - q)) & 1) == 0:
                    X0[row, col] = 1.0
                else:
                    X1[row, col] = 1.0

    # Stage 1: block-diagonal (16 patches) real-embedded unitary, split halves.
    W1T_re = np.kron(np.eye(N_PATCH), U1.real.T)
    W1T_im = np.kron(np.eye(N_PATCH), U1.imag.T)
    M1_top = np.concatenate([W1T_re, W1T_im], axis=1)           # (256, 512)
    M1_bot = np.concatenate([-W1T_im, W1T_re], axis=1)          # (256, 512)

    # probs1 -> qnn angles: fold zsign, pi scale, and the (qubit, gate)
    # permutation of the qnn encoding into one matrix; pad lanes to 128.
    z1 = zsign_matrix(N_QUBITS).astype(np.float64)              # (16, 4)
    Zfold = np.kron(np.eye(N_PATCH), z1)                        # (256, 64)
    S = np.zeros((N_PATCH * N_QUBITS, ANG2_W), np.float64)      # (64, 128)
    for j in range(QNN_QUBITS):
        for g in range(QNN_VAR_PER_QUBIT):
            m = j * QNN_VAR_PER_QUBIT + g
            if m < N_PATCH * N_QUBITS:                          # skipped gates stay 0 -> identity
                S[m, g * QNN_QUBITS + j] = np.pi
    ZS = Zfold @ S                                              # (256, 128)

    # Stage 2: dense real-embedded unitary, split halves.
    M2_top = np.concatenate([U2.real.T, U2.imag.T], axis=1)     # (256, 512)
    M2_bot = np.concatenate([-U2.imag.T, U2.real.T], axis=1)    # (256, 512)

    # probs2 -> logits: fold PauliZ signs and the final Linear; pad lanes to 128.
    z2 = zsign_matrix(QNN_QUBITS).astype(np.float64)            # (256, 8)
    MO = np.zeros((D2, OUT_PAD), np.float64)
    MO[:, :N_CLASS] = z2 @ wfc_np.T
    BO = np.zeros((1, OUT_PAD), np.float64)
    BO[0, :N_CLASS] = bfc_np

    params = {
        "x0": jnp.asarray(X0, jnp.float32),
        "x1": jnp.asarray(X1, jnp.float32),
        "m1t": jnp.asarray(M1_top, jnp.float32),
        "m1b": jnp.asarray(M1_bot, jnp.float32),
        "zs": jnp.asarray(ZS, jnp.float32),
        "m2t": jnp.asarray(M2_top, jnp.float32),
        "m2b": jnp.asarray(M2_bot, jnp.float32),
        "mo": jnp.asarray(MO, jnp.float32),
        "bo": jnp.asarray(BO, jnp.float32),
    }
    raw = {"w1": w1, "w2": w2, "w_fc": w_fc, "b_fc": b_fc}
    return params, raw


# ---------------------------------------------------------------------------
# Forward pass (host glue: patch extraction -> COMPACT lane-dense angles)
# ---------------------------------------------------------------------------
def net_forward(params, X):
    bs = X.shape[0]
    Ximg = X.reshape(bs, IMAGE_DIM, IMAGE_DIM)          # == X.view(bs, 14, 14)

    # 16 (possibly clipped) patches; pad flattened patch to 16 angles at the
    # END, reproducing the circuit's `if index < len(inputs)` skip
    # (RZ(0)=RX(0)=I).
    patches = []
    for i in range(0, IMAGE_DIM, STRIDE):
        for j in range(0, IMAGE_DIM, STRIDE):
            p = Ximg[:, i:i + KERNEL_SIZE, j:j + KERNEL_SIZE].reshape(bs, -1)
            p = jnp.pad(p, ((0, 0), (0, N_QUBITS * VAR_PER_QUBIT - p.shape[1])))
            patches.append(p)
    ang_pk = jnp.stack(patches, axis=1)                 # (bs, 16 p, 16 k=q*4+g)
    ang_qgp = jnp.transpose(ang_pk, (0, 2, 1)).reshape(
        bs, N_QUBITS, VAR_PER_QUBIT, N_PATCH)           # (bs, q, g, p)
    ang = jnp.transpose(ang_qgp, (0, 2, 1, 3)).reshape(bs, ANG_W)  # col = g*64+q*16+p
    ang = ang.astype(jnp.float32)

    out_pad = pallas_net(ang, params)                   # (bs, 128)
    return out_pad[:, :N_CLASS]


# ---------------------------------------------------------------------------
# Independent numpy reference (gate-by-gate statevector simulation)
# ---------------------------------------------------------------------------
def reference_forward(X, w1, w2, w_fc, b_fc):
    X = np.asarray(X, dtype=np.float64)
    w1, w2 = np.asarray(w1, np.float64), np.asarray(w2, np.float64)
    w_fc, b_fc = np.asarray(w_fc, np.float64), np.asarray(b_fc, np.float64)
    bs = X.shape[0]
    Ximg = X.reshape(bs, IMAGE_DIM, IMAGE_DIM)
    H = np.array([[1.0, 1.0], [1.0, -1.0]], dtype=np.complex128) / np.sqrt(2.0)

    def run_circuit(inputs, weights, n_qubits, n_layers, var_per_qubit, scale):
        D = 1 << n_qubits
        psi = np.zeros(D, dtype=np.complex128)
        psi[0] = 1.0
        for qub in range(n_qubits):
            psi = _embed(H, qub, n_qubits) @ psi
            for i in range(var_per_qubit):
                k = qub * var_per_qubit + i
                if k < len(inputs):
                    gate = _rz_mat if i % 2 == 0 else _rx_mat
                    psi = _embed(gate(scale * inputs[k]), qub, n_qubits) @ psi
        for l in range(n_layers):
            for i in range(n_qubits):
                psi = _crz_full(weights[l, i], i, (i + 1) % n_qubits, n_qubits) @ psi
            for j in range(n_qubits, 2 * n_qubits):
                psi = _embed(_ry_mat(weights[l, j]), j % n_qubits, n_qubits) @ psi
        probs = np.abs(psi) ** 2
        return probs @ zsign_matrix(n_qubits).astype(np.float64)

    outs = []
    for b in range(bs):
        feats = []
        for i in range(0, IMAGE_DIM, STRIDE):
            for j in range(0, IMAGE_DIM, STRIDE):
                patch = Ximg[b, i:i + KERNEL_SIZE, j:j + KERNEL_SIZE].reshape(-1)
                feats.append(run_circuit(patch, w1, N_QUBITS, N_LAYERS, VAR_PER_QUBIT, 1.0))
        feats = np.concatenate(feats)
        q2 = run_circuit(feats, w2, QNN_QUBITS, QNN_LAYERS, QNN_VAR_PER_QUBIT, np.pi)
        outs.append(q2 @ w_fc.T + b_fc)
    return np.stack(outs)


# ---------------------------------------------------------------------------
if __name__ == "__main__":
    key = jax.random.PRNGKey(0)
    kx, kp = jax.random.split(key)
    # layout: NCHW input, (batch=2, channels=1, 14, 14)
    X = jax.random.uniform(kx, (2, 1, IMAGE_DIM, IMAGE_DIM), dtype=jnp.float32)

    params, raw = make_params(kp)
    fwd = jax.jit(net_forward)

    out = jax.block_until_ready(fwd(params, X))
    assert out.shape == (2, N_CLASS)

    ref = reference_forward(X, raw["w1"], raw["w2"], raw["w_fc"], raw["b_fc"])
    assert np.allclose(np.asarray(out), ref, atol=1e-2, rtol=1e-2), (np.asarray(out), ref)

    # Also exercise the multi-step "parallel" grid path (bs=16 -> bb=8, grid=(2,)).
    X16 = jnp.tile(X, (8, 1, 1, 1))
    out16 = jax.block_until_ready(fwd(params, X16))
    assert out16.shape == (16, N_CLASS)
    assert np.allclose(np.asarray(out16), np.tile(ref, (8, 1)), atol=1e-2, rtol=1e-2)

    print("KERNEL_OK")
</pallas_src>

<mosaic_0001>
module attributes {stable_mosaic.version = 11 : i64} {
  func.func @fused_net_kernel(%arg0: i32, %arg1: memref<2x256xf32, #tpu.memory_space<vmem>>, %arg2: memref<64x1024xf32, #tpu.memory_space<vmem>>, %arg3: memref<64x1024xf32, #tpu.memory_space<vmem>>, %arg4: memref<256x512xf32, #tpu.memory_space<vmem>>, %arg5: memref<256x512xf32, #tpu.memory_space<vmem>>, %arg6: memref<256x128xf32, #tpu.memory_space<vmem>>, %arg7: memref<256x512xf32, #tpu.memory_space<vmem>>, %arg8: memref<256x512xf32, #tpu.memory_space<vmem>>, %arg9: memref<256x128xf32, #tpu.memory_space<vmem>>, %arg10: memref<1x128xf32, #tpu.memory_space<vmem>>, %arg11: memref<2x128xf32, #tpu.memory_space<vmem>>) attributes {dimension_semantics = [#tpu.dimension_semantics<parallel>], iteration_bounds = array<i64: 1>, scalar_prefetch = 0 : i64, scratch_operands = 0 : i64, tpu.core_type = #tpu.core_type<tc>, window_params = [{transform_indices = @transform_0, window_bounds = array<i64: 2, 256>}, {pipeline_mode = #tpu.pipeline_mode<synchronous>, transform_indices = @transform_1, window_bounds = array<i64: 64, 1024>}, {pipeline_mode = #tpu.pipeline_mode<synchronous>, transform_indices = @transform_2, window_bounds = array<i64: 64, 1024>}, {pipeline_mode = #tpu.pipeline_mode<synchronous>, transform_indices = @transform_3, window_bounds = array<i64: 256, 512>}, {pipeline_mode = #tpu.pipeline_mode<synchronous>, transform_indices = @transform_4, window_bounds = array<i64: 256, 512>}, {pipeline_mode = #tpu.pipeline_mode<synchronous>, transform_indices = @transform_5, window_bounds = array<i64: 256, 128>}, {pipeline_mode = #tpu.pipeline_mode<synchronous>, transform_indices = @transform_6, window_bounds = array<i64: 256, 512>}, {pipeline_mode = #tpu.pipeline_mode<synchronous>, transform_indices = @transform_7, window_bounds = array<i64: 256, 512>}, {pipeline_mode = #tpu.pipeline_mode<synchronous>, transform_indices = @transform_8, window_bounds = array<i64: 256, 128>}, {pipeline_mode = #tpu.pipeline_mode<synchronous>, transform_indices = @transform_9, window_bounds = array<i64: 1, 128>}, {transform_indices = @transform_10, window_bounds = array<i64: 2, 128>}]} {
    %c0 = arith.constant 0 : index
    %c0_0 = arith.constant 0 : index
    %0 = vector.load %arg1[%c0, %c0_0] : memref<2x256xf32, #tpu.memory_space<vmem>>, vector<2x256xf32>
    %cst = arith.constant 5.000000e-01 : f32
    %1 = vector.broadcast %cst : f32 to vector<2x256xf32>
    %2 = arith.mulf %1, %0 : vector<2x256xf32>
    %3 = math.cos %2 : vector<2x256xf32>
    %cst_1 = arith.constant 5.000000e-01 : f32
    %4 = vector.broadcast %cst_1 : f32 to vector<2x256xf32>
    %5 = arith.mulf %4, %0 : vector<2x256xf32>
    %6 = math.sin %5 : vector<2x256xf32>
    %cst_2 = arith.constant 0.707106769 : f32
    %7 = vector.broadcast %cst_2 : f32 to vector<2x64xf32>
    %cst_3 = arith.constant 0.000000e+00 : f32
    %8 = vector.broadcast %cst_3 : f32 to vector<2x64xf32>
    %cst_4 = arith.constant 0.707106769 : f32
    %9 = vector.broadcast %cst_4 : f32 to vector<2x64xf32>
    %cst_5 = arith.constant 0.000000e+00 : f32
    %10 = vector.broadcast %cst_5 : f32 to vector<2x64xf32>
    %11 = vector.extract_strided_slice %3 {offsets = [0, 0], sizes = [2, 64], strides = [1, 1]} : vector<2x256xf32> to vector<2x64xf32>
    %12 = vector.extract_strided_slice %6 {offsets = [0, 0], sizes = [2, 64], strides = [1, 1]} : vector<2x256xf32> to vector<2x64xf32>
    %13 = arith.mulf %7, %11 : vector<2x64xf32>
    %14 = arith.mulf %8, %12 : vector<2x64xf32>
    %15 = arith.addf %13, %14 : vector<2x64xf32>
    %16 = arith.mulf %8, %11 : vector<2x64xf32>
    %17 = arith.mulf %7, %12 : vector<2x64xf32>
    %18 = arith.subf %16, %17 : vector<2x64xf32>
    %19 = arith.mulf %9, %11 : vector<2x64xf32>
    %20 = arith.mulf %10, %12 : vector<2x64xf32>
    %21 = arith.subf %19, %20 : vector<2x64xf32>
    %22 = arith.mulf %10, %11 : vector<2x64xf32>
    %23 = arith.mulf %9, %12 : vector<2x64xf32>
    %24 = arith.addf %22, %23 : vector<2x64xf32>
    %25 = vector.extract_strided_slice %3 {offsets = [0, 64], sizes = [2, 64], strides = [1, 1]} : vector<2x256xf32> to vector<2x64xf32>
    %26 = vector.extract_strided_slice %6 {offsets = [0, 64], sizes = [2, 64], strides = [1, 1]} : vector<2x256xf32> to vector<2x64xf32>
    %27 = arith.mulf %25, %15 : vector<2x64xf32>
    %28 = arith.mulf %26, %24 : vector<2x64xf32>
    %29 = arith.addf %27, %28 : vector<2x64xf32>
    %30 = arith.mulf %25, %18 : vector<2x64xf32>
    %31 = arith.mulf %26, %21 : vector<2x64xf32>
    %32 = arith.subf %30, %31 : vector<2x64xf32>
    %33 = arith.mulf %25, %21 : vector<2x64xf32>
    %34 = arith.mulf %26, %18 : vector<2x64xf32>
    %35 = arith.addf %33, %34 : vector<2x64xf32>
    %36 = arith.mulf %25, %24 : vector<2x64xf32>
    %37 = arith.mulf %26, %15 : vector<2x64xf32>
    %38 = arith.subf %36, %37 : vector<2x64xf32>
    %39 = vector.extract_strided_slice %3 {offsets = [0, 128], sizes = [2, 64], strides = [1, 1]} : vector<2x256xf32> to vector<2x64xf32>
    %40 = vector.extract_strided_slice %6 {offsets = [0, 128], sizes = [2, 64], strides = [1, 1]} : vector<2x256xf32> to vector<2x64xf32>
    %41 = arith.mulf %29, %39 : vector<2x64xf32>
    %42 = arith.mulf %32, %40 : vector<2x64xf32>
    %43 = arith.addf %41, %42 : vector<2x64xf32>
    %44 = arith.mulf %32, %39 : vector<2x64xf32>
    %45 = arith.mulf %29, %40 : vector<2x64xf32>
    %46 = arith.subf %44, %45 : vector<2x64xf32>
    %47 = arith.mulf %35, %39 : vector<2x64xf32>
    %48 = arith.mulf %38, %40 : vector<2x64xf32>
    %49 = arith.subf %47, %48 : vector<2x64xf32>
    %50 = arith.mulf %38, %39 : vector<2x64xf32>
    %51 = arith.mulf %35, %40 : vector<2x64xf32>
    %52 = arith.addf %50, %51 : vector<2x64xf32>
    %53 = vector.extract_strided_slice %3 {offsets = [0, 192], sizes = [2, 64], strides = [1, 1]} : vector<2x256xf32> to vector<2x64xf32>
    %54 = vector.extract_strided_slice %6 {offsets = [0, 192], sizes = [2, 64], strides = [1, 1]} : vector<2x256xf32> to vector<2x64xf32>
    %55 = arith.mulf %53, %43 : vector<2x64xf32>
    %56 = arith.mulf %54, %52 : vector<2x64xf32>
    %57 = arith.addf %55, %56 : vector<2x64xf32>
    %58 = arith.mulf %53, %46 : vector<2x64xf32>
    %59 = arith.mulf %54, %49 : vector<2x64xf32>
    %60 = arith.subf %58, %59 : vector<2x64xf32>
    %61 = arith.mulf %53, %49 : vector<2x64xf32>
    %62 = arith.mulf %54, %46 : vector<2x64xf32>
    %63 = arith.addf %61, %62 : vector<2x64xf32>
    %64 = arith.mulf %53, %52 : vector<2x64xf32>
    %65 = arith.mulf %54, %43 : vector<2x64xf32>
    %66 = arith.subf %64, %65 : vector<2x64xf32>
    %c0_6 = arith.constant 0 : index
    %c0_7 = arith.constant 0 : index
    %67 = vector.load %arg2[%c0_6, %c0_7] : memref<64x1024xf32, #tpu.memory_space<vmem>>, vector<64x1024xf32>
    %c0_8 = arith.constant 0 : index
    %c0_9 = arith.constant 0 : index
    %68 = vector.load %arg3[%c0_8, %c0_9] : memref<64x1024xf32, #tpu.memory_space<vmem>>, vector<64x1024xf32>
    %cst_10 = arith.constant dense<0.000000e+00> : vector<2x1024xf32>
    %69 = tpu.matmul %57, %67, %cst_10 {dimension_numbers = #tpu.dot_dimension_numbers<[1], [0], [0], [1], [0, 0, 1, 1], [], []>} : vector<2x64xf32>, vector<64x1024xf32>, vector<2x1024xf32> -> vector<2x1024xf32>
    %cst_11 = arith.constant dense<0.000000e+00> : vector<2x1024xf32>
    %70 = tpu.matmul %63, %68, %cst_11 {dimension_numbers = #tpu.dot_dimension_numbers<[1], [0], [0], [1], [0, 0, 1, 1], [], []>} : vector<2x64xf32>, vector<64x1024xf32>, vector<2x1024xf32> -> vector<2x1024xf32>
    %71 = arith.addf %69, %70 : vector<2x1024xf32>
    %cst_12 = arith.constant dense<0.000000e+00> : vector<2x1024xf32>
    %72 = tpu.matmul %60, %67, %cst_12 {dimension_numbers = #tpu.dot_dimension_numbers<[1], [0], [0], [1], [0, 0, 1, 1], [], []>} : vector<2x64xf32>, vector<64x1024xf32>, vector<2x1024xf32> -> vector<2x1024xf32>
    %cst_13 = arith.constant dense<0.000000e+00> : vector<2x1024xf32>
    %73 = tpu.matmul %66, %68, %cst_13 {dimension_numbers = #tpu.dot_dimension_numbers<[1], [0], [0], [1], [0, 0, 1, 1], [], []>} : vector<2x64xf32>, vector<64x1024xf32>, vector<2x1024xf32> -> vector<2x1024xf32>
    %74 = arith.addf %72, %73 : vector<2x1024xf32>
    %75 = vector.extract_strided_slice %71 {offsets = [0, 0], sizes = [2, 256], strides = [1, 1]} : vector<2x1024xf32> to vector<2x256xf32>
    %76 = vector.extract_strided_slice %74 {offsets = [0, 0], sizes = [2, 256], strides = [1, 1]} : vector<2x1024xf32> to vector<2x256xf32>
    %77 = vector.extract_strided_slice %71 {offsets = [0, 256], sizes = [2, 256], strides = [1, 1]} : vector<2x1024xf32> to vector<2x256xf32>
    %78 = vector.extract_strided_slice %74 {offsets = [0, 256], sizes = [2, 256], strides = [1, 1]} : vector<2x1024xf32> to vector<2x256xf32>
    %79 = arith.mulf %75, %77 : vector<2x256xf32>
    %80 = arith.mulf %76, %78 : vector<2x256xf32>
    %81 = arith.subf %79, %80 : vector<2x256xf32>
    %82 = arith.mulf %75, %78 : vector<2x256xf32>
    %83 = arith.mulf %76, %77 : vector<2x256xf32>
    %84 = arith.addf %82, %83 : vector<2x256xf32>
    %85 = vector.extract_strided_slice %71 {offsets = [0, 512], sizes = [2, 256], strides = [1, 1]} : vector<2x1024xf32> to vector<2x256xf32>
    %86 = vector.extract_strided_slice %74 {offsets = [0, 512], sizes = [2, 256], strides = [1, 1]} : vector<2x1024xf32> to vector<2x256xf32>
    %87 = vector.extract_strided_slice %71 {offsets = [0, 768], sizes = [2, 256], strides = [1, 1]} : vector<2x1024xf32> to vector<2x256xf32>
    %88 = vector.extract_strided_slice %74 {offsets = [0, 768], sizes = [2, 256], strides = [1, 1]} : vector<2x1024xf32> to vector<2x256xf32>
    %89 = arith.mulf %85, %87 : vector<2x256xf32>
    %90 = arith.mulf %86, %88 : vector<2x256xf32>
    %91 = arith.subf %89, %90 : vector<2x256xf32>
    %92 = arith.mulf %85, %88 : vector<2x256xf32>
    %93 = arith.mulf %86, %87 : vector<2x256xf32>
    %94 = arith.addf %92, %93 : vector<2x256xf32>
    %95 = arith.mulf %81, %91 : vector<2x256xf32>
    %96 = arith.mulf %84, %94 : vector<2x256xf32>
    %97 = arith.subf %95, %96 : vector<2x256xf32>
    %98 = arith.mulf %81, %94 : vector<2x256xf32>
    %99 = arith.mulf %84, %91 : vector<2x256xf32>
    %100 = arith.addf %98, %99 : vector<2x256xf32>
    %c0_14 = arith.constant 0 : index
    %c0_15 = arith.constant 0 : index
    %101 = vector.load %arg4[%c0_14, %c0_15] : memref<256x512xf32, #tpu.memory_space<vmem>>, vector<256x512xf32>
    %cst_16 = arith.constant dense<0.000000e+00> : vector<2x512xf32>
    %102 = tpu.matmul %97, %101, %cst_16 {dimension_numbers = #tpu.dot_dimension_numbers<[1], [0], [0], [1], [0, 0, 1, 1], [], []>} : vector<2x256xf32>, vector<256x512xf32>, vector<2x512xf32> -> vector<2x512xf32>
    %c0_17 = arith.constant 0 : index
    %c0_18 = arith.constant 0 : index
    %103 = vector.load %arg5[%c0_17, %c0_18] : memref<256x512xf32, #tpu.memory_space<vmem>>, vector<256x512xf32>
    %cst_19 = arith.constant dense<0.000000e+00> : vector<2x512xf32>
    %104 = tpu.matmul %100, %103, %cst_19 {dimension_numbers = #tpu.dot_dimension_numbers<[1], [0], [0], [1], [0, 0, 1, 1], [], []>} : vector<2x256xf32>, vector<256x512xf32>, vector<2x512xf32> -> vector<2x512xf32>
    %105 = arith.addf %102, %104 : vector<2x512xf32>
    %106 = vector.extract_strided_slice %105 {offsets = [0, 0], sizes = [2, 256], strides = [1, 1]} : vector<2x512xf32> to vector<2x256xf32>
    %107 = vector.extract_strided_slice %105 {offsets = [0, 256], sizes = [2, 256], strides = [1, 1]} : vector<2x512xf32> to vector<2x256xf32>
    %108 = arith.mulf %106, %106 : vector<2x256xf32>
    %109 = arith.mulf %107, %107 : vector<2x256xf32>
    %110 = arith.addf %108, %109 : vector<2x256xf32>
    %c0_20 = arith.constant 0 : index
    %c0_21 = arith.constant 0 : index
    %111 = vector.load %arg6[%c0_20, %c0_21] : memref<256x128xf32, #tpu.memory_space<vmem>>, vector<256x128xf32>
    %cst_22 = arith.constant dense<0.000000e+00> : vector<2x128xf32>
    %112 = tpu.matmul %110, %111, %cst_22 {dimension_numbers = #tpu.dot_dimension_numbers<[1], [0], [0], [1], [0, 0, 1, 1], [], []>} : vector<2x256xf32>, vector<256x128xf32>, vector<2x128xf32> -> vector<2x128xf32>
    %cst_23 = arith.constant 5.000000e-01 : f32
    %113 = vector.broadcast %cst_23 : f32 to vector<2x128xf32>
    %114 = arith.mulf %113, %112 : vector<2x128xf32>
    %115 = math.cos %114 : vector<2x128xf32>
    %cst_24 = arith.constant 5.000000e-01 : f32
    %116 = vector.broadcast %cst_24 : f32 to vector<2x128xf32>
    %117 = arith.mulf %116, %112 : vector<2x128xf32>
    %118 = math.sin %117 : vector<2x128xf32>
    %cst_25 = arith.constant 0.707106769 : f32
    %119 = vector.broadcast %cst_25 : f32 to vector<2x8xf32>
    %cst_26 = arith.constant 0.000000e+00 : f32
    %120 = vector.broadcast %cst_26 : f32 to vector<2x8xf32>
    %cst_27 = arith.constant 0.707106769 : f32
    %121 = vector.broadcast %cst_27 : f32 to vector<2x8xf32>
    %cst_28 = arith.constant 0.000000e+00 : f32
    %122 = vector.broadcast %cst_28 : f32 to vector<2x8xf32>
    %123 = vector.extract_strided_slice %115 {offsets = [0, 0], sizes = [2, 8], strides = [1, 1]} : vector<2x128xf32> to vector<2x8xf32>
    %124 = vector.extract_strided_slice %118 {offsets = [0, 0], sizes = [2, 8], strides = [1, 1]} : vector<2x128xf32> to vector<2x8xf32>
    %125 = arith.mulf %119, %123 : vector<2x8xf32>
    %126 = arith.mulf %120, %124 : vector<2x8xf32>
    %127 = arith.addf %125, %126 : vector<2x8xf32>
    %128 = arith.mulf %120, %123 : vector<2x8xf32>
    %129 = arith.mulf %119, %124 : vector<2x8xf32>
    %130 = arith.subf %128, %129 : vector<2x8xf32>
    %131 = arith.mulf %121, %123 : vector<2x8xf32>
    %132 = arith.mulf %122, %124 : vector<2x8xf32>
    %133 = arith.subf %131, %132 : vector<2x8xf32>
    %134 = arith.mulf %122, %123 : vector<2x8xf32>
    %135 = arith.mulf %121, %124 : vector<2x8xf32>
    %136 = arith.addf %134, %135 : vector<2x8xf32>
    %137 = vector.extract_strided_slice %115 {offsets = [0, 8], sizes = [2, 8], strides = [1, 1]} : vector<2x128xf32> to vector<2x8xf32>
    %138 = vector.extract_strided_slice %118 {offsets = [0, 8], sizes = [2, 8], strides = [1, 1]} : vector<2x128xf32> to vector<2x8xf32>
    %139 = arith.mulf %137, %127 : vector<2x8xf32>
    %140 = arith.mulf %138, %136 : vector<2x8xf32>
    %141 = arith.addf %139, %140 : vector<2x8xf32>
    %142 = arith.mulf %137, %130 : vector<2x8xf32>
    %143 = arith.mulf %138, %133 : vector<2x8xf32>
    %144 = arith.subf %142, %143 : vector<2x8xf32>
    %145 = arith.mulf %137, %133 : vector<2x8xf32>
    %146 = arith.mulf %138, %130 : vector<2x8xf32>
    %147 = arith.addf %145, %146 : vector<2x8xf32>
    %148 = arith.mulf %137, %136 : vector<2x8xf32>
    %149 = arith.mulf %138, %127 : vector<2x8xf32>
    %150 = arith.subf %148, %149 : vector<2x8xf32>
    %151 = vector.extract_strided_slice %115 {offsets = [0, 16], sizes = [2, 8], strides = [1, 1]} : vector<2x128xf32> to vector<2x8xf32>
    %152 = vector.extract_strided_slice %118 {offsets = [0, 16], sizes = [2, 8], strides = [1, 1]} : vector<2x128xf32> to vector<2x8xf32>
    %153 = arith.mulf %141, %151 : vector<2x8xf32>
    %154 = arith.mulf %144, %152 : vector<2x8xf32>
    %155 = arith.addf %153, %154 : vector<2x8xf32>
    %156 = arith.mulf %144, %151 : vector<2x8xf32>
    %157 = arith.mulf %141, %152 : vector<2x8xf32>
    %158 = arith.subf %156, %157 : vector<2x8xf32>
    %159 = arith.mulf %147, %151 : vector<2x8xf32>
    %160 = arith.mulf %150, %152 : vector<2x8xf32>
    %161 = arith.subf %159, %160 : vector<2x8xf32>
    %162 = arith.mulf %150, %151 : vector<2x8xf32>
    %163 = arith.mulf %147, %152 : vector<2x8xf32>
    %164 = arith.addf %162, %163 : vector<2x8xf32>
    %165 = vector.extract_strided_slice %115 {offsets = [0, 24], sizes = [2, 8], strides = [1, 1]} : vector<2x128xf32> to vector<2x8xf32>
    %166 = vector.extract_strided_slice %118 {offsets = [0, 24], sizes = [2, 8], strides = [1, 1]} : vector<2x128xf32> to vector<2x8xf32>
    %167 = arith.mulf %165, %155 : vector<2x8xf32>
    %168 = arith.mulf %166, %164 : vector<2x8xf32>
    %169 = arith.addf %167, %168 : vector<2x8xf32>
    %170 = arith.mulf %165, %158 : vector<2x8xf32>
    %171 = arith.mulf %166, %161 : vector<2x8xf32>
    %172 = arith.subf %170, %171 : vector<2x8xf32>
    %173 = arith.mulf %165, %161 : vector<2x8xf32>
    %174 = arith.mulf %166, %158 : vector<2x8xf32>
    %175 = arith.addf %173, %174 : vector<2x8xf32>
    %176 = arith.mulf %165, %164 : vector<2x8xf32>
    %177 = arith.mulf %166, %155 : vector<2x8xf32>
    %178 = arith.subf %176, %177 : vector<2x8xf32>
    %179 = vector.extract_strided_slice %115 {offsets = [0, 32], sizes = [2, 8], strides = [1, 1]} : vector<2x128xf32> to vector<2x8xf32>
    %180 = vector.extract_strided_slice %118 {offsets = [0, 32], sizes = [2, 8], strides = [1, 1]} : vector<2x128xf32> to vector<2x8xf32>
    %181 = arith.mulf %169, %179 : vector<2x8xf32>
    %182 = arith.mulf %172, %180 : vector<2x8xf32>
    %183 = arith.addf %181, %182 : vector<2x8xf32>
    %184 = arith.mulf %172, %179 : vector<2x8xf32>
    %185 = arith.mulf %169, %180 : vector<2x8xf32>
    %186 = arith.subf %184, %185 : vector<2x8xf32>
    %187 = arith.mulf %175, %179 : vector<2x8xf32>
    %188 = arith.mulf %178, %180 : vector<2x8xf32>
    %189 = arith.subf %187, %188 : vector<2x8xf32>
    %190 = arith.mulf %178, %179 : vector<2x8xf32>
    %191 = arith.mulf %175, %180 : vector<2x8xf32>
    %192 = arith.addf %190, %191 : vector<2x8xf32>
    %193 = vector.extract_strided_slice %115 {offsets = [0, 40], sizes = [2, 8], strides = [1, 1]} : vector<2x128xf32> to vector<2x8xf32>
    %194 = vector.extract_strided_slice %118 {offsets = [0, 40], sizes = [2, 8], strides = [1, 1]} : vector<2x128xf32> to vector<2x8xf32>
    %195 = arith.mulf %193, %183 : vector<2x8xf32>
    %196 = arith.mulf %194, %192 : vector<2x8xf32>
    %197 = arith.addf %195, %196 : vector<2x8xf32>
    %198 = arith.mulf %193, %186 : vector<2x8xf32>
    %199 = arith.mulf %194, %189 : vector<2x8xf32>
    %200 = arith.subf %198, %199 : vector<2x8xf32>
    %201 = arith.mulf %193, %189 : vector<2x8xf32>
    %202 = arith.mulf %194, %186 : vector<2x8xf32>
    %203 = arith.addf %201, %202 : vector<2x8xf32>
    %204 = arith.mulf %193, %192 : vector<2x8xf32>
    %205 = arith.mulf %194, %183 : vector<2x8xf32>
    %206 = arith.subf %204, %205 : vector<2x8xf32>
    %207 = vector.extract_strided_slice %115 {offsets = [0, 48], sizes = [2, 8], strides = [1, 1]} : vector<2x128xf32> to vector<2x8xf32>
    %208 = vector.extract_strided_slice %118 {offsets = [0, 48], sizes = [2, 8], strides = [1, 1]} : vector<2x128xf32> to vector<2x8xf32>
    %209 = arith.mulf %197, %207 : vector<2x8xf32>
    %210 = arith.mulf %200, %208 : vector<2x8xf32>
    %211 = arith.addf %209, %210 : vector<2x8xf32>
    %212 = arith.mulf %200, %207 : vector<2x8xf32>
    %213 = arith.mulf %197, %208 : vector<2x8xf32>
    %214 = arith.subf %212, %213 : vector<2x8xf32>
    %215 = arith.mulf %203, %207 : vector<2x8xf32>
    %216 = arith.mulf %206, %208 : vector<2x8xf32>
    %217 = arith.subf %215, %216 : vector<2x8xf32>
    %218 = arith.mulf %206, %207 : vector<2x8xf32>
    %219 = arith.mulf %203, %208 : vector<2x8xf32>
    %220 = arith.addf %218, %219 : vector<2x8xf32>
    %221 = vector.extract_strided_slice %115 {offsets = [0, 56], sizes = [2, 8], strides = [1, 1]} : vector<2x128xf32> to vector<2x8xf32>
    %222 = vector.extract_strided_slice %118 {offsets = [0, 56], sizes = [2, 8], strides = [1, 1]} : vector<2x128xf32> to vector<2x8xf32>
    %223 = arith.mulf %221, %211 : vector<2x8xf32>
    %224 = arith.mulf %222, %220 : vector<2x8xf32>
    %225 = arith.addf %223, %224 : vector<2x8xf32>
    %226 = arith.mulf %221, %214 : vector<2x8xf32>
    %227 = arith.mulf %222, %217 : vector<2x8xf32>
    %228 = arith.subf %226, %227 : vector<2x8xf32>
    %229 = arith.mulf %221, %217 : vector<2x8xf32>
    %230 = arith.mulf %222, %214 : vector<2x8xf32>
    %231 = arith.addf %229, %230 : vector<2x8xf32>
    %232 = arith.mulf %221, %220 : vector<2x8xf32>
    %233 = arith.mulf %222, %211 : vector<2x8xf32>
    %234 = arith.subf %232, %233 : vector<2x8xf32>
    %235 = vector.extract_strided_slice %115 {offsets = [0, 64], sizes = [2, 8], strides = [1, 1]} : vector<2x128xf32> to vector<2x8xf32>
    %236 = vector.extract_strided_slice %118 {offsets = [0, 64], sizes = [2, 8], strides = [1, 1]} : vector<2x128xf32> to vector<2x8xf32>
    %237 = arith.mulf %225, %235 : vector<2x8xf32>
    %238 = arith.mulf %228, %236 : vector<2x8xf32>
    %239 = arith.addf %237, %238 : vector<2x8xf32>
    %240 = arith.mulf %228, %235 : vector<2x8xf32>
    %241 = arith.mulf %225, %236 : vector<2x8xf32>
    %242 = arith.subf %240, %241 : vector<2x8xf32>
    %243 = arith.mulf %231, %235 : vector<2x8xf32>
    %244 = arith.mulf %234, %236 : vector<2x8xf32>
    %245 = arith.subf %243, %244 : vector<2x8xf32>
    %246 = arith.mulf %234, %235 : vector<2x8xf32>
    %247 = arith.mulf %231, %236 : vector<2x8xf32>
    %248 = arith.addf %246, %247 : vector<2x8xf32>
    %249 = tpu.iota {dimensions = array<i32: 1>} : vector<2x256xi32>
    %c7_i32 = arith.constant 7 : i32
    %250 = vector.broadcast %c7_i32 : i32 to vector<2x256xi32>
    %251 = arith.shrsi %249, %250 : vector<2x256xi32>
    %c1_i32 = arith.constant 1 : i32
    %252 = vector.broadcast %c1_i32 : i32 to vector<2x256xi32>
    %253 = arith.andi %251, %252 : vector<2x256xi32>
    %c0_i32 = arith.constant 0 : i32
    %254 = vector.broadcast %c0_i32 : i32 to vector<2x256xi32>
    %255 = arith.cmpi eq, %253, %254 : vector<2x256xi32>
    %256 = vector.extract_strided_slice %239 {offsets = [0, 0], sizes = [2, 1], strides = [1, 1]} : vector<2x8xf32> to vector<2x1xf32>
    %257 = vector.extract_strided_slice %245 {offsets = [0, 0], sizes = [2, 1], strides = [1, 1]} : vector<2x8xf32> to vector<2x1xf32>
    %258 = vector.shape_cast %256 : vector<2x1xf32> to vector<2x1xf32>
    %259 = vector.broadcast %258 : vector<2x1xf32> to vector<2x256xf32>
    %260 = vector.shape_cast %257 : vector<2x1xf32> to vector<2x1xf32>
    %261 = vector.broadcast %260 : vector<2x1xf32> to vector<2x256xf32>
    %262 = arith.select %255, %259, %261 : vector<2x256xi1>, vector<2x256xf32>
    %263 = vector.extract_strided_slice %242 {offsets = [0, 0], sizes = [2, 1], strides = [1, 1]} : vector<2x8xf32> to vector<2x1xf32>
    %264 = vector.extract_strided_slice %248 {offsets = [0, 0], sizes = [2, 1], strides = [1, 1]} : vector<2x8xf32> to vector<2x1xf32>
    %265 = vector.shape_cast %263 : vector<2x1xf32> to vector<2x1xf32>
    %266 = vector.broadcast %265 : vector<2x1xf32> to vector<2x256xf32>
    %267 = vector.shape_cast %264 : vector<2x1xf32> to vector<2x1xf32>
    %268 = vector.broadcast %267 : vector<2x1xf32> to vector<2x256xf32>
    %269 = arith.select %255, %266, %268 : vector<2x256xi1>, vector<2x256xf32>
    %c6_i32 = arith.constant 6 : i32
    %270 = vector.broadcast %c6_i32 : i32 to vector<2x256xi32>
    %271 = arith.shrsi %249, %270 : vector<2x256xi32>
    %c1_i32_29 = arith.constant 1 : i32
    %272 = vector.broadcast %c1_i32_29 : i32 to vector<2x256xi32>
    %273 = arith.andi %271, %272 : vector<2x256xi32>
    %c0_i32_30 = arith.constant 0 : i32
    %274 = vector.broadcast %c0_i32_30 : i32 to vector<2x256xi32>
    %275 = arith.cmpi eq, %273, %274 : vector<2x256xi32>
    %276 = vector.extract_strided_slice %239 {offsets = [0, 1], sizes = [2, 1], strides = [1, 1]} : vector<2x8xf32> to vector<2x1xf32>
    %277 = vector.extract_strided_slice %245 {offsets = [0, 1], sizes = [2, 1], strides = [1, 1]} : vector<2x8xf32> to vector<2x1xf32>
    %278 = vector.shape_cast %276 : vector<2x1xf32> to vector<2x1xf32>
    %279 = vector.broadcast %278 : vector<2x1xf32> to vector<2x256xf32>
    %280 = vector.shape_cast %277 : vector<2x1xf32> to vector<2x1xf32>
    %281 = vector.broadcast %280 : vector<2x1xf32> to vector<2x256xf32>
    %282 = arith.select %275, %279, %281 : vector<2x256xi1>, vector<2x256xf32>
    %283 = vector.extract_strided_slice %242 {offsets = [0, 1], sizes = [2, 1], strides = [1, 1]} : vector<2x8xf32> to vector<2x1xf32>
    %284 = vector.extract_strided_slice %248 {offsets = [0, 1], sizes = [2, 1], strides = [1, 1]} : vector<2x8xf32> to vector<2x1xf32>
    %285 = vector.shape_cast %283 : vector<2x1xf32> to vector<2x1xf32>
    %286 = vector.broadcast %285 : vector<2x1xf32> to vector<2x256xf32>
    %287 = vector.shape_cast %284 : vector<2x1xf32> to vector<2x1xf32>
    %288 = vector.broadcast %287 : vector<2x1xf32> to vector<2x256xf32>
    %289 = arith.select %275, %286, %288 : vector<2x256xi1>, vector<2x256xf32>
    %290 = arith.mulf %262, %282 : vector<2x256xf32>
    %291 = arith.mulf %269, %289 : vector<2x256xf32>
    %292 = arith.subf %290, %291 : vector<2x256xf32>
    %293 = arith.mulf %262, %289 : vector<2x256xf32>
    %294 = arith.mulf %269, %282 : vector<2x256xf32>
    %295 = arith.addf %293, %294 : vector<2x256xf32>
    %c5_i32 = arith.constant 5 : i32
    %296 = vector.broadcast %c5_i32 : i32 to vector<2x256xi32>
    %297 = arith.shrsi %249, %296 : vector<2x256xi32>
    %c1_i32_31 = arith.constant 1 : i32
    %298 = vector.broadcast %c1_i32_31 : i32 to vector<2x256xi32>
    %299 = arith.andi %297, %298 : vector<2x256xi32>
    %c0_i32_32 = arith.constant 0 : i32
    %300 = vector.broadcast %c0_i32_32 : i32 to vector<2x256xi32>
    %301 = arith.cmpi eq, %299, %300 : vector<2x256xi32>
    %302 = vector.extract_strided_slice %239 {offsets = [0, 2], sizes = [2, 1], strides = [1, 1]} : vector<2x8xf32> to vector<2x1xf32>
    %303 = vector.extract_strided_slice %245 {offsets = [0, 2], sizes = [2, 1], strides = [1, 1]} : vector<2x8xf32> to vector<2x1xf32>
    %304 = vector.shape_cast %302 : vector<2x1xf32> to vector<2x1xf32>
    %305 = vector.broadcast %304 : vector<2x1xf32> to vector<2x256xf32>
    %306 = vector.shape_cast %303 : vector<2x1xf32> to vector<2x1xf32>
    %307 = vector.broadcast %306 : vector<2x1xf32> to vector<2x256xf32>
    %308 = arith.select %301, %305, %307 : vector<2x256xi1>, vector<2x256xf32>
    %309 = vector.extract_strided_slice %242 {offsets = [0, 2], sizes = [2, 1], strides = [1, 1]} : vector<2x8xf32> to vector<2x1xf32>
    %310 = vector.extract_strided_slice %248 {offsets = [0, 2], sizes = [2, 1], strides = [1, 1]} : vector<2x8xf32> to vector<2x1xf32>
    %311 = vector.shape_cast %309 : vector<2x1xf32> to vector<2x1xf32>
    %312 = vector.broadcast %311 : vector<2x1xf32> to vector<2x256xf32>
    %313 = vector.shape_cast %310 : vector<2x1xf32> to vector<2x1xf32>
    %314 = vector.broadcast %313 : vector<2x1xf32> to vector<2x256xf32>
    %315 = arith.select %301, %312, %314 : vector<2x256xi1>, vector<2x256xf32>
    %c4_i32 = arith.constant 4 : i32
    %316 = vector.broadcast %c4_i32 : i32 to vector<2x256xi32>
    %317 = arith.shrsi %249, %316 : vector<2x256xi32>
    %c1_i32_33 = arith.constant 1 : i32
    %318 = vector.broadcast %c1_i32_33 : i32 to vector<2x256xi32>
    %319 = arith.andi %317, %318 : vector<2x256xi32>
    %c0_i32_34 = arith.constant 0 : i32
    %320 = vector.broadcast %c0_i32_34 : i32 to vector<2x256xi32>
    %321 = arith.cmpi eq, %319, %320 : vector<2x256xi32>
    %322 = vector.extract_strided_slice %239 {offsets = [0, 3], sizes = [2, 1], strides = [1, 1]} : vector<2x8xf32> to vector<2x1xf32>
    %323 = vector.extract_strided_slice %245 {offsets = [0, 3], sizes = [2, 1], strides = [1, 1]} : vector<2x8xf32> to vector<2x1xf32>
    %324 = vector.shape_cast %322 : vector<2x1xf32> to vector<2x1xf32>
    %325 = vector.broadcast %324 : vector<2x1xf32> to vector<2x256xf32>
    %326 = vector.shape_cast %323 : vector<2x1xf32> to vector<2x1xf32>
    %327 = vector.broadcast %326 : vector<2x1xf32> to vector<2x256xf32>
    %328 = arith.select %321, %325, %327 : vector<2x256xi1>, vector<2x256xf32>
    %329 = vector.extract_strided_slice %242 {offsets = [0, 3], sizes = [2, 1], strides = [1, 1]} : vector<2x8xf32> to vector<2x1xf32>
    %330 = vector.extract_strided_slice %248 {offsets = [0, 3], sizes = [2, 1], strides = [1, 1]} : vector<2x8xf32> to vector<2x1xf32>
    %331 = vector.shape_cast %329 : vector<2x1xf32> to vector<2x1xf32>
    %332 = vector.broadcast %331 : vector<2x1xf32> to vector<2x256xf32>
    %333 = vector.shape_cast %330 : vector<2x1xf32> to vector<2x1xf32>
    %334 = vector.broadcast %333 : vector<2x1xf32> to vector<2x256xf32>
    %335 = arith.select %321, %332, %334 : vector<2x256xi1>, vector<2x256xf32>
    %336 = arith.mulf %308, %328 : vector<2x256xf32>
    %337 = arith.mulf %315, %335 : vector<2x256xf32>
    %338 = arith.subf %336, %337 : vector<2x256xf32>
    %339 = arith.mulf %308, %335 : vector<2x256xf32>
    %340 = arith.mulf %315, %328 : vector<2x256xf32>
    %341 = arith.addf %339, %340 : vector<2x256xf32>
    %342 = arith.mulf %292, %338 : vector<2x256xf32>
    %343 = arith.mulf %295, %341 : vector<2x256xf32>
    %344 = arith.subf %342, %343 : vector<2x256xf32>
    %345 = arith.mulf %292, %341 : vector<2x256xf32>
    %346 = arith.mulf %295, %338 : vector<2x256xf32>
    %347 = arith.addf %345, %346 : vector<2x256xf32>
    %c3_i32 = arith.constant 3 : i32
    %348 = vector.broadcast %c3_i32 : i32 to vector<2x256xi32>
    %349 = arith.shrsi %249, %348 : vector<2x256xi32>
    %c1_i32_35 = arith.constant 1 : i32
    %350 = vector.broadcast %c1_i32_35 : i32 to vector<2x256xi32>
    %351 = arith.andi %349, %350 : vector<2x256xi32>
    %c0_i32_36 = arith.constant 0 : i32
    %352 = vector.broadcast %c0_i32_36 : i32 to vector<2x256xi32>
    %353 = arith.cmpi eq, %351, %352 : vector<2x256xi32>
    %354 = vector.extract_strided_slice %239 {offsets = [0, 4], sizes = [2, 1], strides = [1, 1]} : vector<2x8xf32> to vector<2x1xf32>
    %355 = vector.extract_strided_slice %245 {offsets = [0, 4], sizes = [2, 1], strides = [1, 1]} : vector<2x8xf32> to vector<2x1xf32>
    %356 = vector.shape_cast %354 : vector<2x1xf32> to vector<2x1xf32>
    %357 = vector.broadcast %356 : vector<2x1xf32> to vector<2x256xf32>
    %358 = vector.shape_cast %355 : vector<2x1xf32> to vector<2x1xf32>
    %359 = vector.broadcast %358 : vector<2x1xf32> to vector<2x256xf32>
    %360 = arith.select %353, %357, %359 : vector<2x256xi1>, vector<2x256xf32>
    %361 = vector.extract_strided_slice %242 {offsets = [0, 4], sizes = [2, 1], strides = [1, 1]} : vector<2x8xf32> to vector<2x1xf32>
    %362 = vector.extract_strided_slice %248 {offsets = [0, 4], sizes = [2, 1], strides = [1, 1]} : vector<2x8xf32> to vector<2x1xf32>
    %363 = vector.shape_cast %361 : vector<2x1xf32> to vector<2x1xf32>
    %364 = vector.broadcast %363 : vector<2x1xf32> to vector<2x256xf32>
    %365 = vector.shape_cast %362 : vector<2x1xf32> to vector<2x1xf32>
    %366 = vector.broadcast %365 : vector<2x1xf32> to vector<2x256xf32>
    %367 = arith.select %353, %364, %366 : vector<2x256xi1>, vector<2x256xf32>
    %c2_i32 = arith.constant 2 : i32
    %368 = vector.broadcast %c2_i32 : i32 to vector<2x256xi32>
    %369 = arith.shrsi %249, %368 : vector<2x256xi32>
    %c1_i32_37 = arith.constant 1 : i32
    %370 = vector.broadcast %c1_i32_37 : i32 to vector<2x256xi32>
    %371 = arith.andi %369, %370 : vector<2x256xi32>
    %c0_i32_38 = arith.constant 0 : i32
    %372 = vector.broadcast %c0_i32_38 : i32 to vector<2x256xi32>
    %373 = arith.cmpi eq, %371, %372 : vector<2x256xi32>
    %374 = vector.extract_strided_slice %239 {offsets = [0, 5], sizes = [2, 1], strides = [1, 1]} : vector<2x8xf32> to vector<2x1xf32>
    %375 = vector.extract_strided_slice %245 {offsets = [0, 5], sizes = [2, 1], strides = [1, 1]} : vector<2x8xf32> to vector<2x1xf32>
    %376 = vector.shape_cast %374 : vector<2x1xf32> to vector<2x1xf32>
    %377 = vector.broadcast %376 : vector<2x1xf32> to vector<2x256xf32>
    %378 = vector.shape_cast %375 : vector<2x1xf32> to vector<2x1xf32>
    %379 = vector.broadcast %378 : vector<2x1xf32> to vector<2x256xf32>
    %380 = arith.select %373, %377, %379 : vector<2x256xi1>, vector<2x256xf32>
    %381 = vector.extract_strided_slice %242 {offsets = [0, 5], sizes = [2, 1], strides = [1, 1]} : vector<2x8xf32> to vector<2x1xf32>
    %382 = vector.extract_strided_slice %248 {offsets = [0, 5], sizes = [2, 1], strides = [1, 1]} : vector<2x8xf32> to vector<2x1xf32>
    %383 = vector.shape_cast %381 : vector<2x1xf32> to vector<2x1xf32>
    %384 = vector.broadcast %383 : vector<2x1xf32> to vector<2x256xf32>
    %385 = vector.shape_cast %382 : vector<2x1xf32> to vector<2x1xf32>
    %386 = vector.broadcast %385 : vector<2x1xf32> to vector<2x256xf32>
    %387 = arith.select %373, %384, %386 : vector<2x256xi1>, vector<2x256xf32>
    %388 = arith.mulf %360, %380 : vector<2x256xf32>
    %389 = arith.mulf %367, %387 : vector<2x256xf32>
    %390 = arith.subf %388, %389 : vector<2x256xf32>
    %391 = arith.mulf %360, %387 : vector<2x256xf32>
    %392 = arith.mulf %367, %380 : vector<2x256xf32>
    %393 = arith.addf %391, %392 : vector<2x256xf32>
    %c1_i32_39 = arith.constant 1 : i32
    %394 = vector.broadcast %c1_i32_39 : i32 to vector<2x256xi32>
    %395 = arith.shrsi %249, %394 : vector<2x256xi32>
    %c1_i32_40 = arith.constant 1 : i32
    %396 = vector.broadcast %c1_i32_40 : i32 to vector<2x256xi32>
    %397 = arith.andi %395, %396 : vector<2x256xi32>
    %c0_i32_41 = arith.constant 0 : i32
    %398 = vector.broadcast %c0_i32_41 : i32 to vector<2x256xi32>
    %399 = arith.cmpi eq, %397, %398 : vector<2x256xi32>
    %400 = vector.extract_strided_slice %239 {offsets = [0, 6], sizes = [2, 1], strides = [1, 1]} : vector<2x8xf32> to vector<2x1xf32>
    %401 = vector.extract_strided_slice %245 {offsets = [0, 6], sizes = [2, 1], strides = [1, 1]} : vector<2x8xf32> to vector<2x1xf32>
    %402 = vector.shape_cast %400 : vector<2x1xf32> to vector<2x1xf32>
    %403 = vector.broadcast %402 : vector<2x1xf32> to vector<2x256xf32>
    %404 = vector.shape_cast %401 : vector<2x1xf32> to vector<2x1xf32>
    %405 = vector.broadcast %404 : vector<2x1xf32> to vector<2x256xf32>
    %406 = arith.select %399, %403, %405 : vector<2x256xi1>, vector<2x256xf32>
    %407 = vector.extract_strided_slice %242 {offsets = [0, 6], sizes = [2, 1], strides = [1, 1]} : vector<2x8xf32> to vector<2x1xf32>
    %408 = vector.extract_strided_slice %248 {offsets = [0, 6], sizes = [2, 1], strides = [1, 1]} : vector<2x8xf32> to vector<2x1xf32>
    %409 = vector.shape_cast %407 : vector<2x1xf32> to vector<2x1xf32>
    %410 = vector.broadcast %409 : vector<2x1xf32> to vector<2x256xf32>
    %411 = vector.shape_cast %408 : vector<2x1xf32> to vector<2x1xf32>
    %412 = vector.broadcast %411 : vector<2x1xf32> to vector<2x256xf32>
    %413 = arith.select %399, %410, %412 : vector<2x256xi1>, vector<2x256xf32>
    %c0_i32_42 = arith.constant 0 : i32
    %414 = vector.broadcast %c0_i32_42 : i32 to vector<2x256xi32>
    %415 = arith.shrsi %249, %414 : vector<2x256xi32>
    %c1_i32_43 = arith.constant 1 : i32
    %416 = vector.broadcast %c1_i32_43 : i32 to vector<2x256xi32>
    %417 = arith.andi %415, %416 : vector<2x256xi32>
    %c0_i32_44 = arith.constant 0 : i32
    %418 = vector.broadcast %c0_i32_44 : i32 to vector<2x256xi32>
    %419 = arith.cmpi eq, %417, %418 : vector<2x256xi32>
    %420 = vector.extract_strided_slice %239 {offsets = [0, 7], sizes = [2, 1], strides = [1, 1]} : vector<2x8xf32> to vector<2x1xf32>
    %421 = vector.extract_strided_slice %245 {offsets = [0, 7], sizes = [2, 1], strides = [1, 1]} : vector<2x8xf32> to vector<2x1xf32>
    %422 = vector.shape_cast %420 : vector<2x1xf32> to vector<2x1xf32>
    %423 = vector.broadcast %422 : vector<2x1xf32> to vector<2x256xf32>
    %424 = vector.shape_cast %421 : vector<2x1xf32> to vector<2x1xf32>
    %425 = vector.broadcast %424 : vector<2x1xf32> to vector<2x256xf32>
    %426 = arith.select %419, %423, %425 : vector<2x256xi1>, vector<2x256xf32>
    %427 = vector.extract_strided_slice %242 {offsets = [0, 7], sizes = [2, 1], strides = [1, 1]} : vector<2x8xf32> to vector<2x1xf32>
    %428 = vector.extract_strided_slice %248 {offsets = [0, 7], sizes = [2, 1], strides = [1, 1]} : vector<2x8xf32> to vector<2x1xf32>
    %429 = vector.shape_cast %427 : vector<2x1xf32> to vector<2x1xf32>
    %430 = vector.broadcast %429 : vector<2x1xf32> to vector<2x256xf32>
    %431 = vector.shape_cast %428 : vector<2x1xf32> to vector<2x1xf32>
    %432 = vector.broadcast %431 : vector<2x1xf32> to vector<2x256xf32>
    %433 = arith.select %419, %430, %432 : vector<2x256xi1>, vector<2x256xf32>
    %434 = arith.mulf %406, %426 : vector<2x256xf32>
    %435 = arith.mulf %413, %433 : vector<2x256xf32>
    %436 = arith.subf %434, %435 : vector<2x256xf32>
    %437 = arith.mulf %406, %433 : vector<2x256xf32>
    %438 = arith.mulf %413, %426 : vector<2x256xf32>
    %439 = arith.addf %437, %438 : vector<2x256xf32>
    %440 = arith.mulf %390, %436 : vector<2x256xf32>
    %441 = arith.mulf %393, %439 : vector<2x256xf32>
    %442 = arith.subf %440, %441 : vector<2x256xf32>
    %443 = arith.mulf %390, %439 : vector<2x256xf32>
    %444 = arith.mulf %393, %436 : vector<2x256xf32>
    %445 = arith.addf %443, %444 : vector<2x256xf32>
    %446 = arith.mulf %344, %442 : vector<2x256xf32>
    %447 = arith.mulf %347, %445 : vector<2x256xf32>
    %448 = arith.subf %446, %447 : vector<2x256xf32>
    %449 = arith.mulf %344, %445 : vector<2x256xf32>
    %450 = arith.mulf %347, %442 : vector<2x256xf32>
    %451 = arith.addf %449, %450 : vector<2x256xf32>
    %c0_45 = arith.constant 0 : index
    %c0_46 = arith.constant 0 : index
    %452 = vector.load %arg7[%c0_45, %c0_46] : memref<256x512xf32, #tpu.memory_space<vmem>>, vector<256x512xf32>
    %cst_47 = arith.constant dense<0.000000e+00> : vector<2x512xf32>
    %453 = tpu.matmul %448, %452, %cst_47 {dimension_numbers = #tpu.dot_dimension_numbers<[1], [0], [0], [1], [0, 0, 1, 1], [], []>} : vector<2x256xf32>, vector<256x512xf32>, vector<2x512xf32> -> vector<2x512xf32>
    %c0_48 = arith.constant 0 : index
    %c0_49 = arith.constant 0 : index
    %454 = vector.load %arg8[%c0_48, %c0_49] : memref<256x512xf32, #tpu.memory_space<vmem>>, vector<256x512xf32>
    %cst_50 = arith.constant dense<0.000000e+00> : vector<2x512xf32>
    %455 = tpu.matmul %451, %454, %cst_50 {dimension_numbers = #tpu.dot_dimension_numbers<[1], [0], [0], [1], [0, 0, 1, 1], [], []>} : vector<2x256xf32>, vector<256x512xf32>, vector<2x512xf32> -> vector<2x512xf32>
    %456 = arith.addf %453, %455 : vector<2x512xf32>
    %457 = vector.extract_strided_slice %456 {offsets = [0, 0], sizes = [2, 256], strides = [1, 1]} : vector<2x512xf32> to vector<2x256xf32>
    %458 = vector.extract_strided_slice %456 {offsets = [0, 256], sizes = [2, 256], strides = [1, 1]} : vector<2x512xf32> to vector<2x256xf32>
    %459 = arith.mulf %457, %457 : vector<2x256xf32>
    %460 = arith.mulf %458, %458 : vector<2x256xf32>
    %461 = arith.addf %459, %460 : vector<2x256xf32>
    %c0_51 = arith.constant 0 : index
    %c0_52 = arith.constant 0 : index
    %462 = vector.load %arg9[%c0_51, %c0_52] : memref<256x128xf32, #tpu.memory_space<vmem>>, vector<256x128xf32>
    %cst_53 = arith.constant dense<0.000000e+00> : vector<2x128xf32>
    %463 = tpu.matmul %461, %462, %cst_53 {dimension_numbers = #tpu.dot_dimension_numbers<[1], [0], [0], [1], [0, 0, 1, 1], [], []>} : vector<2x256xf32>, vector<256x128xf32>, vector<2x128xf32> -> vector<2x128xf32>
    %c0_54 = arith.constant 0 : index
    %c0_55 = arith.constant 0 : index
    %464 = vector.load %arg10[%c0_54, %c0_55] : memref<1x128xf32, #tpu.memory_space<vmem>>, vector<1x128xf32>
    %465 = vector.broadcast %464 : vector<1x128xf32> to vector<2x128xf32>
    %466 = arith.addf %463, %465 : vector<2x128xf32>
    %c0_56 = arith.constant 0 : index
    %c0_57 = arith.constant 0 : index
    %467 = vector.load %arg11[%c0_56, %c0_57] : memref<2x128xf32, #tpu.memory_space<vmem>>, vector<2x128xf32>
    tpu.vector_store %arg11[%c0_56, %c0_57], %466 {strides = array<i32>} : memref<2x128xf32, #tpu.memory_space<vmem>>, vector<2x128xf32>,
    return
  }
  func.func @transform_0(%arg0: i32) -> (i32, i32) {
    %c0_i32 = arith.constant 0 : i32
    %c0_i32_0 = arith.constant 0 : i32
    return %arg0, %c0_i32 : i32, i32
  }
  func.func @transform_1(%arg0: i32) -> (i32, i32) {
    %c0_i32 = arith.constant 0 : i32
    %c0_i32_0 = arith.constant 0 : i32
    %c0_i32_1 = arith.constant 0 : i32
    return %c0_i32, %c0_i32_0 : i32, i32
  }
  func.func @transform_2(%arg0: i32) -> (i32, i32) {
    %c0_i32 = arith.constant 0 : i32
    %c0_i32_0 = arith.constant 0 : i32
    %c0_i32_1 = arith.constant 0 : i32
    return %c0_i32, %c0_i32_0 : i32, i32
  }
  func.func @transform_3(%arg0: i32) -> (i32, i32) {
    %c0_i32 = arith.constant 0 : i32
    %c0_i32_0 = arith.constant 0 : i32
    %c0_i32_1 = arith.constant 0 : i32
    return %c0_i32, %c0_i32_0 : i32, i32
  }
  func.func @transform_4(%arg0: i32) -> (i32, i32) {
    %c0_i32 = arith.constant 0 : i32
    %c0_i32_0 = arith.constant 0 : i32
    %c0_i32_1 = arith.constant 0 : i32
    return %c0_i32, %c0_i32_0 : i32, i32
  }
  func.func @transform_5(%arg0: i32) -> (i32, i32) {
    %c0_i32 = arith.constant 0 : i32
    %c0_i32_0 = arith.constant 0 : i32
    %c0_i32_1 = arith.constant 0 : i32
    return %c0_i32, %c0_i32_0 : i32, i32
  }
  func.func @transform_6(%arg0: i32) -> (i32, i32) {
    %c0_i32 = arith.constant 0 : i32
    %c0_i32_0 = arith.constant 0 : i32
    %c0_i32_1 = arith.constant 0 : i32
    return %c0_i32, %c0_i32_0 : i32, i32
  }
  func.func @transform_7(%arg0: i32) -> (i32, i32) {
    %c0_i32 = arith.constant 0 : i32
    %c0_i32_0 = arith.constant 0 : i32
    %c0_i32_1 = arith.constant 0 : i32
    return %c0_i32, %c0_i32_0 : i32, i32
  }
  func.func @transform_8(%arg0: i32) -> (i32, i32) {
    %c0_i32 = arith.constant 0 : i32
    %c0_i32_0 = arith.constant 0 : i32
    %c0_i32_1 = arith.constant 0 : i32
    return %c0_i32, %c0_i32_0 : i32, i32
  }
  func.func @transform_9(%arg0: i32) -> (i32, i32) {
    %c0_i32 = arith.constant 0 : i32
    %c0_i32_0 = arith.constant 0 : i32
    %c0_i32_1 = arith.constant 0 : i32
    return %c0_i32, %c0_i32_0 : i32, i32
  }
  func.func @transform_10(%arg0: i32) -> (i32, i32) {
    %c0_i32 = arith.constant 0 : i32
    %c0_i32_0 = arith.constant 0 : i32
    return %arg0, %c0_i32 : i32, i32
  }
}

</mosaic_0001>

<bundles_post_ra>
// kernel: net_forward.1
= control target key start
LH: loop header
LB: loop body
LE: loop exit
PB: predicated region body
PF: predicated region fallthrough
CT: control target
= control target key end

     0   :  { %15 = vsyncpa [#allocation3], 0  ;;  %s5238_s0 = inlined_call_operand.vmem [shape: f32[2,256], index: 0, kind: input, shape index: {}]   ;;  %s5239_s1 = inlined_call_operand.vmem [shape: f32[64,1024], index: 1, kind: input, shape index: {}]   ;;  %s5240_s2 = inlined_call_operand.hbm [shape: f32[64,1024], index: 2, kind: input, shape index: {}]   ;;  %s5241_s3 = inlined_call_operand.hbm [shape: f32[256,512], index: 3, kind: input, shape index: {}]   ;;  %s5242_s4 = inlined_call_operand.hbm [shape: f32[256,512], index: 4, kind: input, shape index: {}]   ;;  %s5243_s5 = inlined_call_operand.vmem [shape: f32[256,128], index: 5, kind: input, shape index: {}]   ;;  %s5244_s6 = inlined_call_operand.hbm [shape: f32[256,512], index: 6, kind: input, shape index: {}]   ;;  %s5245_s7 = inlined_call_operand.hbm [shape: f32[256,512], index: 7, kind: input, shape index: {}]   ;;  %s5246_s8 = inlined_call_operand.hbm [shape: f32[256,128], index: 8, kind: input, shape index: {}]   ;;  %s5247_s9 = inlined_call_operand.vmem [shape: f32[1,128], index: 9, kind: input, shape index: {}]   ;;  %s5248_s10 = inlined_call_operand.hbm [shape: f32[2,128], index: 10, kind: output, shape index: {}]  }
   0x1   :  { %16 = vsyncpa [#allocation6], 0 }
   0x2   :  { %17 = vsyncpa [#allocation9], 0 }
   0x3   :  { %18 = vsyncpa [#allocation12], 0  ;;  %s41_s15 = sshll.u32 %s5241_s3, 4  ;;  %s42_s15 = int_to_ptr.hbm [resolvable:$true] %s41_s15 }
   0x4   :  { %19 = vsyncpa [#allocation4], 0  ;;  %s3740_s16 = smov [#allocation5]   ;;  %s69_s20 = sshll.u32 %s5244_s6, 4  ;;  %s70_s20 = int_to_ptr.hbm [resolvable:$true] %s69_s20 }
   0x5   :  { %s43_s17 = sshll.u32 %s3740_s16, 4  ;;  %s3741_s21 = smov 512   ;;  %s44_s17 = int_to_ptr.vmem [resolvable:$true] %s43_s17 }
   0x6   :  { %s3742_s22 = smov 32   ;;  %s3743_s23 = smov [#allocation8]  }
   0x7   :  { %49 = dma.hbm_to_vmem [thread:$0]  %s42_s15, 16384, %s44_s17, [#allocation6], %s3741_s21, %s3741_s21, %s3742_s22  }
   0x8   :  { %s71_s24 = sshll.u32 %s3743_s23, 4  ;;  %s28_s26 = sshll.u32 %s5240_s2, 4  ;;  %s72_s24 = int_to_ptr.vmem [resolvable:$true] %s71_s24  ;;  %s29_s26 = int_to_ptr.hbm [resolvable:$true] %s28_s26 }
   0x9   :  { %77 = dma.hbm_to_vmem [thread:$0]  %s70_s20, 16384, %s72_s24, [#allocation9], %s3741_s21, %s3741_s21, %s3742_s22  }
   0xa   :  { %s3744_s6 = smov [#allocation2]   ;;  %s54_s30 = sshll.u32 %s5242_s4, 4  ;;  %s55_s30 = int_to_ptr.hbm [resolvable:$true] %s54_s30 }
   0xb   :  { %s30_s27 = sshll.u32 %s3744_s6, 4  ;;  %s3745_s11 = smov 1024   ;;  %s31_s27 = int_to_ptr.vmem [resolvable:$true] %s30_s27 }
   0xc   :  { %s3746_s12 = smov 64   ;;  %s3747_s13 = smov [#allocation7]  }
   0xd   :  { %36 = dma.hbm_to_vmem [thread:$0]  %s29_s26, 8192, %s31_s27, [#allocation3], %s3745_s11, %s3745_s11, %s3746_s12  }
   0xe   :  { %s56_s2 = sshll.u32 %s3747_s13, 4  ;;  %s82_s16 = sshll.u32 %s5245_s7, 4  ;;  %s57_s2 = int_to_ptr.vmem [resolvable:$true] %s56_s2  ;;  %s83_s16 = int_to_ptr.hbm [resolvable:$true] %s82_s16 }
   0xf   :  { %62 = dma.hbm_to_vmem [thread:$0]  %s55_s30, 16384, %s57_s2, [#allocation6], %s3741_s21, %s3741_s21, %s3742_s22  }
  0x10   :  { %s95_s4 = sshll.u32 %s5246_s8, 4  ;;  %s3748_s19 = smov [#allocation10]   ;;  %s96_s4 = int_to_ptr.hbm [resolvable:$true] %s95_s4 }
  0x11   :  { %s84_s20 = sshll.u32 %s3748_s19, 4  ;;  %s3749_s23 = smov [#allocation11]   ;;  %s85_s20 = int_to_ptr.vmem [resolvable:$true] %s84_s20 }
  0x12   :  { %90 = dma.hbm_to_vmem [thread:$0]  %s83_s16, 16384, %s85_s20, [#allocation9], %s3741_s21, %s3741_s21, %s3742_s22  }
  0x13   :  { %s97_s7 = sshll.u32 %s3749_s23, 4  ;;  %s3750_s24 = smov 128   ;;  %s98_s7 = int_to_ptr.vmem [resolvable:$true] %s97_s7 }
  0x14   :  { %s3751_s25 = smov 8  }
  0x15   :  { %103 = dma.hbm_to_vmem [thread:$0]  %s96_s4, 4096, %s98_s7, [#allocation12], %s3750_s24, %s3750_s24, %s3751_s25  }
  0x16   :  { %3730 = dma.done.wait [#allocation3], 8192  }
  0x17   :  { %3731 = vsyncadd [#allocation3], 4294959104 }
  0x18   :  { %3732 = dma.done.wait [#allocation6], 32768  }
  0x19   :  { %3733 = vsyncadd [#allocation6], 4294934528 }
  0x1a   :  { %3734 = dma.done.wait [#allocation9], 32768  }
  0x1b   :  { %3735 = vsyncadd [#allocation9], 4294934528 }
  0x1c   :  { %3736 = dma.done.wait [#allocation12], 4096  }
  0x1d   :  { %3737 = vsyncadd [#allocation12], 4294963200  ;;  %v130_v0 = vld [vmem:[%s5238_s0] sm:$0xf]  ;;  %v5260_v13 = vmov 683565275  }
  0x1e   :  { %v3860_v1 = vmul.f32 0.5, %v130_v0  ;;  %v5258_v15 = vmov 2475754826   ;;  %v5256_v17 = vmov 2131351028   ;;  %s3769_s11 = smov [#allocation13]  }
  0x1f   :  { %v5254_v19 = vmov 2102212464   ;;  %v5252_v21 = vmov 920167782   ;;  %v5251_v27 = vmov 1326507024  }
  0x20   :  { %v135_v2 = vand.u32 2139095040, %v3860_v1  ;;  %v132_v4 = vand.u32 2147483647, %v3860_v1  ;;  %vm134_vm12 = vcmp.lt.s32.totalorder %v3860_v1, 0  ;;  %s3451_s14 = sshll.u32 %s5248_s10, 4  ;;  %s3452_s14 = int_to_ptr.hbm [resolvable:$true] %s3451_s14 }
  0x22   :  { %v136_v3 = vshrl.u32 %v135_v2, 23  ;;  %v139_v7 = vand.u32 8388607, %v132_v4  ;;  %v5249_v2 = vmov 0   ;;  %vm133_vm13 = vcmp.le.f32.partialorder %v132_v4, 0.7853982 }
  0x24   :  { %v3464_v5 = vadd.s32 4294967169, %v136_v3  ;;  %v140_v10 = vor.u32 8388608, %v139_v7 }
  0x26   :  { %v142_v6 = vadd.s32 1, %v3464_v5  ;;  %v3879_v29 = vshll.u32 %v140_v10, 8 }
  0x28   :  { %vm143_vm0 = vcmp.gt.s32.totalorder %v142_v6, 0  ;;  %v181_v41 = vand.u32 65535, %v3879_v29  ;;  %v182_v42 = vshrl.u32 %v3879_v29, 16 }
  0x29   :  { %v144_v8 = vsel %vm143_vm0, %v142_v6, 0 }
  0x2a   :  { %v146_v9 = vand.u32 31, %v144_v8  ;;  %v3866_v11 = vshrl.u32 %v144_v8, 5 }
  0x2c   :  { %v147_v12 = vsub.s32 32, %v146_v9  ;;  %v149_v14 = vshll.u32 %v5260_v13, %v146_v9  ;;  %v152_v16 = vshll.u32 %v5258_v15, %v146_v9  ;;  %v155_v18 = vshll.u32 %v5256_v17, %v146_v9 }
  0x2d   :  { %v158_v20 = vshll.u32 %v5254_v19, %v146_v9  ;;  %v161_v22 = vshll.u32 %v5252_v21, %v146_v9  ;;  %vm164_vm1 = vcmp.lt.s32.totalorder %v3866_v11, 1  ;;  %vm167_vm2 = vcmp.lt.s32.totalorder %v3866_v11, 4 }
  0x2e   :  { %v150_v23 = vshrl.u32 %v5258_v15, %v147_v12  ;;  %v153_v24 = vshrl.u32 %v5256_v17, %v147_v12  ;;  %v156_v25 = vshrl.u32 %v5254_v19, %v147_v12  ;;  %v159_v26 = vshrl.u32 %v5252_v21, %v147_v12  ;;  %v4107_v21 = vld [vmem:[#allocation2 + $0x68] sm:$0xff]  ;;  %v4109_v19 = vld [vmem:[#allocation2 + $0x70] sm:$0xff]  ;;  %v4113_v17 = vld [vmem:[#allocation2 + $0x78] sm:$0xff] }
  0x2f   :  { %v162_v28 = vshrl.u32 %v5251_v27, %v147_v12  ;;  %vm166_vm3 = vcmp.lt.s32.totalorder %v3866_v11, 3  ;;  %vm165_vm4 = vcmp.lt.s32.totalorder %v3866_v11, 2  ;;  %v148_v49 = vshrl.u32 %v5260_v13, %v147_v12  ;;  %v4105_v27 = vld [vmem:[#allocation2 + $0x60] sm:$0xff]  ;;  %5341 = vst [vmem:[#allocation27_spill] sm:$0xff] %v4107_v21  ;;  %v4117_v13 = vld [vmem:[#allocation2 + $0x28] sm:$0xff] }
  0x30   :  { %v151_v30 = vor.u32 %v150_v23, %v149_v14  ;;  %v154_v31 = vor.u32 %v153_v24, %v152_v16  ;;  %v157_v32 = vor.u32 %v156_v25, %v155_v18  ;;  %v160_v33 = vor.u32 %v159_v26, %v158_v20  ;;  %5340 = vst [vmem:[#allocation26_spill] sm:$0xff] %v4105_v27  ;;  %v4115_v15 = vld [vmem:[#allocation2 + $0x20] sm:$0xff] }
  0x31   :  { %v163_v34 = vor.u32 %v162_v28, %v161_v22  ;;  %5342 = vst [vmem:[#allocation28_spill] sm:$0xff] %v4109_v19 }
  0x32   :  { %v172_v35 = vsel %vm164_vm1, %v151_v30, %v154_v31  ;;  %v176_v36 = vsel %vm164_vm1, %v154_v31, %v157_v32  ;;  %v173_v37 = vsel %vm167_vm2, %v160_v33, 920167782  ;;  %v168_v62 = vsel %vm164_vm1, %v148_v49, %v151_v30  ;;  %5343 = vst [vmem:[#allocation29_spill] sm:$0xff] %v4113_v17 }
  0x33   :  { %v177_v38 = vsel %vm167_vm2, %v163_v34, 1326507024  ;;  %v174_v39 = vsel %vm166_vm3, %v157_v32, %v173_v37  ;;  %v169_v0 = vsel %vm167_vm2, %v157_v32, 2102212464  ;;  %5344 = vst [vmem:[#allocation30_spill] sm:$0xff] %v4115_v15 }
  0x34   :  { %v178_v40 = vsel %vm166_vm3, %v160_v33, %v177_v38  ;;  %v175_v43 = vsel %vm165_vm4, %v172_v35, %v174_v39  ;;  %v170_v14 = vsel %vm166_vm3, %v154_v31, %v169_v0  ;;  %5345 = vst [vmem:[#allocation31_spill] sm:$0xff] %v4117_v13 }
  0x35   :  { %v179_v44 = vsel %vm165_vm4, %v176_v36, %v178_v40  ;;  %v205_v47 = vand.u32 65535, %v175_v43  ;;  %v206_v48 = vshrl.u32 %v175_v43, 16  ;;  %v171_v26 = vsel %vm165_vm4, %v168_v62, %v170_v14 }
  0x36   :  { %v183_v45 = vand.u32 65535, %v179_v44  ;;  %v184_v46 = vshrl.u32 %v179_v44, 16  ;;  %v225_v33 = vmul.u32 %v3879_v29, %v171_v26  ;;  %vm275_vm4 = vweird.f32 %v3860_v1 }
  0x37   :  { %v207_v53 = vmul.u32 %v205_v47, %v181_v41  ;;  %v208_v54 = vmul.u32 %v206_v48, %v181_v41  ;;  %v209_v55 = vmul.u32 %v205_v47, %v182_v42  ;;  %v210_v59 = vmul.u32 %v206_v48, %v182_v42 }
  0x38   :  { %v185_v50 = vmul.u32 %v183_v45, %v181_v41  ;;  %v186_v51 = vmul.u32 %v184_v46, %v181_v41  ;;  %v187_v52 = vmul.u32 %v183_v45, %v182_v42  ;;  %v188_v56 = vmul.u32 %v184_v46, %v182_v42 }
  0x39   :  { %v211_v60 = vshll.u32 %v208_v54, 16  ;;  %v213_v61 = vshll.u32 %v209_v55, 16  ;;  %v212_v10 = vshrl.u32 %v208_v54, 16  ;;  %v214_v22 = vshrl.u32 %v209_v55, 16 }
  0x3a   :  { %v189_v57 = vshll.u32 %v186_v51, 16  ;;  %v191_v58 = vshll.u32 %v187_v52, 16  ;;  %v190_v6 = vshrl.u32 %v186_v51, 16  ;;  %v192_v16 = vshrl.u32 %v187_v52, 16 }
  0x3b   :  { %vm215_vm6 = vc.u32 %v207_v53, %v211_v60  ;;  %v217_v5 = vadd.s32 %v211_v60, %v207_v53 }
  0x3c   :  { %vm193_vm5 = vc.u32 %v185_v50, %v189_v57  ;;  %v195_v63 = vadd.s32 %v189_v57, %v185_v50  ;;  %v216_v8 = vsel %vm215_vm6, 1, %v5249_v2 }
  0x3d   :  { %v194_v3 = vsel %vm193_vm5, 1, %v5249_v2  ;;  %v218_v12 = vadd.s32 %v216_v8, %v210_v59  ;;  %vm219_vm8 = vc.u32 %v217_v5, %v213_v61  ;;  %v221_v25 = vadd.s32 %v217_v5, %v213_v61 }
  0x3e   :  { %v196_v7 = vadd.s32 %v194_v3, %v188_v56  ;;  %vm197_vm7 = vc.u32 %v195_v63, %v191_v58  ;;  %v220_v20 = vsel %vm219_vm8, 1, %v5249_v2  ;;  %vm481_vm5 = vcmask 523264  }
  0x3f   :  { %v198_v9 = vsel %vm197_vm7, 1, %v5249_v2  ;;  %v222_v23 = vadd.s32 %v220_v20, %v218_v12  ;;  %v4099_v2 = vld [vmem:[#allocation2 + $0xb8] sm:$0xff] }
  0x40   :  { %v200_v18 = vadd.s32 %v198_v9, %v196_v7  ;;  %5339 = vst [vmem:[#allocation25_spill] sm:$0xff] %v4099_v2 }
  0x41   :  { %v223_v28 = vadd.s32 %v222_v23, %v212_v10 }
  0x42   :  { %v201_v24 = vadd.s32 %v200_v18, %v190_v6 }
  0x43   :  { %v224_v32 = vadd.s32 %v223_v28, %v214_v22 }
  0x44   :  { %v202_v30 = vadd.s32 %v201_v24, %v192_v16 }
  0x45   :  { %v228_v34 = vadd.s32 1, %v224_v32 }
  0x46   :  { %vm227_vm9 = vc.u32 %v202_v30, %v221_v25  ;;  %v226_v11 = vadd.s32 %v221_v25, %v202_v30 }
  0x47   :  { %v229_v35 = vsel %vm227_vm9, %v228_v34, %v224_v32 }
  0x48   :  { %v230_v31 = vadd.s32 %v229_v35, %v225_v33 }
  0x4a   :  { %v231_v36 = vadd.s32 536870912, %v230_v31 }
  0x4c   :  { %v232_v37 = vshrl.u32 %v231_v36, 30 }
  0x4e   :  { %v233_v38 = vshll.u32 %v232_v37, 30  ;;  %v256_v55 = vsub.s32 4, %v232_v37 }
  0x50   :  { %v234_v39 = vsub.s32 %v230_v31, %v233_v38  ;;  %v257_v58 = vsel %vm134_vm12, %v256_v55, %v232_v37 }
  0x51   :  { %v259_v61 = vsel %vm133_vm13, 0, %v257_v58 }
  0x52   :  { %vm235_vm10 = vcmp.lt.s32.totalorder %v234_v39, 0  ;;  %v236_v40 = vsub.s32 0, %v234_v39  ;;  %v430_v5 = vadd.s32 3, %v259_v61  ;;  %v276_v10 = vand.u32 3, %v259_v61 }
  0x54   :  { %v237_v41 = vsel %vm235_vm10, %v236_v40, %v234_v39  ;;  %v431_v12 = vand.u32 3, %v430_v5  ;;  %vm281_vm14 = vcmp.eq.s32.totalorder %v276_v10, 2  ;;  %vm277_vm0 = vcmp.lt.s32.totalorder %v276_v10, 2 }
  0x55   :  { %v238_v42 = vclz %v237_v41  ;;  %vm278_vm1 = vcmp.eq.s32.totalorder %v276_v10, 0  ;;  %v3927_v41 = vld [vmem:[#allocation2 + $0x1c0] sm:$0xff] }
  0x56   :  { %vm436_vm15 = vcmp.eq.s32.totalorder %v431_v12, 2  ;;  %vm433_vm2 = vcmp.eq.s32.totalorder %v431_v12, 0  ;;  %vm432_vm3 = vcmp.lt.s32.totalorder %v431_v12, 2  ;;  %671 = vmatpush.msra.mxu0 %v3927_v41 }
  0x57   :  { %v3465_v43 = vadd.s32 4294967294, %v238_v42  ;;  %v3929_v42 = vld [vmem:[#allocation2 + $0x1c8] sm:$0xff] }
  0x58   :  { %691 = vmatpush.msra.mxu1 %v3929_v42 }
  0x59   :  { %vm3466_vm11 = vcmp.lt.s32.totalorder %v3465_v43, 0 }
  0x5a   :  { %v241_v44 = vsel %vm3466_vm11, 0, %v3465_v43  ;;  %v3931_v43 = vld [vmem:[#allocation2 + $0x1d0] sm:$0xff] }
  0x5b   :  { %v242_v45 = vsub.s32 32, %v241_v44  ;;  %v243_v46 = vshll.u32 %v234_v39, %v241_v44  ;;  %v246_v47 = vsub.s32 4294967266, %v241_v44  ;;  %v3935_v44 = vld [vmem:[#allocation2 + $0x1d8] sm:$0xff]  ;;  %711 = vmatpush.msra.mxu2 %v3931_v43 }
  0x5c   :  { %731 = vmatpush.msra.mxu3 %v3935_v44 }
  0x5d   :  { %v244_v29 = vshrl.u32 %v226_v11, %v242_v45  ;;  %v247_v48 = vadd.s32 127, %v246_v47 }
  0x5f   :  { %v245_v49 = vor.u32 %v244_v29, %v243_v46  ;;  %v248_v50 = vshll.u32 %v247_v48, 23 }
  0x61   :  { %v249_v51 = vor.u32 4788187, %v248_v50  ;;  %v252_v52 = vcvt.s32.f32 %v245_v49 }
  0x63   :  { %v250_v53 = vand.u32 2147483647, %v249_v51 }
  0x65   :  { %v253_v54 = vmul.f32 %v252_v52, %v250_v53 }
  0x67   :  { %v254_v56 = vxor.u32 2147483648, %v253_v54 }
  0x69   :  { %v255_v57 = vsel %vm134_vm12, %v254_v56, %v253_v54 }
  0x6a   :  { %v258_v59 = vsel %vm133_vm13, %v3860_v1, %v255_v57 }
  0x6b   :  { %v260_v60 = vmul.f32 %v258_v59, %v258_v59 }
  0x6d   :  { %v261_v62 = vmul.f32 -0.001358992, %v260_v60  ;;  %v268_v63 = vmul.f32 -0.00019511016, %v260_v60 }
  0x6f   :  { %v262_v0 = vadd.f32 0.041655596, %v261_v62  ;;  %v269_v3 = vadd.f32 0.008332121, %v268_v63 }
  0x71   :  { %v263_v6 = vmul.f32 %v262_v0, %v260_v60  ;;  %v270_v7 = vmul.f32 %v269_v3, %v260_v60 }
  0x73   :  { %v264_v8 = vadd.f32 -0.4999988, %v263_v6  ;;  %v271_v9 = vadd.f32 -0.16666654, %v270_v7 }
  0x75   :  { %v265_v14 = vmul.f32 %v264_v8, %v260_v60  ;;  %v272_v4 = vmul.f32 %v271_v9, %v260_v60 }
  0x77   :  { %v266_v16 = vadd.f32 1.0, %v265_v14  ;;  %v273_v18 = vadd.f32 1.0, %v272_v4 }
  0x79   :  { %v274_v20 = vmul.f32 %v273_v18, %v258_v59  ;;  %v282_v22 = vxor.u32 2147483648, %v266_v16 }
  0x7b   :  { %v279_v23 = vxor.u32 2147483648, %v274_v20  ;;  %v283_v24 = vsel %vm281_vm14, %v282_v22, %v274_v20  ;;  %v438_v25 = vsel %vm436_vm15, %v282_v22, %v274_v20  ;;  %v3951_v20 = vld [vmem:[#allocation2 + $0x180] sm:$0xff]  ;;  %v3953_v22 = vld [vmem:[#allocation2 + $0x188] sm:$0xff] }
  0x7c   :  { %672 = vmatpush.msra.mxu0 %v3951_v20  ;;  %692 = vmatpush.msra.mxu1 %v3953_v22 }
  0x7d   :  { %v280_v26 = vsel %vm278_vm1, %v266_v16, %v279_v23  ;;  %v435_v28 = vsel %vm433_vm2, %v266_v16, %v279_v23  ;;  %v3955_v23 = vld [vmem:[#allocation2 + $0x190] sm:$0xff] }
  0x7e   :  { %v284_v30 = vsel %vm277_vm0, %v280_v26, %v283_v24  ;;  %v439_v32 = vsel %vm432_vm3, %v435_v28, %v438_v25  ;;  %v3959_v24 = vld [vmem:[#allocation2 + $0x198] sm:$0xff]  ;;  %v3961_v25 = vld [vmem:[#allocation2 + $0x140] sm:$0xff]  ;;  %v3963_v26 = vld [vmem:[#allocation2 + $0x148] sm:$0xff]  ;;  %712 = vmatpush.msra.mxu2 %v3955_v23 }
  0x7f   :  { %v285_v33 = vsel %vm275_vm4, nan, %v284_v30  ;;  %v440_v34 = vsel %vm275_vm4, nan, %v439_v32  ;;  %732 = vmatpush.msra.mxu3 %v3959_v24  ;;  %v3967_v28 = vld [vmem:[#allocation2 + $0x150] sm:$0xff]  ;;  %v3969_v30 = vld [vmem:[#allocation2 + $0x158] sm:$0xff]  ;;  %v3971_v32 = vld [vmem:[#allocation2 + $0x100] sm:$0xff]  ;;  %673 = vmatpush.msra.mxu0 %v3961_v25 }
  0x80   :  { %v444_v35 = vmul.f32 0.0, %v285_v33  ;;  %v445_v31 = vmul.f32 0.70710677, %v440_v34  ;;  %v441_v36 = vmul.f32 0.70710677, %v285_v33  ;;  %v442_v37 = vmul.f32 0.0, %v440_v34  ;;  %478 = vrot.lane.b32.xlu2 %v285_v33, %s3746_s12  ;;  %693 = vmatpush.msra.mxu1 %v3963_v26 }
  0x81   :  { %713 = vmatpush.msra.mxu2 %v3967_v28  ;;  %733 = vmatpush.msra.mxu3 %v3969_v30 }
  0x82   :  { %v446_v38 = vsub.f32 %v444_v35, %v445_v31  ;;  %v443_v39 = vadd.f32 %v442_v37, %v441_v36  ;;  %v447_v40 = vsub.f32 %v441_v36, %v442_v37  ;;  %v448_v1 = vadd.f32 %v445_v31, %v444_v35  ;;  %v3979_v35 = vld [vmem:[#allocation2 + $0x118] sm:$0xff]  ;;  %v3983_v31 = vld [vmem:[#allocation2 + $0xc0] sm:$0xff]  ;;  %v3985_v36 = vld [vmem:[#allocation2 + $0xc8] sm:$0xff]  ;;  %674 = vmatpush.msra.mxu0 %v3971_v32 }
  0x83   :  { %v3989_v37 = vld [vmem:[#allocation2 + $0xd0] sm:$0xff]  ;;  %734 = vmatpush.msra.mxu3 %v3979_v35 }
  0x84   :  { %461 = vrot.lane.b32.xlu1 %v446_v38, %s3746_s12  ;;  %450 = vrot.lane.b32.xlu0 %v443_v39, %s3746_s12  ;;  %v3991_v38 = vld [vmem:[#allocation2 + $0xd8] sm:$0xff]  ;;  %v3995_v39 = vld [vmem:[#allocation2 + $0x80] sm:$0xff] }
  0x85   :  { %675 = vmatpush.msra.mxu0 %v3983_v31  ;;  %735 = vmatpush.msra.mxu3 %v3991_v38 }
  0x87   :  { %676 = vmatpush.msra.mxu0 %v3995_v39 }
  0x88   :  { %486 = vrot.lane.b32.xlu2 %v440_v34, %s3746_s12 }
  0x8c   :  { %466 = vrot.lane.b32.xlu1 %v447_v40, %s3746_s12  ;;  %455 = vrot.lane.b32.xlu0 %v448_v1, %s3746_s12  ;;  %v3997_v40 = vld [vmem:[#allocation2 + $0x88] sm:$0xff]  ;;  %v4001_v1 = vld [vmem:[#allocation2 + $0x90] sm:$0xff] }
  0xda   :  { %v479_v11 = vpop.permute.xlu2 %478 }
  0xdb   :  { %v3939_v29 = vrot.slane %v479_v11, 2 }
  0xdd   :  { %v482_v63 = vsel %vm481_vm5, %v479_v11, %v3939_v29  ;;  %v4003_v11 = vld [vmem:[#allocation2 + $0x98] sm:$0xff] }
  0xde   :  { %736 = vmatpush.msra.mxu3 %v4003_v11 }
  0xe2   :  { %v487_v47 = vpop.permute.xlu2 %486 }
  0xe3   :  { %v3941_v48 = vrot.slane %v487_v47, 2 }
  0xe5   :  { %v489_v0 = vsel %vm481_vm5, %v487_v47, %v3941_v48  ;;  %v4013_v47 = vld [vmem:[#allocation2 + $0x50] sm:$0xff] }
  0xf6   :  { %v462_v45 = vpop.permute.xlu1 %461  ;;  %v451_v46 = vpop.permute.xlu0 %450 }
  0xf7   :  { %v464_v49 = vmul.f32 %v462_v45, %v285_v33  ;;  %v472_v50 = vmul.f32 %v462_v45, %v440_v34  ;;  %v453_v51 = vmul.f32 %v451_v46, %v285_v33  ;;  %v475_v52 = vmul.f32 %v451_v46, %v440_v34  ;;  %v4007_v45 = vld [vmem:[#allocation2 + $0x40] sm:$0xff]  ;;  %v4009_v46 = vld [vmem:[#allocation2 + $0x48] sm:$0xff] }
  0xf8   :  { %677 = vmatpush.msra.mxu0 %v4007_v45 }
  0xfe   :  { %v467_v53 = vpop.permute.xlu1 %466  ;;  %v456_v54 = vpop.permute.xlu0 %455 }
  0xff   :  { %v469_v55 = vmul.f32 %v467_v53, %v440_v34  ;;  %v471_v56 = vmul.f32 %v467_v53, %v285_v33  ;;  %v458_v57 = vmul.f32 %v456_v54, %v440_v34  ;;  %v474_v58 = vmul.f32 %v456_v54, %v285_v33  ;;  %v3975_v33 = vld [vmem:[#allocation2 + $0x108] sm:$0xff]  ;;  %v3977_v34 = vld [vmem:[#allocation2 + $0x110] sm:$0xff]  ;;  %v4027_v53 = vld [vmem:[#allocation2 + $0x18] sm:$0xff] }
 0x100   :  { %694 = vmatpush.msra.mxu1 %v3975_v33  ;;  %714 = vmatpush.msra.mxu2 %v3977_v34  ;;  %v4031_v54 = vld [vmem:[#allocation2 + $0x1e0] sm:$0xff] }
 0x101   :  { %v470_v59 = vsub.f32 %v464_v49, %v469_v55  ;;  %v473_v60 = vadd.f32 %v472_v50, %v471_v56  ;;  %v459_v61 = vadd.f32 %v458_v57, %v453_v51  ;;  %v476_v62 = vsub.f32 %v474_v58, %v475_v52  ;;  %v4015_v49 = vld [vmem:[#allocation2 + $0x58] sm:$0xff]  ;;  %v4019_v50 = vld [vmem:[#allocation2] sm:$0xff]  ;;  %v4021_v51 = vld [vmem:[#allocation2 + $0x8] sm:$0xff] }
 0x102   :  { %695 = vmatpush.msra.mxu1 %v3985_v36  ;;  %715 = vmatpush.msra.mxu2 %v3989_v37  ;;  %v4025_v52 = vld [vmem:[#allocation2 + $0x10] sm:$0xff]  ;;  %v4033_v55 = vld [vmem:[#allocation2 + $0x1e8] sm:$0xff]  ;;  %v4039_v57 = vld [vmem:[#allocation2 + $0x1f8] sm:$0xff] }
 0x103   :  { %v496_v3 = vmul.f32 %v482_v63, %v473_v60  ;;  %v497_v5 = vmul.f32 %v489_v0, %v476_v62  ;;  %v493_v6 = vmul.f32 %v482_v63, %v470_v59  ;;  %v494_v7 = vmul.f32 %v489_v0, %v459_v61  ;;  %737 = vmatpush.msra.mxu3 %v4015_v49  ;;  %v4037_v56 = vld [vmem:[#allocation2 + $0x1f0] sm:$0xff]  ;;  %v4043_v58 = vld [vmem:[#allocation2 + $0x1a0] sm:$0xff] }
 0x104   :  { %v484_v8 = vmul.f32 %v482_v63, %v459_v61  ;;  %v491_v9 = vmul.f32 %v489_v0, %v470_v59  ;;  %v499_v4 = vmul.f32 %v482_v63, %v476_v62  ;;  %v500_v16 = vmul.f32 %v489_v0, %v473_v60  ;;  %696 = vmatpush.msra.mxu1 %v3997_v40  ;;  %v4045_v59 = vld [vmem:[#allocation2 + $0x1a8] sm:$0xff]  ;;  %v4049_v60 = vld [vmem:[#allocation2 + $0x1b0] sm:$0xff]  ;;  %v4051_v61 = vld [vmem:[#allocation2 + $0x1b8] sm:$0xff] }
 0x105   :  { %v498_v10 = vsub.f32 %v496_v3, %v497_v5  ;;  %v495_v12 = vsub.f32 %v493_v6, %v494_v7  ;;  %716 = vmatpush.msra.mxu2 %v4001_v1  ;;  %678 = vmatpush.msra.mxu0 %v4019_v50  ;;  %v4055_v62 = vld [vmem:[#allocation2 + $0x160] sm:$0xff]  ;;  %v4057_v63 = vld [vmem:[#allocation2 + $0x168] sm:$0xff]  ;;  %v4061_v0 = vld [vmem:[#allocation2 + $0x170] sm:$0xff] }
 0x106   :  { %v492_v14 = vadd.f32 %v491_v9, %v484_v8  ;;  %v501_v18 = vadd.f32 %v500_v16, %v499_v4  ;;  %697 = vmatpush.msra.mxu1 %v4009_v46  ;;  %738 = vmatpush.msra.mxu3 %v4027_v53  ;;  %v4063_v3 = vld [vmem:[#allocation2 + $0x178] sm:$0xff]  ;;  %v4067_v5 = vld [vmem:[#allocation2 + $0x120] sm:$0xff]  ;;  %v4069_v6 = vld [vmem:[#allocation2 + $0x128] sm:$0xff] }
 0x107   :  { %521 = vrot.lane.b32.xlu1 %v498_v10, %s3746_s12  ;;  %516 = vrot.lane.b32.xlu0 %v495_v12, %s3746_s12  ;;  %v4073_v7 = vld [vmem:[#allocation2 + $0x130] sm:$0xff]  ;;  %v4075_v8 = vld [vmem:[#allocation2 + $0x138] sm:$0xff]  ;;  %v4079_v9 = vld [vmem:[#allocation2 + $0xe0] sm:$0xff] }
 0x108   :  { %504 = vrot.lane.b32.xlu2 %v492_v14, %s3746_s12  ;;  %717 = vmatpush.msra.mxu2 %v4013_v47  ;;  %v4081_v10 = vld [vmem:[#allocation2 + $0xe8] sm:$0xff]  ;;  %v4085_v12 = vld [vmem:[#allocation2 + $0xf0] sm:$0xff]  ;;  %v4087_v14 = vld [vmem:[#allocation2 + $0xf8] sm:$0xff] }
 0x109   :  { %698 = vmatpush.msra.mxu1 %v4021_v51  ;;  %751 = vmatpush.msrb.mxu0 %v4031_v54  ;;  %5333 = vst [vmem:[#allocation19_spill] sm:$0xff] %v4081_v10  ;;  %v4091_v4 = vld [vmem:[#allocation2 + $0xa0] sm:$0xff]  ;;  %v4093_v16 = vld [vmem:[#allocation2 + $0xa8] sm:$0xff] }
 0x10a   :  { %718 = vmatpush.msra.mxu2 %v4025_v52  ;;  %811 = vmatpush.msrb.mxu3 %v4039_v57  ;;  %5334 = vst [vmem:[#allocation20_spill] sm:$0xff] %v4085_v12 }
 0x10b   :  { %771 = vmatpush.msrb.mxu1 %v4033_v55  ;;  %752 = vmatpush.msrb.mxu0 %v4043_v58  ;;  %5335 = vst [vmem:[#allocation21_spill] sm:$0xff] %v4087_v14 }
 0x10c   :  { %791 = vmatpush.msrb.mxu2 %v4037_v56  ;;  %812 = vmatpush.msrb.mxu3 %v4051_v61  ;;  %5336 = vst [vmem:[#allocation22_spill] sm:$0xff] %v4091_v4 }
 0x10d   :  { %772 = vmatpush.msrb.mxu1 %v4045_v59  ;;  %753 = vmatpush.msrb.mxu0 %v4055_v62  ;;  %5337 = vst [vmem:[#allocation23_spill] sm:$0xff] %v4093_v16 }
 0x10e   :  { %792 = vmatpush.msrb.mxu2 %v4049_v60  ;;  %813 = vmatpush.msrb.mxu3 %v4063_v3 }
 0x10f   :  { %510 = vrot.lane.b32.xlu0 %v501_v18, %s3746_s12  ;;  %773 = vmatpush.msrb.mxu1 %v4057_v63  ;;  %v4097_v18 = vld [vmem:[#allocation2 + $0xb0] sm:$0xff]  ;;  %s3449_s12 = sshll.u32 %s3769_s11, 4  ;;  %s3450_s12 = int_to_ptr.vmem [resolvable:$true] %s3449_s12 }
 0x110   :  { %793 = vmatpush.msrb.mxu2 %v4061_v0  ;;  %754 = vmatpush.msrb.mxu0 %v4067_v5  ;;  %5338 = vst [vmem:[#allocation24_spill] sm:$0xff] %v4097_v18 }
 0x111   :  { %774 = vmatpush.msrb.mxu1 %v4069_v6  ;;  %814 = vmatpush.msrb.mxu3 %v4075_v8 }
 0x112   :  { %794 = vmatpush.msrb.mxu2 %v4073_v7  ;;  %755 = vmatpush.msrb.mxu0 %v4079_v9 }
 0x113   :  { %775 = vmatpush.msrb.mxu1 %v4081_v10  ;;  %815 = vmatpush.msrb.mxu3 %v4087_v14 }
 0x114   :  { %795 = vmatpush.msrb.mxu2 %v4085_v12  ;;  %756 = vmatpush.msrb.mxu0 %v4091_v4  ;;  %v4123_v4 = vld [vmem:[#allocation2 + $0x38] sm:$0xff] }
 0x115   :  { %776 = vmatpush.msrb.mxu1 %v4093_v16  ;;  %816 = vmatpush.msrb.mxu3 %v4099_v2  ;;  %v4121_v16 = vld [vmem:[#allocation2 + $0x30] sm:$0xff]  ;;  %5347 = vst [vmem:[#allocation33_spill] sm:$0xff] %v4123_v4 }
 0x116   :  { %796 = vmatpush.msrb.mxu2 %v4097_v18  ;;  %757 = vmatpush.msrb.mxu0 %v4105_v27  ;;  %5346 = vst [vmem:[#allocation32_spill] sm:$0xff] %v4121_v16 }
 0x117   :  { %777 = vmatpush.msrb.mxu1 %v4107_v21  ;;  %817 = vmatpush.msrb.mxu3 %v4113_v17 }
 0x118   :  { %797 = vmatpush.msrb.mxu2 %v4109_v19  ;;  %758 = vmatpush.msrb.mxu0 %v4115_v15  ;;  %v4142_v15 = vld [vmem:[%s5239_s1 + $0x1c0] sm:$0xff] }
 0x119   :  { %778 = vmatpush.msrb.mxu1 %v4117_v13  ;;  %818 = vmatpush.msrb.mxu3 %v4123_v4  ;;  %5350 = vst [vmem:[#allocation36_spill] sm:$0xff] %v4142_v15  ;;  %v4147_v4 = vld [vmem:[%s5239_s1 + $0x1c8] sm:$0xff]  ;;  %v4183_v13 = vld [vmem:[%s5239_s1 + $0x198] sm:$0xff] }
 0x11a   :  { %798 = vmatpush.msrb.mxu2 %v4121_v16  ;;  %5351 = vst [vmem:[#allocation37_spill] sm:$0xff] %v4147_v4  ;;  %v4178_v16 = vld [vmem:[%s5239_s1 + $0x190] sm:$0xff] }
 0x11b   :  { %5356 = vst [vmem:[#allocation42_spill] sm:$0xff] %v4178_v16 }
 0x11c   :  { %5357 = vst [vmem:[#allocation43_spill] sm:$0xff] %v4183_v13 }
 0x162   :  { %v4311_v17 = vpop.permute.xlu2 %504 }
 0x163   :  { %v507_v12 = vmul.f32 %v4311_v17, %v3939_v29 }
 0x179   :  { %v4131_v2 = vpop.permute.xlu1 %521  ;;  %v4133_v27 = vpop.permute.xlu0 %516 }
 0x17a   :  { %5348 = vst [vmem:[#allocation34_spill] sm:$0xff] %v4131_v2  ;;  %v526_v21 = vmul.f32 %v4131_v2, %v3939_v29  ;;  %v527_v19 = vmul.f32 %v4133_v27, %v3941_v48  ;;  %v4154_v2 = vld [vmem:[%s5239_s1 + $0x1d0] sm:$0xff] }
 0x17b   :  { %5349 = vst [vmem:[#allocation35_spill] sm:$0xff] %v4133_v27  ;;  %v4171_v27 = vld [vmem:[%s5239_s1 + $0x188] sm:$0xff] }
 0x17c   :  { %v528_v18 = vadd.f32 %v527_v19, %v526_v21  ;;  %5352 = vst [vmem:[#allocation38_spill] sm:$0xff] %v4154_v2  ;;  %v4159_v19 = vld [vmem:[%s5239_s1 + $0x1d8] sm:$0xff]  ;;  %v4166_v21 = vld [vmem:[%s5239_s1 + $0x180] sm:$0xff] }
 0x17d   :  { %5353 = vst [vmem:[#allocation39_spill] sm:$0xff] %v4159_v19 }
 0x17e   :  { %3470 = vmatmul.msk.f32.vlgmr.msra.gmra.mxu0 %vm481_vm5, %v528_v18  ;;  %3471 = vmatmul.msk.f32.vlgmr.msra.gmra.mxu1 %vm481_vm5, %v528_v18  ;;  %5354 = vst [vmem:[#allocation40_spill] sm:$0xff] %v4166_v21 }
 0x17f   :  { %3472 = vmatmul.msk.f32.vlgmr.msra.gmra.mxu2 %vm481_vm5, %v528_v18  ;;  %3473 = vmatmul.msk.f32.vlgmr.msra.gmra.mxu3 %vm481_vm5, %v528_v18  ;;  %5355 = vst [vmem:[#allocation41_spill] sm:$0xff] %v4171_v27 }
 0x180   :  { %834 = vmatpush.msra.mxu0 %v4142_v15  ;;  %854 = vmatpush.msra.mxu1 %v4147_v4  ;;  %v4190_v15 = vld [vmem:[%s5239_s1 + $0x140] sm:$0xff]  ;;  %v4195_v4 = vld [vmem:[%s5239_s1 + $0x148] sm:$0xff] }
 0x181   :  { %874 = vmatpush.msra.mxu2 %v4154_v2  ;;  %894 = vmatpush.msra.mxu3 %v4159_v19  ;;  %5358 = vst [vmem:[#allocation44_spill] sm:$0xff] %v4190_v15  ;;  %v4202_v2 = vld [vmem:[%s5239_s1 + $0x150] sm:$0xff]  ;;  %v4207_v19 = vld [vmem:[%s5239_s1 + $0x158] sm:$0xff] }
 0x182   :  { %5359 = vst [vmem:[#allocation45_spill] sm:$0xff] %v4195_v4  ;;  %835 = vmatpush.msra.mxu0 %v4166_v21  ;;  %855 = vmatpush.msra.mxu1 %v4171_v27  ;;  %v4214_v21 = vld [vmem:[%s5239_s1 + $0x100] sm:$0xff]  ;;  %v4219_v27 = vld [vmem:[%s5239_s1 + $0x108] sm:$0xff] }
 0x183   :  { %5360 = vst [vmem:[#allocation46_spill] sm:$0xff] %v4202_v2  ;;  %875 = vmatpush.msra.mxu2 %v4178_v16  ;;  %895 = vmatpush.msra.mxu3 %v4183_v13  ;;  %v4226_v16 = vld [vmem:[%s5239_s1 + $0x110] sm:$0xff]  ;;  %v4231_v13 = vld [vmem:[%s5239_s1 + $0x118] sm:$0xff] }
 0x184   :  { %5361 = vst [vmem:[#allocation47_spill] sm:$0xff] %v4207_v19  ;;  %836 = vmatpush.msra.mxu0 %v4190_v15  ;;  %856 = vmatpush.msra.mxu1 %v4195_v4  ;;  %v4242_v4 = vld [vmem:[%s5239_s1 + $0xc0] sm:$0xff]  ;;  %v4247_v15 = vld [vmem:[%s5239_s1 + $0xc8] sm:$0xff] }
 0x185   :  { %5362 = vst [vmem:[#allocation48_spill] sm:$0xff] %v4214_v21  ;;  %876 = vmatpush.msra.mxu2 %v4202_v2  ;;  %896 = vmatpush.msra.mxu3 %v4207_v19  ;;  %v4278_v19 = vld [vmem:[%s5239_s1 + $0x90] sm:$0xff]  ;;  %v4285_v2 = vpop.permute.xlu0 %510 }
 0x186   :  { %5363 = vst [vmem:[#allocation49_spill] sm:$0xff] %v4219_v27  ;;  %837 = vmatpush.msra.mxu0 %v4214_v21  ;;  %857 = vmatpush.msra.mxu1 %v4219_v27  ;;  %v4266_v27 = vld [vmem:[%s5239_s1 + $0x80] sm:$0xff]  ;;  %v4271_v21 = vld [vmem:[%s5239_s1 + $0x88] sm:$0xff]  ;;  %v513_v14 = vmul.f32 %v4285_v2, %v3941_v48 }
 0x187   :  { %5364 = vst [vmem:[#allocation50_spill] sm:$0xff] %v4226_v16  ;;  %877 = vmatpush.msra.mxu2 %v4226_v16  ;;  %897 = vmatpush.msra.mxu3 %v4231_v13  ;;  %v4254_v16 = vld [vmem:[%s5239_s1 + $0xd0] sm:$0xff] }
 0x188   :  { %5365 = vst [vmem:[#allocation51_spill] sm:$0xff] %v4231_v13  ;;  %3474 = vmatmul.msk.f32.vlgmr.msrb.gmra.mxu0 %vm481_vm5, %v528_v18  ;;  %3475 = vmatmul.msk.f32.vlgmr.msrb.gmra.mxu1 %vm481_vm5, %v528_v18  ;;  %v4259_v13 = vld [vmem:[%s5239_s1 + $0xd8] sm:$0xff]  ;;  %v4367_v10 = vadd.f32 %v513_v14, %v507_v12  ;;  %v4390_v12 = vld [vmem:[%s5239_s1 + $0x1b0] sm:$0xff] }
 0x189   :  { %5366 = vst [vmem:[#allocation52_spill] sm:$0xff] %v4242_v4  ;;  %3476 = vmatmul.msk.f32.vlgmr.msrb.gmra.mxu2 %vm481_vm5, %v528_v18  ;;  %3477 = vmatmul.msk.f32.vlgmr.msrb.gmra.mxu3 %vm481_vm5, %v528_v18  ;;  %v4283_v18 = vld [vmem:[%s5239_s1 + $0x98] sm:$0xff] }
 0x18a   :  { %5367 = vst [vmem:[#allocation53_spill] sm:$0xff] %v4247_v15  ;;  %838 = vmatpush.msra.mxu0 %v4242_v4  ;;  %858 = vmatpush.msra.mxu1 %v4247_v15  ;;  %v4292_v15 = vld [vmem:[%s5239_s1 + $0x40] sm:$0xff]  ;;  %v4297_v4 = vld [vmem:[%s5239_s1 + $0x48] sm:$0xff]  ;;  %v4395_v14 = vld [vmem:[%s5239_s1 + $0x1b8] sm:$0xff] }
 0x18b   :  { %5368 = vst [vmem:[#allocation54_spill] sm:$0xff] %v4254_v16  ;;  %878 = vmatpush.msra.mxu2 %v4254_v16  ;;  %898 = vmatpush.msra.mxu3 %v4259_v13  ;;  %v4304_v16 = vld [vmem:[%s5239_s1 + $0x50] sm:$0xff] }
 0x18c   :  { %5369 = vst [vmem:[#allocation55_spill] sm:$0xff] %v4259_v13  ;;  %839 = vmatpush.msra.mxu0 %v4266_v27  ;;  %859 = vmatpush.msra.mxu1 %v4271_v21  ;;  %v4309_v13 = vld [vmem:[%s5239_s1 + $0x58] sm:$0xff] }
 0x18d   :  { %5370 = vst [vmem:[#allocation56_spill] sm:$0xff] %v4266_v27  ;;  %879 = vmatpush.msra.mxu2 %v4278_v19  ;;  %899 = vmatpush.msra.mxu3 %v4283_v18  ;;  %v4323_v27 = vld [vmem:[%s5239_s1 + $0x8] sm:$0xff] }
 0x18e   :  { %5371 = vst [vmem:[#allocation57_spill] sm:$0xff] %v4271_v21  ;;  %v4318_v21 = vld [vmem:[%s5239_s1] sm:$0xff]  ;;  %840 = vmatpush.msra.mxu0 %v4292_v15  ;;  %860 = vmatpush.msra.mxu1 %v4297_v4 }
 0x18f   :  { %5372 = vst [vmem:[#allocation58_spill] sm:$0xff] %v4278_v19  ;;  %v4337_v19 = vld [vmem:[%s5239_s1 + $0x18] sm:$0xff]  ;;  %880 = vmatpush.msra.mxu2 %v4304_v16  ;;  %900 = vmatpush.msra.mxu3 %v4309_v13 }
 0x190   :  { %5373 = vst [vmem:[#allocation59_spill] sm:$0xff] %v4283_v18  ;;  %v4332_v18 = vld [vmem:[%s5239_s1 + $0x10] sm:$0xff]  ;;  %841 = vmatpush.msra.mxu0 %v4318_v21  ;;  %861 = vmatpush.msra.mxu1 %v4323_v27 }
 0x191   :  { %5374 = vst [vmem:[#allocation60_spill] sm:$0xff] %v4292_v15  ;;  %v4344_v15 = vld [vmem:[%s5239_s1 + $0x1e0] sm:$0xff]  ;;  %881 = vmatpush.msra.mxu2 %v4332_v18  ;;  %901 = vmatpush.msra.mxu3 %v4337_v19 }
 0x192   :  { %5375 = vst [vmem:[#allocation61_spill] sm:$0xff] %v4297_v4  ;;  %v4349_v4 = vld [vmem:[%s5239_s1 + $0x1e8] sm:$0xff]  ;;  %914 = vmatpush.msrb.mxu0 %v4344_v15  ;;  %3479 = vmatmul.msk.f32.vlgmr.msra.gmra.mxu1 %vm481_vm5, %v4367_v10 }
 0x193   :  { %5376 = vst [vmem:[#allocation62_spill] sm:$0xff] %v4304_v16  ;;  %v4363_v16 = vld [vmem:[%s5239_s1 + $0x1f8] sm:$0xff]  ;;  %934 = vmatpush.msrb.mxu1 %v4349_v4  ;;  %3478 = vmatmul.msk.f32.vlgmr.msra.gmra.mxu0 %vm481_vm5, %v4367_v10 }
 0x194   :  { %5377 = vst [vmem:[#allocation63_spill] sm:$0xff] %v4309_v13  ;;  %v4358_v13 = vld [vmem:[%s5239_s1 + $0x1f0] sm:$0xff]  ;;  %974 = vmatpush.msrb.mxu3 %v4363_v16  ;;  %3480 = vmatmul.msk.f32.vlgmr.msra.gmra.mxu2 %vm481_vm5, %v4367_v10 }
 0x195   :  { %5378 = vst [vmem:[#allocation64_spill] sm:$0xff] %v4323_v27  ;;  %954 = vmatpush.msrb.mxu2 %v4358_v13  ;;  %v4376_v27 = vld [vmem:[%s5239_s1 + $0x1a0] sm:$0xff]  ;;  %3481 = vmatmul.msk.f32.vlgmr.msra.gmra.mxu3 %vm481_vm5, %v4367_v10 }
 0x196   :  { %5379 = vst [vmem:[#allocation65_spill] sm:$0xff] %v4332_v18  ;;  %v4381_v18 = vld [vmem:[%s5239_s1 + $0x1a8] sm:$0xff]  ;;  %915 = vmatpush.msrb.mxu0 %v4376_v27  ;;  %975 = vmatpush.msrb.mxu3 %v4395_v14 }
 0x197   :  { %5380 = vst [vmem:[#allocation66_spill] sm:$0xff] %v4344_v15  ;;  %935 = vmatpush.msrb.mxu1 %v4381_v18  ;;  %v4421_v15 = vld [vmem:[%s5239_s1 + $0x178] sm:$0xff]  ;;  %955 = vmatpush.msrb.mxu2 %v4390_v12 }
 0x198   :  { %5381 = vst [vmem:[#allocation67_spill] sm:$0xff] %v4349_v4  ;;  %v4416_v4 = vld [vmem:[%s5239_s1 + $0x170] sm:$0xff]  ;;  %976 = vmatpush.msrb.mxu3 %v4421_v15 }
 0x199   :  { %5382 = vst [vmem:[#allocation68_spill] sm:$0xff] %v4358_v13  ;;  %v4409_v13 = vld [vmem:[%s5239_s1 + $0x168] sm:$0xff]  ;;  %956 = vmatpush.msrb.mxu2 %v4416_v4 }
 0x19a   :  { %5383 = vst [vmem:[#allocation69_spill] sm:$0xff] %v4363_v16  ;;  %v4404_v16 = vld [vmem:[%s5239_s1 + $0x160] sm:$0xff]  ;;  %936 = vmatpush.msrb.mxu1 %v4409_v13 }
 0x19b   :  { %5384 = vst [vmem:[#allocation70_spill] sm:$0xff] %v4376_v27  ;;  %v4428_v27 = vld [vmem:[%s5239_s1 + $0x120] sm:$0xff]  ;;  %916 = vmatpush.msrb.mxu0 %v4404_v16 }
 0x19c   :  { %5385 = vst [vmem:[#allocation71_spill] sm:$0xff] %v4381_v18  ;;  %v4433_v18 = vld [vmem:[%s5239_s1 + $0x128] sm:$0xff] }
 0x19d   :  { %5386 = vst [vmem:[#allocation72_spill] sm:$0xff] %v4390_v12  ;;  %v4440_v12 = vld [vmem:[%s5239_s1 + $0x130] sm:$0xff]  ;;  %917 = vmatpush.msrb.mxu0 %v4428_v27  ;;  %937 = vmatpush.msrb.mxu1 %v4433_v18 }
 0x19e   :  { %5387 = vst [vmem:[#allocation73_spill] sm:$0xff] %v4395_v14  ;;  %v4445_v14 = vld [vmem:[%s5239_s1 + $0x138] sm:$0xff]  ;;  %957 = vmatpush.msrb.mxu2 %v4440_v12 }
 0x19f   :  { %5388 = vst [vmem:[#allocation74_spill] sm:$0xff] %v4404_v16  ;;  %v4452_v16 = vld [vmem:[%s5239_s1 + $0xe0] sm:$0xff]  ;;  %977 = vmatpush.msrb.mxu3 %v4445_v14 }
 0x1a0   :  { %5389 = vst [vmem:[#allocation75_spill] sm:$0xff] %v4409_v13  ;;  %v4457_v13 = vld [vmem:[%s5239_s1 + $0xe8] sm:$0xff]  ;;  %918 = vmatpush.msrb.mxu0 %v4452_v16 }
 0x1a1   :  { %5390 = vst [vmem:[#allocation76_spill] sm:$0xff] %v4416_v4  ;;  %v4464_v4 = vld [vmem:[%s5239_s1 + $0xf0] sm:$0xff]  ;;  %938 = vmatpush.msrb.mxu1 %v4457_v13 }
 0x1a2   :  { %5391 = vst [vmem:[#allocation77_spill] sm:$0xff] %v4421_v15  ;;  %v4469_v15 = vld [vmem:[%s5239_s1 + $0xf8] sm:$0xff]  ;;  %958 = vmatpush.msrb.mxu2 %v4464_v4 }
 0x1a3   :  { %5392 = vst [vmem:[#allocation78_spill] sm:$0xff] %v4428_v27  ;;  %v4476_v27 = vld [vmem:[%s5239_s1 + $0xa0] sm:$0xff]  ;;  %978 = vmatpush.msrb.mxu3 %v4469_v15 }
 0x1a4   :  { %5393 = vst [vmem:[#allocation79_spill] sm:$0xff] %v4433_v18  ;;  %v4481_v18 = vld [vmem:[%s5239_s1 + $0xa8] sm:$0xff]  ;;  %919 = vmatpush.msrb.mxu0 %v4476_v27 }
 0x1a5   :  { %5394 = vst [vmem:[#allocation80_spill] sm:$0xff] %v4440_v12  ;;  %v4488_v12 = vld [vmem:[%s5239_s1 + $0xb0] sm:$0xff]  ;;  %939 = vmatpush.msrb.mxu1 %v4481_v18 }
 0x1a6   :  { %5395 = vst [vmem:[#allocation81_spill] sm:$0xff] %v4445_v14  ;;  %v4493_v14 = vld [vmem:[%s5239_s1 + $0xb8] sm:$0xff]  ;;  %959 = vmatpush.msrb.mxu2 %v4488_v12 }
 0x1a7   :  { %5396 = vst [vmem:[#allocation82_spill] sm:$0xff] %v4452_v16  ;;  %v4500_v16 = vld [vmem:[%s5239_s1 + $0x60] sm:$0xff]  ;;  %979 = vmatpush.msrb.mxu3 %v4493_v14 }
 0x1a8   :  { %5397 = vst [vmem:[#allocation83_spill] sm:$0xff] %v4457_v13  ;;  %v4505_v13 = vld [vmem:[%s5239_s1 + $0x68] sm:$0xff]  ;;  %920 = vmatpush.msrb.mxu0 %v4500_v16 }
 0x1a9   :  { %5398 = vst [vmem:[#allocation84_spill] sm:$0xff] %v4464_v4  ;;  %v4512_v4 = vld [vmem:[%s5239_s1 + $0x70] sm:$0xff]  ;;  %940 = vmatpush.msrb.mxu1 %v4505_v13 }
 0x1aa   :  { %5399 = vst [vmem:[#allocation85_spill] sm:$0xff] %v4469_v15  ;;  %v4517_v15 = vld [vmem:[%s5239_s1 + $0x78] sm:$0xff]  ;;  %960 = vmatpush.msrb.mxu2 %v4512_v4 }
 0x1ab   :  { %5400 = vst [vmem:[#allocation86_spill] sm:$0xff] %v4476_v27  ;;  %v4524_v27 = vld [vmem:[%s5239_s1 + $0x20] sm:$0xff]  ;;  %980 = vmatpush.msrb.mxu3 %v4517_v15 }
 0x1ac   :  { %5401 = vst [vmem:[#allocation87_spill] sm:$0xff] %v4481_v18  ;;  %v4529_v18 = vld [vmem:[%s5239_s1 + $0x28] sm:$0xff]  ;;  %921 = vmatpush.msrb.mxu0 %v4524_v27 }
 0x1ad   :  { %5402 = vst [vmem:[#allocation88_spill] sm:$0xff] %v4488_v12  ;;  %v4536_v12 = vld [vmem:[%s5239_s1 + $0x30] sm:$0xff]  ;;  %941 = vmatpush.msrb.mxu1 %v4529_v18  ;;  %3482 = vmatmul.msk.f32.vlgmr.msrb.gmra.mxu0 %vm481_vm5, %v4367_v10 }
 0x1ae   :  { %5403 = vst [vmem:[#allocation89_spill] sm:$0xff] %v4493_v14  ;;  %v4541_v14 = vld [vmem:[%s5239_s1 + $0x38] sm:$0xff]  ;;  %961 = vmatpush.msrb.mxu2 %v4536_v12  ;;  %3483 = vmatmul.msk.f32.vlgmr.msrb.gmra.mxu1 %vm481_vm5, %v4367_v10 }
 0x1af   :  { %981 = vmatpush.msrb.mxu3 %v4541_v14  ;;  %3484 = vmatmul.msk.f32.vlgmr.msrb.gmra.mxu2 %vm481_vm5, %v4367_v10 }
 0x1b0   :  { %3485 = vmatmul.msk.f32.vlgmr.msrb.gmra.mxu3 %vm481_vm5, %v4367_v10  ;;  %997 = vmatpush.msra.mxu0 %v3927_v41  ;;  %v529_v41 = vmul.f32 %v4285_v2, %v3939_v29  ;;  %v5451_v10 = vld [vmem:[#allocation66_spill] sm:$0xff] }
 0x1b1   :  { %1017 = vmatpush.msra.mxu1 %v3929_v42  ;;  %1037 = vmatpush.msra.mxu2 %v3931_v43  ;;  %v530_v42 = vmul.f32 %v4311_v17, %v3941_v48  ;;  %v5404_v17 = vld [vmem:[#allocation19_spill] sm:$0xff]  ;;  %v5405_v43 = vld [vmem:[#allocation20_spill] sm:$0xff] }
 0x1b2   :  { %1057 = vmatpush.msra.mxu3 %v3935_v44  ;;  %998 = vmatpush.msra.mxu0 %v3951_v20  ;;  %v5406_v44 = vld [vmem:[#allocation21_spill] sm:$0xff]  ;;  %v5407_v20 = vld [vmem:[#allocation22_spill] sm:$0xff] }
 0x1b3   :  { %1018 = vmatpush.msra.mxu1 %v3953_v22  ;;  %1038 = vmatpush.msra.mxu2 %v3955_v23  ;;  %v531_v2 = vsub.f32 %v529_v41, %v530_v42  ;;  %v5408_v22 = vld [vmem:[#allocation23_spill] sm:$0xff]  ;;  %v5409_v23 = vld [vmem:[#allocation24_spill] sm:$0xff] }
 0x1b4   :  { %1058 = vmatpush.msra.mxu3 %v3959_v24  ;;  %999 = vmatpush.msra.mxu0 %v3961_v25  ;;  %v5410_v24 = vld [vmem:[#allocation25_spill] sm:$0xff]  ;;  %v5411_v25 = vld [vmem:[#allocation26_spill] sm:$0xff]  ;;  %v5452_v41 = vld [vmem:[#allocation67_spill] sm:$0xff] }
 0x1b5   :  { %1019 = vmatpush.msra.mxu1 %v3963_v26  ;;  %1039 = vmatpush.msra.mxu2 %v3967_v28  ;;  %v5412_v26 = vld [vmem:[#allocation27_spill] sm:$0xff]  ;;  %v5413_v28 = vld [vmem:[#allocation28_spill] sm:$0xff] }
 0x1b6   :  { %1059 = vmatpush.msra.mxu3 %v3969_v30  ;;  %1000 = vmatpush.msra.mxu0 %v3971_v32  ;;  %v5414_v30 = vld [vmem:[#allocation29_spill] sm:$0xff]  ;;  %v5415_v32 = vld [vmem:[#allocation30_spill] sm:$0xff]  ;;  %v5453_v42 = vld [vmem:[#allocation68_spill] sm:$0xff] }
 0x1b7   :  { %1020 = vmatpush.msra.mxu1 %v3975_v33  ;;  %1040 = vmatpush.msra.mxu2 %v3977_v34  ;;  %v5416_v33 = vld [vmem:[#allocation31_spill] sm:$0xff]  ;;  %v5417_v34 = vld [vmem:[#allocation32_spill] sm:$0xff] }
 0x1b8   :  { %1060 = vmatpush.msra.mxu3 %v3979_v35  ;;  %1001 = vmatpush.msra.mxu0 %v3983_v31  ;;  %v5418_v35 = vld [vmem:[#allocation33_spill] sm:$0xff]  ;;  %v5419_v31 = vld [vmem:[#allocation36_spill] sm:$0xff] }
 0x1b9   :  { %1021 = vmatpush.msra.mxu1 %v3985_v36  ;;  %1041 = vmatpush.msra.mxu2 %v3989_v37  ;;  %v5420_v36 = vld [vmem:[#allocation37_spill] sm:$0xff]  ;;  %v5421_v37 = vld [vmem:[#allocation38_spill] sm:$0xff] }
 0x1ba   :  { %1061 = vmatpush.msra.mxu3 %v3991_v38  ;;  %1002 = vmatpush.msra.mxu0 %v3995_v39  ;;  %v5422_v38 = vld [vmem:[#allocation39_spill] sm:$0xff]  ;;  %v5423_v39 = vld [vmem:[#allocation40_spill] sm:$0xff] }
 0x1bb   :  { %1022 = vmatpush.msra.mxu1 %v3997_v40  ;;  %1042 = vmatpush.msra.mxu2 %v4001_v1  ;;  %v5424_v40 = vld [vmem:[#allocation41_spill] sm:$0xff]  ;;  %v5425_v1 = vld [vmem:[#allocation42_spill] sm:$0xff] }
 0x1bc   :  { %1062 = vmatpush.msra.mxu3 %v4003_v11  ;;  %1003 = vmatpush.msra.mxu0 %v4007_v45  ;;  %v5426_v11 = vld [vmem:[#allocation43_spill] sm:$0xff]  ;;  %v5427_v45 = vld [vmem:[#allocation44_spill] sm:$0xff] }
 0x1bd   :  { %1023 = vmatpush.msra.mxu1 %v4009_v46  ;;  %1043 = vmatpush.msra.mxu2 %v4013_v47  ;;  %v5428_v46 = vld [vmem:[#allocation45_spill] sm:$0xff]  ;;  %v5429_v47 = vld [vmem:[#allocation46_spill] sm:$0xff] }
 0x1be   :  { %1063 = vmatpush.msra.mxu3 %v4015_v49  ;;  %1004 = vmatpush.msra.mxu0 %v4019_v50  ;;  %v5430_v49 = vld [vmem:[#allocation47_spill] sm:$0xff]  ;;  %v5431_v50 = vld [vmem:[#allocation48_spill] sm:$0xff] }
 0x1bf   :  { %1024 = vmatpush.msra.mxu1 %v4021_v51  ;;  %1044 = vmatpush.msra.mxu2 %v4025_v52  ;;  %v5432_v51 = vld [vmem:[#allocation49_spill] sm:$0xff]  ;;  %v5433_v52 = vld [vmem:[#allocation50_spill] sm:$0xff] }
 0x1c0   :  { %1064 = vmatpush.msra.mxu3 %v4027_v53  ;;  %3486 = vmatmul.msk.f32.vlgmr.msra.gmra.mxu0 %vm481_vm5, %v531_v2  ;;  %v5434_v53 = vld [vmem:[#allocation51_spill] sm:$0xff] }
 0x1c1   :  { %3487 = vmatmul.msk.f32.vlgmr.msra.gmra.mxu1 %vm481_vm5, %v531_v2  ;;  %3488 = vmatmul.msk.f32.vlgmr.msra.gmra.mxu2 %vm481_vm5, %v531_v2 }
 0x1c2   :  { %3489 = vmatmul.msk.f32.vlgmr.msra.gmra.mxu3 %vm481_vm5, %v531_v2  ;;  %1077 = vmatpush.msrb.mxu0 %v4031_v54  ;;  %v5435_v54 = vld [vmem:[#allocation52_spill] sm:$0xff] }
 0x1c3   :  { %1097 = vmatpush.msrb.mxu1 %v4033_v55  ;;  %1117 = vmatpush.msrb.mxu2 %v4037_v56  ;;  %v5436_v55 = vld [vmem:[#allocation53_spill] sm:$0xff]  ;;  %v5437_v56 = vld [vmem:[#allocation54_spill] sm:$0xff] }
 0x1c4   :  { %1137 = vmatpush.msrb.mxu3 %v4039_v57  ;;  %1078 = vmatpush.msrb.mxu0 %v4043_v58  ;;  %v5438_v57 = vld [vmem:[#allocation55_spill] sm:$0xff]  ;;  %v5439_v58 = vld [vmem:[#allocation34_spill] sm:$0xff] }
 0x1c5   :  { %1098 = vmatpush.msrb.mxu1 %v4045_v59  ;;  %1118 = vmatpush.msrb.mxu2 %v4049_v60  ;;  %v524_v59 = vmul.f32 %v5439_v58, %v3941_v48  ;;  %v5440_v60 = vld [vmem:[#allocation35_spill] sm:$0xff] }
 0x1c6   :  { %1138 = vmatpush.msrb.mxu3 %v4051_v61  ;;  %1079 = vmatpush.msrb.mxu0 %v4055_v62  ;;  %v519_v61 = vmul.f32 %v5440_v60, %v3939_v29  ;;  %v5441_v62 = vld [vmem:[#allocation56_spill] sm:$0xff]  ;;  %v1576_v58 = vld [vmem:[#allocation7 + $0x320] sm:$0xff] }
 0x1c7   :  { %1099 = vmatpush.msrb.mxu1 %v4057_v63  ;;  %1119 = vmatpush.msrb.mxu2 %v4061_v0  ;;  %v5442_v63 = vld [vmem:[#allocation57_spill] sm:$0xff]  ;;  %v5443_v0 = vld [vmem:[#allocation58_spill] sm:$0xff]  ;;  %v5449_v29 = vld [vmem:[#allocation64_spill] sm:$0xff] }
 0x1c8   :  { %1139 = vmatpush.msrb.mxu3 %v4063_v3  ;;  %1080 = vmatpush.msrb.mxu0 %v4067_v5  ;;  %v5444_v3 = vld [vmem:[#allocation59_spill] sm:$0xff]  ;;  %v5445_v5 = vld [vmem:[#allocation60_spill] sm:$0xff]  ;;  %v525_v48 = vsub.f32 %v519_v61, %v524_v59 }
 0x1c9   :  { %1100 = vmatpush.msrb.mxu1 %v4069_v6  ;;  %1120 = vmatpush.msrb.mxu2 %v4073_v7  ;;  %v5446_v6 = vld [vmem:[#allocation61_spill] sm:$0xff]  ;;  %v5447_v7 = vld [vmem:[#allocation62_spill] sm:$0xff]  ;;  %v1513_v59 = vld [vmem:[#allocation7 + $0x128] sm:$0xff] }
 0x1ca   :  { %1140 = vmatpush.msrb.mxu3 %v4075_v8  ;;  %1081 = vmatpush.msrb.mxu0 %v4079_v9  ;;  %v5448_v8 = vld [vmem:[#allocation63_spill] sm:$0xff]  ;;  %v5450_v9 = vld [vmem:[#allocation65_spill] sm:$0xff] }
 0x1cb   :  { %1101 = vmatpush.msrb.mxu1 %v5404_v17  ;;  %1121 = vmatpush.msrb.mxu2 %v5405_v43  ;;  %v5456_v17 = vld [vmem:[#allocation71_spill] sm:$0xff]  ;;  %v5458_v43 = vld [vmem:[#allocation73_spill] sm:$0xff] }
 0x1cc   :  { %1141 = vmatpush.msrb.mxu3 %v5406_v44  ;;  %1082 = vmatpush.msrb.mxu0 %v5407_v20  ;;  %v5459_v44 = vld [vmem:[#allocation74_spill] sm:$0xff]  ;;  %v5460_v20 = vld [vmem:[#allocation75_spill] sm:$0xff] }
 0x1cd   :  { %1102 = vmatpush.msrb.mxu1 %v5408_v22  ;;  %1122 = vmatpush.msrb.mxu2 %v5409_v23  ;;  %v5461_v22 = vld [vmem:[#allocation76_spill] sm:$0xff]  ;;  %v5462_v23 = vld [vmem:[#allocation77_spill] sm:$0xff]  ;;  %v1508_v61 = vld [vmem:[#allocation7 + $0x100] sm:$0xff] }
 0x1ce   :  { %1142 = vmatpush.msrb.mxu3 %v5410_v24  ;;  %1083 = vmatpush.msrb.mxu0 %v5411_v25  ;;  %v5463_v24 = vld [vmem:[#allocation78_spill] sm:$0xff]  ;;  %v5464_v25 = vld [vmem:[#allocation79_spill] sm:$0xff] }
 0x1cf   :  { %1103 = vmatpush.msrb.mxu1 %v5412_v26  ;;  %1123 = vmatpush.msrb.mxu2 %v5413_v28  ;;  %v5465_v26 = vld [vmem:[#allocation80_spill] sm:$0xff]  ;;  %v5466_v28 = vld [vmem:[#allocation81_spill] sm:$0xff] }
 0x1d0   :  { %1143 = vmatpush.msrb.mxu3 %v5414_v30  ;;  %1084 = vmatpush.msrb.mxu0 %v5415_v32  ;;  %v5467_v30 = vld [vmem:[#allocation82_spill] sm:$0xff]  ;;  %v5468_v32 = vld [vmem:[#allocation83_spill] sm:$0xff] }
 0x1d1   :  { %1104 = vmatpush.msrb.mxu1 %v5416_v33  ;;  %1124 = vmatpush.msrb.mxu2 %v5417_v34  ;;  %v5469_v33 = vld [vmem:[#allocation84_spill] sm:$0xff]  ;;  %v5470_v34 = vld [vmem:[#allocation85_spill] sm:$0xff] }
 0x1d2   :  { %1144 = vmatpush.msrb.mxu3 %v5418_v35  ;;  %3490 = vmatmul.msk.f32.vlgmr.msrb.gmra.mxu0 %vm481_vm5, %v531_v2  ;;  %v5471_v35 = vld [vmem:[#allocation86_spill] sm:$0xff]  ;;  %v1577_v60 = vld [vmem:[#allocation7 + $0x328] sm:$0xff] }
 0x1d3   :  { %3491 = vmatmul.msk.f32.vlgmr.msrb.gmra.mxu1 %vm481_vm5, %v531_v2  ;;  %3492 = vmatmul.msk.f32.vlgmr.msrb.gmra.mxu2 %vm481_vm5, %v531_v2 }
 0x1d4   :  { %3493 = vmatmul.msk.f32.vlgmr.msrb.gmra.mxu3 %vm481_vm5, %v531_v2  ;;  %1160 = vmatpush.msra.mxu0 %v5419_v31  ;;  %v5455_v2 = vld [vmem:[#allocation70_spill] sm:$0xff]  ;;  %v5472_v31 = vld [vmem:[#allocation87_spill] sm:$0xff] }
 0x1d5   :  { %1180 = vmatpush.msra.mxu1 %v5420_v36  ;;  %1200 = vmatpush.msra.mxu2 %v5421_v37  ;;  %v5473_v36 = vld [vmem:[#allocation88_spill] sm:$0xff]  ;;  %v5474_v37 = vld [vmem:[#allocation89_spill] sm:$0xff] }
 0x1d6   :  { %1220 = vmatpush.msra.mxu3 %v5422_v38  ;;  %1161 = vmatpush.msra.mxu0 %v5423_v39  ;;  %v1528_v38 = vld [vmem:[#allocation7 + $0x1a0] sm:$0xff] }
 0x1d7   :  { %1181 = vmatpush.msra.mxu1 %v5424_v40  ;;  %1201 = vmatpush.msra.mxu2 %v5425_v1  ;;  %v1592_v39 = vld [vmem:[#allocation7 + $0x3a0] sm:$0xff]  ;;  %v1529_v40 = vld [vmem:[#allocation7 + $0x1a8] sm:$0xff] }
 0x1d8   :  { %1221 = vmatpush.msra.mxu3 %v5426_v11  ;;  %1162 = vmatpush.msra.mxu0 %v5427_v45  ;;  %v1593_v1 = vld [vmem:[#allocation7 + $0x3a8] sm:$0xff]  ;;  %v1524_v11 = vld [vmem:[#allocation7 + $0x180] sm:$0xff] }
 0x1d9   :  { %1182 = vmatpush.msra.mxu1 %v5428_v46  ;;  %1202 = vmatpush.msra.mxu2 %v5429_v47  ;;  %v1588_v45 = vld [vmem:[#allocation7 + $0x380] sm:$0xff]  ;;  %v1525_v46 = vld [vmem:[#allocation7 + $0x188] sm:$0xff] }
 0x1da   :  { %1222 = vmatpush.msra.mxu3 %v5430_v49  ;;  %1163 = vmatpush.msra.mxu0 %v5431_v50  ;;  %v1589_v47 = vld [vmem:[#allocation7 + $0x388] sm:$0xff]  ;;  %v1520_v49 = vld [vmem:[#allocation7 + $0x160] sm:$0xff] }
 0x1db   :  { %1183 = vmatpush.msra.mxu1 %v5432_v51  ;;  %1203 = vmatpush.msra.mxu2 %v5433_v52  ;;  %v1584_v50 = vld [vmem:[#allocation7 + $0x360] sm:$0xff]  ;;  %v1521_v51 = vld [vmem:[#allocation7 + $0x168] sm:$0xff] }
 0x1dc   :  { %1223 = vmatpush.msra.mxu3 %v5434_v53  ;;  %1164 = vmatpush.msra.mxu0 %v5435_v54  ;;  %v1585_v52 = vld [vmem:[#allocation7 + $0x368] sm:$0xff]  ;;  %v1516_v53 = vld [vmem:[#allocation7 + $0x140] sm:$0xff] }
 0x1dd   :  { %1184 = vmatpush.msra.mxu1 %v5436_v55  ;;  %1204 = vmatpush.msra.mxu2 %v5437_v56  ;;  %v1580_v54 = vld [vmem:[#allocation7 + $0x340] sm:$0xff]  ;;  %v1517_v55 = vld [vmem:[#allocation7 + $0x148] sm:$0xff] }
 0x1de   :  { %1224 = vmatpush.msra.mxu3 %v5438_v57  ;;  %1165 = vmatpush.msra.mxu0 %v5441_v62  ;;  %v1581_v56 = vld [vmem:[#allocation7 + $0x348] sm:$0xff]  ;;  %v1512_v57 = vld [vmem:[#allocation7 + $0x120] sm:$0xff] }
 0x1df   :  { %1185 = vmatpush.msra.mxu1 %v5442_v63  ;;  %1205 = vmatpush.msra.mxu2 %v5443_v0  ;;  %v1572_v62 = vld [vmem:[#allocation7 + $0x300] sm:$0xff]  ;;  %v1509_v63 = vld [vmem:[#allocation7 + $0x108] sm:$0xff] }
 0x1e0   :  { %1225 = vmatpush.msra.mxu3 %v5444_v3  ;;  %1166 = vmatpush.msra.mxu0 %v5445_v5  ;;  %v1573_v0 = vld [vmem:[#allocation7 + $0x308] sm:$0xff]  ;;  %v1504_v3 = vld [vmem:[#allocation7 + $0xe0] sm:$0xff] }
 0x1e1   :  { %1186 = vmatpush.msra.mxu1 %v5446_v6  ;;  %1206 = vmatpush.msra.mxu2 %v5447_v7  ;;  %v1568_v5 = vld [vmem:[#allocation7 + $0x2e0] sm:$0xff]  ;;  %v1505_v6 = vld [vmem:[#allocation7 + $0xe8] sm:$0xff] }
 0x1e2   :  { %1226 = vmatpush.msra.mxu3 %v5448_v8  ;;  %1167 = vmatpush.msra.mxu0 %v4318_v21  ;;  %v5454_v21 = vld [vmem:[#allocation69_spill] sm:$0xff]  ;;  %v1569_v7 = vld [vmem:[#allocation7 + $0x2e8] sm:$0xff]  ;;  %v1500_v8 = vld [vmem:[#allocation7 + $0xc0] sm:$0xff] }
 0x1e3   :  { %1187 = vmatpush.msra.mxu1 %v5449_v29  ;;  %1207 = vmatpush.msra.mxu2 %v5450_v9  ;;  %v1501_v29 = vld [vmem:[#allocation7 + $0xc8] sm:$0xff] }
 0x1e4   :  { %1227 = vmatpush.msra.mxu3 %v4337_v19  ;;  %3494 = vmatmul.msk.f32.vlgmr.msra.gmra.mxu0 %vm481_vm5, %v525_v48  ;;  %v5457_v19 = vld [vmem:[#allocation72_spill] sm:$0xff] }
 0x1e5   :  { %3495 = vmatmul.msk.f32.vlgmr.msra.gmra.mxu1 %vm481_vm5, %v525_v48  ;;  %3496 = vmatmul.msk.f32.vlgmr.msra.gmra.mxu2 %vm481_vm5, %v525_v48  ;;  %v1565_v9 = vld [vmem:[#allocation7 + $0x2c8] sm:$0xff] }
 0x1e6   :  { %3497 = vmatmul.msk.f32.vlgmr.msra.gmra.mxu3 %vm481_vm5, %v525_v48  ;;  %1240 = vmatpush.msrb.mxu0 %v5451_v10  ;;  %v1496_v10 = vld [vmem:[#allocation7 + $0xa0] sm:$0xff] }
 0x1e7   :  { %1260 = vmatpush.msrb.mxu1 %v5452_v41  ;;  %1280 = vmatpush.msrb.mxu2 %v5453_v42  ;;  %v1560_v41 = vld [vmem:[#allocation7 + $0x2a0] sm:$0xff]  ;;  %v1497_v42 = vld [vmem:[#allocation7 + $0xa8] sm:$0xff] }
 0x1e8   :  { %1300 = vmatpush.msrb.mxu3 %v5454_v21  ;;  %1241 = vmatpush.msrb.mxu0 %v5455_v2  ;;  %v1561_v21 = vld [vmem:[#allocation7 + $0x2a8] sm:$0xff]  ;;  %v1492_v2 = vld [vmem:[#allocation7 + $0x80] sm:$0xff] }
 0x1e9   :  { %1261 = vmatpush.msrb.mxu1 %v5456_v17  ;;  %1281 = vmatpush.msrb.mxu2 %v5457_v19  ;;  %v1556_v17 = vld [vmem:[#allocation7 + $0x280] sm:$0xff]  ;;  %v1493_v19 = vld [vmem:[#allocation7 + $0x88] sm:$0xff] }
 0x1ea   :  { %1301 = vmatpush.msrb.mxu3 %v5458_v43  ;;  %1242 = vmatpush.msrb.mxu0 %v5459_v44  ;;  %v1557_v43 = vld [vmem:[#allocation7 + $0x288] sm:$0xff]  ;;  %v1488_v44 = vld [vmem:[#allocation7 + $0x60] sm:$0xff] }
 0x1eb   :  { %1262 = vmatpush.msrb.mxu1 %v5460_v20  ;;  %1282 = vmatpush.msrb.mxu2 %v5461_v22  ;;  %v1552_v20 = vld [vmem:[#allocation7 + $0x260] sm:$0xff]  ;;  %v1489_v22 = vld [vmem:[#allocation7 + $0x68] sm:$0xff] }
 0x1ec   :  { %1302 = vmatpush.msrb.mxu3 %v5462_v23  ;;  %1243 = vmatpush.msrb.mxu0 %v5463_v24  ;;  %v1553_v23 = vld [vmem:[#allocation7 + $0x268] sm:$0xff]  ;;  %v1484_v24 = vld [vmem:[#allocation7 + $0x40] sm:$0xff] }
 0x1ed   :  { %1263 = vmatpush.msrb.mxu1 %v5464_v25  ;;  %1283 = vmatpush.msrb.mxu2 %v5465_v26 }
 0x1ee   :  { %1303 = vmatpush.msrb.mxu3 %v5466_v28  ;;  %1244 = vmatpush.msrb.mxu0 %v5467_v30  ;;  %v1548_v28 = vld [vmem:[#allocation7 + $0x240] sm:$0xff]  ;;  %v1485_v30 = vld [vmem:[#allocation7 + $0x48] sm:$0xff] }
 0x1ef   :  { %1264 = vmatpush.msrb.mxu1 %v5468_v32  ;;  %1284 = vmatpush.msrb.mxu2 %v5469_v33  ;;  %v1549_v32 = vld [vmem:[#allocation7 + $0x248] sm:$0xff]  ;;  %v1480_v33 = vld [vmem:[#allocation7 + $0x20] sm:$0xff] }
 0x1f0   :  { %1304 = vmatpush.msrb.mxu3 %v5470_v34  ;;  %1245 = vmatpush.msrb.mxu0 %v5471_v35  ;;  %v1544_v34 = vld [vmem:[#allocation7 + $0x220] sm:$0xff]  ;;  %v1481_v35 = vld [vmem:[#allocation7 + $0x28] sm:$0xff] }
 0x1f1   :  { %1265 = vmatpush.msrb.mxu1 %v5472_v31  ;;  %1285 = vmatpush.msrb.mxu2 %v5473_v36  ;;  %v1545_v31 = vld [vmem:[#allocation7 + $0x228] sm:$0xff] }
 0x1f2   :  { %1305 = vmatpush.msrb.mxu3 %v5474_v37  ;;  %1246 = vmatpush.msrb.mxu0 %v4500_v16  ;;  %v1537_v16 = vld [vmem:[#allocation7 + $0x1e8] sm:$0xff] }
 0x1f3   :  { %1266 = vmatpush.msrb.mxu1 %v4505_v13  ;;  %1286 = vmatpush.msrb.mxu2 %v4512_v4  ;;  %v1536_v13 = vld [vmem:[#allocation7 + $0x1e0] sm:$0xff] }
 0x1f4   :  { %1306 = vmatpush.msrb.mxu3 %v4517_v15  ;;  %1247 = vmatpush.msrb.mxu0 %v4524_v27  ;;  %v1600_v4 = vld [vmem:[#allocation7 + $0x3e0] sm:$0xff]  ;;  %v1601_v15 = vld [vmem:[#allocation7 + $0x3e8] sm:$0xff] }
 0x1f5   :  { %1267 = vmatpush.msrb.mxu1 %v4529_v18  ;;  %1287 = vmatpush.msrb.mxu2 %v4536_v12  ;;  %v1532_v27 = vld [vmem:[#allocation7 + $0x1c0] sm:$0xff]  ;;  %v1533_v12 = vld [vmem:[#allocation7 + $0x1c8] sm:$0xff] }
 0x1f6   :  { %1307 = vmatpush.msrb.mxu3 %v4541_v14  ;;  %3498 = vmatmul.msk.f32.vlgmr.msrb.gmra.mxu0 %vm481_vm5, %v525_v48  ;;  %v1596_v18 = vld [vmem:[#allocation7 + $0x3c0] sm:$0xff]  ;;  %v1597_v14 = vld [vmem:[#allocation7 + $0x3c8] sm:$0xff] }
 0x1f7   :  { %3499 = vmatmul.msk.f32.vlgmr.msrb.gmra.mxu1 %vm481_vm5, %v525_v48  ;;  %3500 = vmatmul.msk.f32.vlgmr.msrb.gmra.mxu2 %vm481_vm5, %v525_v48 }
 0x1f8   :  { %3501 = vmatmul.msk.f32.vlgmr.msrb.gmra.mxu3 %vm481_vm5, %v525_v48  ;;  %1604 = vmatpush.msra.mxu0 %v1536_v13  ;;  %v1564_v48 = vld [vmem:[#allocation7 + $0x2c0] sm:$0xff] }
 0x1f9   :  { %1624 = vmatpush.msra.mxu1 %v1600_v4  ;;  %1644 = vmatpush.msra.mxu2 %v1537_v16  ;;  %v1476_v16 = vld [vmem:[#allocation7] sm:$0xff] }
 0x1fa   :  { %1664 = vmatpush.msra.mxu3 %v1601_v15  ;;  %1605 = vmatpush.msra.mxu0 %v1532_v27  ;;  %v1540_v15 = vld [vmem:[#allocation7 + $0x200] sm:$0xff]  ;;  %v1477_v27 = vld [vmem:[#allocation7 + $0x8] sm:$0xff] }
 0x1fb   :  { %1625 = vmatpush.msra.mxu1 %v1596_v18  ;;  %1645 = vmatpush.msra.mxu2 %v1533_v12  ;;  %v4709_v25 = vpop.f32.mrf.mxu0  ;;  %v4711_v26 = vpop.f32.mrf.mxu1  ;;  %v1541_v18 = vld [vmem:[#allocation7 + $0x208] sm:$0xff]  ;;  %v1538_v12 = vld [vmem:[#allocation7 + $0x1f0] sm:$0xff] }
 0x1fc   :  { %1665 = vmatpush.msra.mxu3 %v1597_v14  ;;  %1606 = vmatpush.msra.mxu0 %v1528_v38  ;;  %v1602_v14 = vld [vmem:[#allocation7 + $0x3f0] sm:$0xff]  ;;  %v1539_v38 = vld [vmem:[#allocation7 + $0x1f8] sm:$0xff] }
 0x1fd   :  { %1626 = vmatpush.msra.mxu1 %v1592_v39  ;;  %1646 = vmatpush.msra.mxu2 %v1529_v40  ;;  %v1603_v39 = vld [vmem:[#allocation7 + $0x3f8] sm:$0xff]  ;;  %v1534_v40 = vld [vmem:[#allocation7 + $0x1d0] sm:$0xff] }
 0x1fe   :  { %1666 = vmatpush.msra.mxu3 %v1593_v1  ;;  %1607 = vmatpush.msra.mxu0 %v1524_v11  ;;  %v1598_v1 = vld [vmem:[#allocation7 + $0x3d0] sm:$0xff]  ;;  %v1535_v11 = vld [vmem:[#allocation7 + $0x1d8] sm:$0xff] }
 0x1ff   :  { %1627 = vmatpush.msra.mxu1 %v1588_v45  ;;  %1647 = vmatpush.msra.mxu2 %v1525_v46  ;;  %v1599_v45 = vld [vmem:[#allocation7 + $0x3d8] sm:$0xff] }
 0x200   :  { %1667 = vmatpush.msra.mxu3 %v1589_v47  ;;  %1608 = vmatpush.msra.mxu0 %v1520_v49  ;;  %v1530_v49 = vld [vmem:[#allocation7 + $0x1b0] sm:$0xff] }
 0x201   :  { %1628 = vmatpush.msra.mxu1 %v1584_v50  ;;  %1648 = vmatpush.msra.mxu2 %v1521_v51  ;;  %v1594_v50 = vld [vmem:[#allocation7 + $0x3b0] sm:$0xff]  ;;  %v1531_v51 = vld [vmem:[#allocation7 + $0x1b8] sm:$0xff] }
 0x202   :  { %1668 = vmatpush.msra.mxu3 %v1585_v52  ;;  %1609 = vmatpush.msra.mxu0 %v1516_v53  ;;  %v4713_v36 = vpop.f32.mrf.mxu2  ;;  %v4715_v37 = vpop.f32.mrf.mxu3  ;;  %v1595_v52 = vld [vmem:[#allocation7 + $0x3b8] sm:$0xff]  ;;  %v1526_v53 = vld [vmem:[#allocation7 + $0x190] sm:$0xff] }
 0x203   :  { %1629 = vmatpush.msra.mxu1 %v1580_v54  ;;  %1649 = vmatpush.msra.mxu2 %v1517_v55  ;;  %v1590_v54 = vld [vmem:[#allocation7 + $0x390] sm:$0xff]  ;;  %v1527_v55 = vld [vmem:[#allocation7 + $0x198] sm:$0xff] }
 0x204   :  { %1669 = vmatpush.msra.mxu3 %v1581_v56  ;;  %1610 = vmatpush.msra.mxu0 %v1512_v57  ;;  %v1591_v56 = vld [vmem:[#allocation7 + $0x398] sm:$0xff] }
 0x205   :  { %1630 = vmatpush.msra.mxu1 %v1576_v58  ;;  %1650 = vmatpush.msra.mxu2 %v1513_v59  ;;  %v4717_v13 = vpop.f32.mrf.mxu0  ;;  %v4719_v4 = vpop.f32.mrf.mxu1  ;;  %v1522_v59 = vld [vmem:[#allocation7 + $0x170] sm:$0xff] }
 0x206   :  { %1670 = vmatpush.msra.mxu3 %v1577_v60  ;;  %1611 = vmatpush.msra.mxu0 %v1508_v61  ;;  %v1586_v60 = vld [vmem:[#allocation7 + $0x370] sm:$0xff]  ;;  %v1523_v61 = vld [vmem:[#allocation7 + $0x178] sm:$0xff] }
 0x207   :  { %1631 = vmatpush.msra.mxu1 %v1572_v62  ;;  %1651 = vmatpush.msra.mxu2 %v1509_v63  ;;  %v1587_v62 = vld [vmem:[#allocation7 + $0x378] sm:$0xff]  ;;  %v1518_v63 = vld [vmem:[#allocation7 + $0x150] sm:$0xff] }
 0x208   :  { %1671 = vmatpush.msra.mxu3 %v1573_v0  ;;  %1612 = vmatpush.msra.mxu0 %v1504_v3  ;;  %v1582_v0 = vld [vmem:[#allocation7 + $0x350] sm:$0xff]  ;;  %v1519_v3 = vld [vmem:[#allocation7 + $0x158] sm:$0xff] }
 0x209   :  { %1632 = vmatpush.msra.mxu1 %v1568_v5  ;;  %1652 = vmatpush.msra.mxu2 %v1505_v6  ;;  %v1583_v5 = vld [vmem:[#allocation7 + $0x358] sm:$0xff]  ;;  %v1514_v6 = vld [vmem:[#allocation7 + $0x130] sm:$0xff] }
 0x20a   :  { %1672 = vmatpush.msra.mxu3 %v1569_v7  ;;  %1613 = vmatpush.msra.mxu0 %v1500_v8  ;;  %v1578_v7 = vld [vmem:[#allocation7 + $0x330] sm:$0xff]  ;;  %v1515_v8 = vld [vmem:[#allocation7 + $0x138] sm:$0xff] }
 0x20b   :  { %1633 = vmatpush.msra.mxu1 %v1564_v48  ;;  %1653 = vmatpush.msra.mxu2 %v1501_v29  ;;  %v1579_v48 = vld [vmem:[#allocation7 + $0x338] sm:$0xff] }
 0x20c   :  { %1673 = vmatpush.msra.mxu3 %v1565_v9  ;;  %1614 = vmatpush.msra.mxu0 %v1496_v10  ;;  %v4721_v46 = vpop.f32.mrf.mxu2  ;;  %v4723_v47 = vpop.f32.mrf.mxu3  ;;  %v1510_v10 = vld [vmem:[#allocation7 + $0x110] sm:$0xff] }
 0x20d   :  { %1634 = vmatpush.msra.mxu1 %v1560_v41  ;;  %1654 = vmatpush.msra.mxu2 %v1497_v42  ;;  %v1574_v41 = vld [vmem:[#allocation7 + $0x310] sm:$0xff]  ;;  %v1511_v42 = vld [vmem:[#allocation7 + $0x118] sm:$0xff] }
 0x20e   :  { %1674 = vmatpush.msra.mxu3 %v1561_v21  ;;  %1615 = vmatpush.msra.mxu0 %v1492_v2  ;;  %v1575_v21 = vld [vmem:[#allocation7 + $0x318] sm:$0xff] }
 0x20f   :  { %1635 = vmatpush.msra.mxu1 %v1556_v17  ;;  %1655 = vmatpush.msra.mxu2 %v1493_v19  ;;  %v4727_v58 = vpop.f32.mrf.mxu1  ;;  %v1506_v19 = vld [vmem:[#allocation7 + $0xf0] sm:$0xff] }
 0x210   :  { %1675 = vmatpush.msra.mxu3 %v1557_v43  ;;  %1616 = vmatpush.msra.mxu0 %v1488_v44  ;;  %v4725_v57 = vpop.f32.mrf.mxu0  ;;  %v1570_v43 = vld [vmem:[#allocation7 + $0x2f0] sm:$0xff]  ;;  %v1507_v44 = vld [vmem:[#allocation7 + $0xf8] sm:$0xff] }
 0x211   :  { %1636 = vmatpush.msra.mxu1 %v1552_v20  ;;  %1656 = vmatpush.msra.mxu2 %v1489_v22  ;;  %v1571_v20 = vld [vmem:[#allocation7 + $0x2f8] sm:$0xff]  ;;  %v1502_v22 = vld [vmem:[#allocation7 + $0xd0] sm:$0xff] }
 0x212   :  { %1676 = vmatpush.msra.mxu3 %v1553_v23  ;;  %1617 = vmatpush.msra.mxu0 %v1484_v24  ;;  %v1566_v23 = vld [vmem:[#allocation7 + $0x2d0] sm:$0xff]  ;;  %v1503_v24 = vld [vmem:[#allocation7 + $0xd8] sm:$0xff] }
 0x213   :  { %1637 = vmatpush.msra.mxu1 %v1548_v28  ;;  %1657 = vmatpush.msra.mxu2 %v1485_v30  ;;  %v1567_v28 = vld [vmem:[#allocation7 + $0x2d8] sm:$0xff] }
 0x214   :  { %1677 = vmatpush.msra.mxu3 %v1549_v32  ;;  %1618 = vmatpush.msra.mxu0 %v1480_v33  ;;  %v1498_v33 = vld [vmem:[#allocation7 + $0xb0] sm:$0xff] }
 0x215   :  { %1638 = vmatpush.msra.mxu1 %v1544_v34  ;;  %1658 = vmatpush.msra.mxu2 %v1481_v35  ;;  %v1562_v34 = vld [vmem:[#allocation7 + $0x2b0] sm:$0xff]  ;;  %v1499_v35 = vld [vmem:[#allocation7 + $0xb8] sm:$0xff] }
 0x216   :  { %1678 = vmatpush.msra.mxu3 %v1545_v31  ;;  %1619 = vmatpush.msra.mxu0 %v1476_v16  ;;  %v1563_v31 = vld [vmem:[#allocation7 + $0x2b8] sm:$0xff]  ;;  %v1494_v16 = vld [vmem:[#allocation7 + $0x90] sm:$0xff] }
 0x217   :  { %1639 = vmatpush.msra.mxu1 %v1540_v15  ;;  %1659 = vmatpush.msra.mxu2 %v1477_v27  ;;  %v4729_v29 = vpop.f32.mrf.mxu2  ;;  %v1558_v15 = vld [vmem:[#allocation7 + $0x290] sm:$0xff]  ;;  %v1495_v27 = vld [vmem:[#allocation7 + $0x98] sm:$0xff] }
 0x218   :  { %1679 = vmatpush.msra.mxu3 %v1541_v18  ;;  %1684 = vmatpush.msrb.mxu0 %v1538_v12  ;;  %v4731_v9 = vpop.f32.mrf.mxu3 }
 0x219   :  { %1704 = vmatpush.msrb.mxu1 %v1602_v14  ;;  %1724 = vmatpush.msrb.mxu2 %v1539_v38  ;;  %v1559_v14 = vld [vmem:[#allocation7 + $0x298] sm:$0xff]  ;;  %v1490_v38 = vld [vmem:[#allocation7 + $0x70] sm:$0xff] }
 0x21a   :  { %1744 = vmatpush.msrb.mxu3 %v1603_v39  ;;  %1685 = vmatpush.msrb.mxu0 %v1534_v40  ;;  %v1554_v39 = vld [vmem:[#allocation7 + $0x270] sm:$0xff]  ;;  %v1491_v40 = vld [vmem:[#allocation7 + $0x78] sm:$0xff] }
 0x21b   :  { %1705 = vmatpush.msrb.mxu1 %v1598_v1  ;;  %1725 = vmatpush.msrb.mxu2 %v1535_v11  ;;  %v1555_v1 = vld [vmem:[#allocation7 + $0x278] sm:$0xff]  ;;  %v1486_v11 = vld [vmem:[#allocation7 + $0x50] sm:$0xff] }
 0x21c   :  { %1745 = vmatpush.msrb.mxu3 %v1599_v45  ;;  %1686 = vmatpush.msrb.mxu0 %v1530_v49  ;;  %v1550_v45 = vld [vmem:[#allocation7 + $0x250] sm:$0xff]  ;;  %v1487_v49 = vld [vmem:[#allocation7 + $0x58] sm:$0xff] }
 0x21d   :  { %1706 = vmatpush.msrb.mxu1 %v1594_v50  ;;  %1726 = vmatpush.msrb.mxu2 %v1531_v51  ;;  %v1551_v50 = vld [vmem:[#allocation7 + $0x258] sm:$0xff] }
 0x21e   :  { %1746 = vmatpush.msrb.mxu3 %v1595_v52  ;;  %1687 = vmatpush.msrb.mxu0 %v1526_v53  ;;  %v1482_v53 = vld [vmem:[#allocation7 + $0x30] sm:$0xff] }
 0x21f   :  { %1707 = vmatpush.msrb.mxu1 %v1590_v54  ;;  %1727 = vmatpush.msrb.mxu2 %v1527_v55  ;;  %v1546_v54 = vld [vmem:[#allocation7 + $0x230] sm:$0xff]  ;;  %v1483_v55 = vld [vmem:[#allocation7 + $0x38] sm:$0xff] }
 0x220   :  { %1747 = vmatpush.msrb.mxu3 %v1591_v56  ;;  %1688 = vmatpush.msrb.mxu0 %v1522_v59  ;;  %v1547_v56 = vld [vmem:[#allocation7 + $0x238] sm:$0xff]  ;;  %v1478_v59 = vld [vmem:[#allocation7 + $0x10] sm:$0xff] }
 0x221   :  { %1708 = vmatpush.msrb.mxu1 %v1586_v60  ;;  %1728 = vmatpush.msrb.mxu2 %v1523_v61  ;;  %v1542_v60 = vld [vmem:[#allocation7 + $0x210] sm:$0xff]  ;;  %v1479_v61 = vld [vmem:[#allocation7 + $0x18] sm:$0xff] }
 0x222   :  { %1748 = vmatpush.msrb.mxu3 %v1587_v62  ;;  %1689 = vmatpush.msrb.mxu0 %v1518_v63  ;;  %v1543_v62 = vld [vmem:[#allocation7 + $0x218] sm:$0xff] }
 0x223   :  { %1709 = vmatpush.msrb.mxu1 %v1582_v0  ;;  %1729 = vmatpush.msrb.mxu2 %v1519_v3 }
 0x224   :  { %1749 = vmatpush.msrb.mxu3 %v1583_v5  ;;  %1690 = vmatpush.msrb.mxu0 %v1514_v6 }
 0x225   :  { %1710 = vmatpush.msrb.mxu1 %v1578_v7  ;;  %1730 = vmatpush.msrb.mxu2 %v1515_v8 }
 0x226   :  { %1750 = vmatpush.msrb.mxu3 %v1579_v48  ;;  %1691 = vmatpush.msrb.mxu0 %v1510_v10  ;;  %v884_v10 = vadd.f32 %v4729_v29, %v4713_v36  ;;  %v864_v36 = vadd.f32 %v4727_v58, %v4711_v26 }
 0x227   :  { %1711 = vmatpush.msrb.mxu1 %v1574_v41  ;;  %1731 = vmatpush.msrb.mxu2 %v1511_v42 }
 0x228   :  { %1751 = vmatpush.msrb.mxu3 %v1575_v21  ;;  %1692 = vmatpush.msrb.mxu0 %v1506_v19 }
 0x229   :  { %1712 = vmatpush.msrb.mxu1 %v1570_v43  ;;  %1732 = vmatpush.msrb.mxu2 %v1507_v44  ;;  %v844_v43 = vadd.f32 %v4725_v57, %v4709_v25 }
 0x22a   :  { %v4733_v2 = vpop.f32.mrf.mxu0  ;;  %1752 = vmatpush.msrb.mxu3 %v1571_v20  ;;  %1693 = vmatpush.msrb.mxu0 %v1502_v22 }
 0x22b   :  { %v4735_v17 = vpop.f32.mrf.mxu1  ;;  %1713 = vmatpush.msrb.mxu1 %v1566_v23  ;;  %1733 = vmatpush.msrb.mxu2 %v1503_v24  ;;  %v924_v22 = vadd.f32 %v4733_v2, %v4717_v13  ;;  %v1312_v29 = vmul.f32 %v884_v10, %v844_v43 }
 0x22c   :  { %1753 = vmatpush.msrb.mxu3 %v1567_v28  ;;  %1694 = vmatpush.msrb.mxu0 %v1498_v33  ;;  %v944_v25 = vadd.f32 %v4735_v17, %v4719_v4 }
 0x22d   :  { %1714 = vmatpush.msrb.mxu1 %v1562_v34  ;;  %1734 = vmatpush.msrb.mxu2 %v1499_v35 }
 0x22e   :  { %1754 = vmatpush.msrb.mxu3 %v1563_v31  ;;  %1695 = vmatpush.msrb.mxu0 %v1494_v16 }
 0x22f   :  { %1715 = vmatpush.msrb.mxu1 %v1558_v15  ;;  %1735 = vmatpush.msrb.mxu2 %v1495_v27 }
 0x230   :  { %1755 = vmatpush.msrb.mxu3 %v1559_v14  ;;  %1696 = vmatpush.msrb.mxu0 %v1490_v38 }
 0x231   :  { %1716 = vmatpush.msrb.mxu1 %v1554_v39  ;;  %1736 = vmatpush.msrb.mxu2 %v1491_v40 }
 0x232   :  { %v4737_v30 = vpop.f32.mrf.mxu2  ;;  %1756 = vmatpush.msrb.mxu3 %v1555_v1  ;;  %1697 = vmatpush.msrb.mxu0 %v1486_v11 }
 0x233   :  { %v4739_v32 = vpop.f32.mrf.mxu3  ;;  %1717 = vmatpush.msrb.mxu1 %v1550_v45  ;;  %1737 = vmatpush.msrb.mxu2 %v1487_v49  ;;  %v964_v21 = vadd.f32 %v4737_v30, %v4721_v46  ;;  %v904_v46 = vadd.f32 %v4731_v9, %v4715_v37 }
 0x234   :  { %1757 = vmatpush.msrb.mxu3 %v1551_v50  ;;  %1698 = vmatpush.msrb.mxu0 %v1482_v53  ;;  %v984_v44 = vadd.f32 %v4739_v32, %v4723_v47 }
 0x235   :  { %1718 = vmatpush.msrb.mxu1 %v1546_v54  ;;  %1738 = vmatpush.msrb.mxu2 %v1483_v55  ;;  %v1324_v57 = vmul.f32 %v964_v21, %v924_v22  ;;  %v1313_v4 = vmul.f32 %v904_v46, %v864_v36  ;;  %v1408_v55 = vld [vmem:[#allocation5 + $0x1e0] sm:$0xff] }
 0x236   :  { %1758 = vmatpush.msrb.mxu3 %v1547_v56  ;;  %1699 = vmatpush.msrb.mxu0 %v1478_v59  ;;  %v1325_v2 = vmul.f32 %v984_v44, %v944_v25  ;;  %v1472_v56 = vld [vmem:[#allocation5 + $0x3e0] sm:$0xff]  ;;  %v1409_v59 = vld [vmem:[#allocation5 + $0x1e8] sm:$0xff] }
 0x237   :  { %1719 = vmatpush.msrb.mxu1 %v1542_v60  ;;  %1739 = vmatpush.msrb.mxu2 %v1479_v61  ;;  %v1473_v60 = vld [vmem:[#allocation5 + $0x3e8] sm:$0xff]  ;;  %v1404_v61 = vld [vmem:[#allocation5 + $0x1c0] sm:$0xff] }
 0x238   :  { %1759 = vmatpush.msrb.mxu3 %v1543_v62  ;;  %v1468_v62 = vld [vmem:[#allocation5 + $0x3c0] sm:$0xff] }
 0x23d   :  { %v1006_v18 = vpop.f32.mrf.mxu0 }
 0x23e   :  { %v4741_v12 = vpop.f32.mrf.mxu1 }
 0x244   :  { %v1046_v51 = vpop.f32.mrf.mxu2 }
 0x245   :  { %v1066_v52 = vpop.f32.mrf.mxu3 }
 0x24f   :  { %v1086_v63 = vpop.f32.mrf.mxu0 }
 0x250   :  { %v1106_v0 = vpop.f32.mrf.mxu1 }
 0x256   :  { %v1126_v3 = vpop.f32.mrf.mxu2 }
 0x257   :  { %v1146_v5 = vpop.f32.mrf.mxu3 }
 0x261   :  { %v1169_v6 = vpop.f32.mrf.mxu0 }
 0x262   :  { %v1189_v7 = vpop.f32.mrf.mxu1  ;;  %v1170_v20 = vadd.f32 %v1169_v6, %v1006_v18  ;;  %v1401_v6 = vld [vmem:[#allocation5 + $0x1a8] sm:$0xff] }
 0x263   :  { %v1190_v47 = vadd.f32 %v1189_v7, %v4741_v12  ;;  %v1465_v7 = vld [vmem:[#allocation5 + $0x3a8] sm:$0xff] }
 0x264   :  { %v1320_v34 = vmul.f32 %v1170_v20, %v884_v10  ;;  %v1397_v10 = vld [vmem:[#allocation5 + $0x188] sm:$0xff] }
 0x265   :  { %v1321_v17 = vmul.f32 %v1190_v47, %v904_v46  ;;  %v1380_v46 = vld [vmem:[#allocation5 + $0x100] sm:$0xff] }
 0x268   :  { %v1209_v8 = vpop.f32.mrf.mxu2 }
 0x269   :  { %v1229_v48 = vpop.f32.mrf.mxu3  ;;  %v1210_v19 = vadd.f32 %v1209_v8, %v1046_v51  ;;  %v1396_v8 = vld [vmem:[#allocation5 + $0x180] sm:$0xff] }
 0x26a   :  { %v1230_v23 = vadd.f32 %v1229_v48, %v1066_v52  ;;  %v1460_v48 = vld [vmem:[#allocation5 + $0x380] sm:$0xff] }
 0x26b   :  { %v1314_v30 = vmul.f32 %v1210_v19, %v1170_v20  ;;  %v1318_v32 = vmul.f32 %v1210_v19, %v844_v43  ;;  %v1393_v19 = vld [vmem:[#allocation5 + $0x168] sm:$0xff]  ;;  %v1452_v20 = vld [vmem:[#allocation5 + $0x340] sm:$0xff] }
 0x26c   :  { %v1315_v16 = vmul.f32 %v1230_v23, %v1190_v47  ;;  %v1319_v26 = vmul.f32 %v1230_v23, %v864_v36  ;;  %v1457_v43 = vld [vmem:[#allocation5 + $0x368] sm:$0xff] }
 0x26d   :  { %v4760_v14 = vsub.f32 %v1312_v29, %v1314_v30  ;;  %v4762_v12 = vadd.f32 %v1320_v34, %v1318_v32  ;;  %v1453_v23 = vld [vmem:[#allocation5 + $0x348] sm:$0xff]  ;;  %v1376_v30 = vld [vmem:[#allocation5 + $0xe0] sm:$0xff] }
 0x26e   :  { %v4772_v11 = vsub.f32 %v1313_v4, %v1315_v16  ;;  %v4774_v45 = vadd.f32 %v1321_v17, %v1319_v26  ;;  %v1385_v36 = vld [vmem:[#allocation5 + $0x128] sm:$0xff]  ;;  %v1440_v32 = vld [vmem:[#allocation5 + $0x2e0] sm:$0xff] }
 0x26f   :  { %v1449_v29 = vld [vmem:[#allocation5 + $0x328] sm:$0xff]  ;;  %v1436_v34 = vld [vmem:[#allocation5 + $0x2c0] sm:$0xff] }
 0x270   :  { %v1445_v47 = vld [vmem:[#allocation5 + $0x308] sm:$0xff]  ;;  %v1368_v16 = vld [vmem:[#allocation5 + $0xa0] sm:$0xff] }
 0x271   :  { %v1432_v26 = vld [vmem:[#allocation5 + $0x2a0] sm:$0xff] }
 0x272   :  { %v1360_v4 = vld [vmem:[#allocation5 + $0x60] sm:$0xff] }
 0x273   :  { %v1249_v41 = vpop.f32.mrf.mxu0  ;;  %v1424_v17 = vld [vmem:[#allocation5 + $0x260] sm:$0xff] }
 0x274   :  { %v1269_v42 = vpop.f32.mrf.mxu1  ;;  %v1250_v24 = vadd.f32 %v1249_v41, %v1086_v63  ;;  %v1405_v63 = vld [vmem:[#allocation5 + $0x1c8] sm:$0xff] }
 0x275   :  { %v1270_v28 = vadd.f32 %v1269_v42, %v1106_v0  ;;  %v1469_v0 = vld [vmem:[#allocation5 + $0x3c8] sm:$0xff]  ;;  %v1392_v42 = vld [vmem:[#allocation5 + $0x160] sm:$0xff] }
 0x276   :  { %v1332_v58 = vmul.f32 %v1250_v24, %v964_v21  ;;  %v1461_v41 = vld [vmem:[#allocation5 + $0x388] sm:$0xff]  ;;  %v1456_v21 = vld [vmem:[#allocation5 + $0x360] sm:$0xff] }
 0x277   :  { %v1333_v15 = vmul.f32 %v1270_v28, %v984_v44  ;;  %v1388_v44 = vld [vmem:[#allocation5 + $0x140] sm:$0xff] }
 0x27a   :  { %v1289_v33 = vpop.f32.mrf.mxu2 }
 0x27b   :  { %v1309_v13 = vpop.f32.mrf.mxu3  ;;  %v1290_v35 = vadd.f32 %v1289_v33, %v1126_v3  ;;  %v1400_v3 = vld [vmem:[#allocation5 + $0x1a0] sm:$0xff]  ;;  %v1377_v33 = vld [vmem:[#allocation5 + $0xe8] sm:$0xff] }
 0x27c   :  { %v1310_v31 = vadd.f32 %v1309_v13, %v1146_v5  ;;  %v1464_v5 = vld [vmem:[#allocation5 + $0x3a0] sm:$0xff]  ;;  %v1441_v13 = vld [vmem:[#allocation5 + $0x2e8] sm:$0xff] }
 0x27d   :  { %v1326_v27 = vmul.f32 %v1290_v35, %v1250_v24  ;;  %v1330_v37 = vmul.f32 %v1290_v35, %v924_v22  ;;  %v1389_v22 = vld [vmem:[#allocation5 + $0x148] sm:$0xff]  ;;  %v1384_v24 = vld [vmem:[#allocation5 + $0x120] sm:$0xff] }
 0x27e   :  { %v1327_v9 = vmul.f32 %v1310_v31, %v1270_v28  ;;  %v1331_v18 = vmul.f32 %v1310_v31, %v944_v25  ;;  %v1448_v28 = vld [vmem:[#allocation5 + $0x320] sm:$0xff]  ;;  %v1373_v35 = vld [vmem:[#allocation5 + $0xc8] sm:$0xff] }
 0x27f   :  { %v4764_v38 = vsub.f32 %v1324_v57, %v1326_v27  ;;  %v4766_v39 = vadd.f32 %v1332_v58, %v1330_v37  ;;  %v1444_v25 = vld [vmem:[#allocation5 + $0x300] sm:$0xff]  ;;  %v1381_v57 = vld [vmem:[#allocation5 + $0x108] sm:$0xff] }
 0x280   :  { %v4768_v40 = vsub.f32 %v1325_v2, %v1327_v9  ;;  %v4770_v1 = vadd.f32 %v1333_v15, %v1331_v18  ;;  %v1372_v2 = vld [vmem:[#allocation5 + $0xc0] sm:$0xff]  ;;  %v1437_v31 = vld [vmem:[#allocation5 + $0x2c8] sm:$0xff] }
 0x281   :  { %v1342_v49 = vmul.f32 %v4766_v39, %v4760_v14  ;;  %v1344_v50 = vmul.f32 %v4764_v38, %v4762_v12  ;;  %v1369_v58 = vld [vmem:[#allocation5 + $0xa8] sm:$0xff]  ;;  %v1364_v27 = vld [vmem:[#allocation5 + $0x80] sm:$0xff] }
 0x282   :  { %v1343_v51 = vmul.f32 %v4770_v1, %v4772_v11  ;;  %v1345_v52 = vmul.f32 %v4768_v40, %v4774_v45  ;;  %v1433_v15 = vld [vmem:[#allocation5 + $0x2a8] sm:$0xff]  ;;  %v1428_v37 = vld [vmem:[#allocation5 + $0x280] sm:$0xff] }
 0x283   :  { %v1346_v53 = vadd.f32 %v1344_v50, %v1342_v49  ;;  %v1365_v9 = vld [vmem:[#allocation5 + $0x88] sm:$0xff] }
 0x284   :  { %v1347_v54 = vadd.f32 %v1345_v52, %v1343_v51  ;;  %v1429_v18 = vld [vmem:[#allocation5 + $0x288] sm:$0xff]  ;;  %v1356_v51 = vld [vmem:[#allocation5 + $0x40] sm:$0xff] }
 0x285   :  { %1620 = vmatmul.f32.vlgmr.msra.gmra.mxu0 %v1346_v53  ;;  %1660 = vmatmul.f32.vlgmr.msra.gmra.mxu2 %v1346_v53  ;;  %v1361_v49 = vld [vmem:[#allocation5 + $0x68] sm:$0xff]  ;;  %v1420_v52 = vld [vmem:[#allocation5 + $0x240] sm:$0xff] }
 0x286   :  { %1640 = vmatmul.f32.vlgmr.msra.gmra.mxu1 %v1347_v54  ;;  %1680 = vmatmul.f32.vlgmr.msra.gmra.mxu3 %v1347_v54  ;;  %v1425_v50 = vld [vmem:[#allocation5 + $0x268] sm:$0xff] }
 0x287   :  { %1764 = vmatpush.msra.mxu0 %v1408_v55  ;;  %1784 = vmatpush.msra.mxu1 %v1472_v56  ;;  %v1336_v55 = vmul.f32 %v4764_v38, %v4760_v14  ;;  %v1352_v56 = vld [vmem:[#allocation5 + $0x20] sm:$0xff] }
 0x288   :  { %1804 = vmatpush.msra.mxu2 %v1409_v59  ;;  %1824 = vmatpush.msra.mxu3 %v1473_v60  ;;  %v1416_v59 = vld [vmem:[#allocation5 + $0x220] sm:$0xff]  ;;  %v1338_v60 = vmul.f32 %v4766_v39, %v4762_v12 }
 0x289   :  { %1765 = vmatpush.msra.mxu0 %v1404_v61  ;;  %1785 = vmatpush.msra.mxu1 %v1468_v62  ;;  %v1337_v61 = vmul.f32 %v4768_v40, %v4772_v11  ;;  %v1339_v62 = vmul.f32 %v4770_v1, %v4774_v45  ;;  %v1348_v14 = vld [vmem:[#allocation5] sm:$0xff]  ;;  %v1410_v40 = vld [vmem:[#allocation5 + $0x1f0] sm:$0xff]  ;;  %v1411_v11 = vld [vmem:[#allocation5 + $0x1f8] sm:$0xff] }
 0x28a   :  { %1805 = vmatpush.msra.mxu2 %v1405_v63  ;;  %1825 = vmatpush.msra.mxu3 %v1469_v0  ;;  %v1353_v63 = vld [vmem:[#allocation5 + $0x28] sm:$0xff]  ;;  %v1412_v38 = vld [vmem:[#allocation5 + $0x200] sm:$0xff]  ;;  %v4792_v12 = vsub.f32 %v1336_v55, %v1338_v60  ;;  %v1474_v1 = vld [vmem:[#allocation5 + $0x3f0] sm:$0xff] }
 0x28b   :  { %1766 = vmatpush.msra.mxu0 %v1400_v3  ;;  %1786 = vmatpush.msra.mxu1 %v1464_v5  ;;  %v1417_v0 = vld [vmem:[#allocation5 + $0x228] sm:$0xff]  ;;  %v4794_v39 = vsub.f32 %v1337_v61, %v1339_v62  ;;  %v1475_v45 = vld [vmem:[#allocation5 + $0x3f8] sm:$0xff]  ;;  %v1422_v60 = vld [vmem:[#allocation5 + $0x250] sm:$0xff] }
 0x28c   :  { %1806 = vmatpush.msra.mxu2 %v1401_v6  ;;  %1826 = vmatpush.msra.mxu3 %v1465_v7  ;;  %v1349_v3 = vld [vmem:[#allocation5 + $0x8] sm:$0xff]  ;;  %v1406_v6 = vld [vmem:[#allocation5 + $0x1d0] sm:$0xff]  ;;  %v1363_v55 = vld [vmem:[#allocation5 + $0x78] sm:$0xff] }
 0x28d   :  { %1767 = vmatpush.msra.mxu0 %v1396_v8  ;;  %1787 = vmatpush.msra.mxu1 %v1460_v48  ;;  %v1413_v5 = vld [vmem:[#allocation5 + $0x208] sm:$0xff]  ;;  %v1470_v7 = vld [vmem:[#allocation5 + $0x3d0] sm:$0xff]  ;;  %v1407_v8 = vld [vmem:[#allocation5 + $0x1d8] sm:$0xff] }
 0x28e   :  { %1807 = vmatpush.msra.mxu2 %v1397_v10  ;;  %1827 = vmatpush.msra.mxu3 %v1461_v41  ;;  %v1471_v48 = vld [vmem:[#allocation5 + $0x3d8] sm:$0xff]  ;;  %v1402_v10 = vld [vmem:[#allocation5 + $0x1b0] sm:$0xff] }
 0x28f   :  { %1700 = vmatmul.f32.vlgmr.msrb.gmra.mxu0 %v1346_v53  ;;  %1720 = vmatmul.f32.vlgmr.msrb.gmra.mxu1 %v1347_v54  ;;  %v1466_v41 = vld [vmem:[#allocation5 + $0x3b0] sm:$0xff]  ;;  %v1359_v61 = vld [vmem:[#allocation5 + $0x58] sm:$0xff] }
 0x290   :  { %1740 = vmatmul.f32.vlgmr.msrb.gmra.mxu2 %v1346_v53  ;;  %1760 = vmatmul.f32.vlgmr.msrb.gmra.mxu3 %v1347_v54  ;;  %v1357_v53 = vld [vmem:[#allocation5 + $0x48] sm:$0xff]  ;;  %v1423_v62 = vld [vmem:[#allocation5 + $0x258] sm:$0xff] }
 0x291   :  { %1768 = vmatpush.msra.mxu0 %v1392_v42  ;;  %1788 = vmatpush.msra.mxu1 %v1456_v21  ;;  %v1421_v54 = vld [vmem:[#allocation5 + $0x248] sm:$0xff]  ;;  %v1403_v42 = vld [vmem:[#allocation5 + $0x1b8] sm:$0xff] }
 0x292   :  { %1808 = vmatpush.msra.mxu2 %v1393_v19  ;;  %1828 = vmatpush.msra.mxu3 %v1457_v43  ;;  %v1467_v21 = vld [vmem:[#allocation5 + $0x3b8] sm:$0xff]  ;;  %v1398_v19 = vld [vmem:[#allocation5 + $0x190] sm:$0xff] }
 0x293   :  { %1769 = vmatpush.msra.mxu0 %v1388_v44  ;;  %1789 = vmatpush.msra.mxu1 %v1452_v20  ;;  %v1462_v43 = vld [vmem:[#allocation5 + $0x390] sm:$0xff]  ;;  %v1399_v44 = vld [vmem:[#allocation5 + $0x198] sm:$0xff] }
 0x294   :  { %1809 = vmatpush.msra.mxu2 %v1389_v22  ;;  %1829 = vmatpush.msra.mxu3 %v1453_v23  ;;  %v1463_v20 = vld [vmem:[#allocation5 + $0x398] sm:$0xff]  ;;  %v1394_v22 = vld [vmem:[#allocation5 + $0x170] sm:$0xff] }
 0x295   :  { %1770 = vmatpush.msra.mxu0 %v1384_v24  ;;  %1790 = vmatpush.msra.mxu1 %v1448_v28  ;;  %v1458_v23 = vld [vmem:[#allocation5 + $0x370] sm:$0xff]  ;;  %v1395_v24 = vld [vmem:[#allocation5 + $0x178] sm:$0xff] }
 0x296   :  { %1810 = vmatpush.msra.mxu2 %v1385_v36  ;;  %1830 = vmatpush.msra.mxu3 %v1449_v29  ;;  %v1459_v28 = vld [vmem:[#allocation5 + $0x378] sm:$0xff]  ;;  %v1390_v36 = vld [vmem:[#allocation5 + $0x150] sm:$0xff] }
 0x297   :  { %1771 = vmatpush.msra.mxu0 %v1380_v46  ;;  %1791 = vmatpush.msra.mxu1 %v1444_v25  ;;  %v1454_v29 = vld [vmem:[#allocation5 + $0x350] sm:$0xff]  ;;  %v1391_v46 = vld [vmem:[#allocation5 + $0x158] sm:$0xff] }
 0x298   :  { %1811 = vmatpush.msra.mxu2 %v1381_v57  ;;  %1831 = vmatpush.msra.mxu3 %v1445_v47  ;;  %v1455_v25 = vld [vmem:[#allocation5 + $0x358] sm:$0xff]  ;;  %v1386_v57 = vld [vmem:[#allocation5 + $0x130] sm:$0xff] }
 0x299   :  { %1772 = vmatpush.msra.mxu0 %v1376_v30  ;;  %1792 = vmatpush.msra.mxu1 %v1440_v32  ;;  %v1450_v47 = vld [vmem:[#allocation5 + $0x330] sm:$0xff]  ;;  %v1387_v30 = vld [vmem:[#allocation5 + $0x138] sm:$0xff] }
 0x29a   :  { %1812 = vmatpush.msra.mxu2 %v1377_v33  ;;  %1832 = vmatpush.msra.mxu3 %v1441_v13  ;;  %v1451_v32 = vld [vmem:[#allocation5 + $0x338] sm:$0xff]  ;;  %v1382_v33 = vld [vmem:[#allocation5 + $0x110] sm:$0xff] }
 0x29b   :  { %1773 = vmatpush.msra.mxu0 %v1372_v2  ;;  %1793 = vmatpush.msra.mxu1 %v1436_v34  ;;  %v1446_v13 = vld [vmem:[#allocation5 + $0x310] sm:$0xff]  ;;  %v1383_v2 = vld [vmem:[#allocation5 + $0x118] sm:$0xff] }
 0x29c   :  { %1813 = vmatpush.msra.mxu2 %v1373_v35  ;;  %1833 = vmatpush.msra.mxu3 %v1437_v31  ;;  %v1447_v34 = vld [vmem:[#allocation5 + $0x318] sm:$0xff]  ;;  %v1378_v35 = vld [vmem:[#allocation5 + $0xf0] sm:$0xff] }
 0x29d   :  { %1774 = vmatpush.msra.mxu0 %v1368_v16  ;;  %1794 = vmatpush.msra.mxu1 %v1432_v26  ;;  %v1442_v31 = vld [vmem:[#allocation5 + $0x2f0] sm:$0xff]  ;;  %v1379_v16 = vld [vmem:[#allocation5 + $0xf8] sm:$0xff] }
 0x29e   :  { %1814 = vmatpush.msra.mxu2 %v1369_v58  ;;  %1834 = vmatpush.msra.mxu3 %v1433_v15  ;;  %v1443_v26 = vld [vmem:[#allocation5 + $0x2f8] sm:$0xff]  ;;  %v1374_v58 = vld [vmem:[#allocation5 + $0xd0] sm:$0xff] }
 0x29f   :  { %1775 = vmatpush.msra.mxu0 %v1364_v27  ;;  %1795 = vmatpush.msra.mxu1 %v1428_v37  ;;  %v1438_v15 = vld [vmem:[#allocation5 + $0x2d0] sm:$0xff]  ;;  %v1375_v27 = vld [vmem:[#allocation5 + $0xd8] sm:$0xff] }
 0x2a0   :  { %1815 = vmatpush.msra.mxu2 %v1365_v9  ;;  %1835 = vmatpush.msra.mxu3 %v1429_v18  ;;  %v1439_v37 = vld [vmem:[#allocation5 + $0x2d8] sm:$0xff]  ;;  %v1370_v9 = vld [vmem:[#allocation5 + $0xb0] sm:$0xff] }
 0x2a1   :  { %1776 = vmatpush.msra.mxu0 %v1360_v4  ;;  %1796 = vmatpush.msra.mxu1 %v1424_v17  ;;  %v1434_v18 = vld [vmem:[#allocation5 + $0x2b0] sm:$0xff]  ;;  %v1371_v4 = vld [vmem:[#allocation5 + $0xb8] sm:$0xff] }
 0x2a2   :  { %1816 = vmatpush.msra.mxu2 %v1361_v49  ;;  %1836 = vmatpush.msra.mxu3 %v1425_v50  ;;  %v1435_v17 = vld [vmem:[#allocation5 + $0x2b8] sm:$0xff]  ;;  %v1366_v49 = vld [vmem:[#allocation5 + $0x90] sm:$0xff] }
 0x2a3   :  { %1777 = vmatpush.msra.mxu0 %v1356_v51  ;;  %1797 = vmatpush.msra.mxu1 %v1420_v52  ;;  %v1430_v50 = vld [vmem:[#allocation5 + $0x290] sm:$0xff]  ;;  %v1367_v51 = vld [vmem:[#allocation5 + $0x98] sm:$0xff] }
 0x2a4   :  { %1817 = vmatpush.msra.mxu2 %v1357_v53  ;;  %1837 = vmatpush.msra.mxu3 %v1421_v54  ;;  %v1431_v52 = vld [vmem:[#allocation5 + $0x298] sm:$0xff]  ;;  %v1362_v53 = vld [vmem:[#allocation5 + $0x70] sm:$0xff] }
 0x2a5   :  { %1778 = vmatpush.msra.mxu0 %v1352_v56  ;;  %1798 = vmatpush.msra.mxu1 %v1416_v59  ;;  %v1426_v54 = vld [vmem:[#allocation5 + $0x270] sm:$0xff]  ;;  %v1427_v56 = vld [vmem:[#allocation5 + $0x278] sm:$0xff] }
 0x2a6   :  { %1818 = vmatpush.msra.mxu2 %v1353_v63  ;;  %1838 = vmatpush.msra.mxu3 %v1417_v0  ;;  %v1358_v59 = vld [vmem:[#allocation5 + $0x50] sm:$0xff] }
 0x2a7   :  { %1779 = vmatpush.msra.mxu0 %v1348_v14  ;;  %1799 = vmatpush.msra.mxu1 %v1412_v38  ;;  %v1354_v63 = vld [vmem:[#allocation5 + $0x30] sm:$0xff]  ;;  %v1355_v14 = vld [vmem:[#allocation5 + $0x38] sm:$0xff] }
 0x2a8   :  { %1819 = vmatpush.msra.mxu2 %v1349_v3  ;;  %1839 = vmatpush.msra.mxu3 %v1413_v5  ;;  %v1418_v0 = vld [vmem:[#allocation5 + $0x230] sm:$0xff]  ;;  %v1419_v38 = vld [vmem:[#allocation5 + $0x238] sm:$0xff] }
 0x2a9   :  { %1780 = vmatmul.f32.vlgmr.msra.gmra.mxu0 %v4792_v12  ;;  %1800 = vmatmul.f32.vlgmr.msra.gmra.mxu1 %v4794_v39  ;;  %v1350_v3 = vld [vmem:[#allocation5 + $0x10] sm:$0xff] }
 0x2aa   :  { %1820 = vmatmul.f32.vlgmr.msra.gmra.mxu2 %v4792_v12  ;;  %1840 = vmatmul.f32.vlgmr.msra.gmra.mxu3 %v4794_v39  ;;  %v1414_v5 = vld [vmem:[#allocation5 + $0x210] sm:$0xff] }
 0x2ab   :  { %1844 = vmatpush.msrb.mxu0 %v1410_v40  ;;  %1864 = vmatpush.msrb.mxu1 %v1474_v1  ;;  %v1351_v40 = vld [vmem:[#allocation5 + $0x18] sm:$0xff] }
 0x2ac   :  { %1884 = vmatpush.msrb.mxu2 %v1411_v11  ;;  %1904 = vmatpush.msrb.mxu3 %v1475_v45  ;;  %v1415_v1 = vld [vmem:[#allocation5 + $0x218] sm:$0xff]  ;;  %v1944_v45 = vld [vmem:[%s5243_s5 + $0x70] sm:$0xff] }
 0x2ad   :  { %1845 = vmatpush.msrb.mxu0 %v1406_v6  ;;  %1865 = vmatpush.msrb.mxu1 %v1470_v7  ;;  %v1945_v11 = vld [vmem:[%s5243_s5 + $0x78] sm:$0xff]  ;;  %v1943_v7 = vld [vmem:[%s5243_s5 + $0x68] sm:$0xff] }
 0x2ae   :  { %1885 = vmatpush.msrb.mxu2 %v1407_v8  ;;  %1905 = vmatpush.msrb.mxu3 %v1471_v48  ;;  %v1961_v6 = vld [vmem:[%s5243_s5 + $0xf8] sm:$0xff]  ;;  %v1942_v8 = vld [vmem:[%s5243_s5 + $0x60] sm:$0xff] }
 0x2af   :  { %1846 = vmatpush.msrb.mxu0 %v1402_v10  ;;  %1866 = vmatpush.msrb.mxu1 %v1466_v41  ;;  %v1958_v48 = vld [vmem:[%s5243_s5 + $0xe0] sm:$0xff]  ;;  %v1941_v10 = vld [vmem:[%s5243_s5 + $0x58] sm:$0xff] }
 0x2b0   :  { %1886 = vmatpush.msrb.mxu2 %v1403_v42  ;;  %1906 = vmatpush.msrb.mxu3 %v1467_v21  ;;  %v1957_v41 = vld [vmem:[%s5243_s5 + $0xd8] sm:$0xff]  ;;  %v1940_v42 = vld [vmem:[%s5243_s5 + $0x50] sm:$0xff] }
 0x2b1   :  { %1847 = vmatpush.msrb.mxu0 %v1398_v19  ;;  %1867 = vmatpush.msrb.mxu1 %v1462_v43  ;;  %v1956_v21 = vld [vmem:[%s5243_s5 + $0xd0] sm:$0xff]  ;;  %v1939_v19 = vld [vmem:[%s5243_s5 + $0x48] sm:$0xff] }
 0x2b2   :  { %1887 = vmatpush.msrb.mxu2 %v1399_v44  ;;  %1907 = vmatpush.msrb.mxu3 %v1463_v20  ;;  %v1955_v43 = vld [vmem:[%s5243_s5 + $0xc8] sm:$0xff]  ;;  %v1938_v44 = vld [vmem:[%s5243_s5 + $0x40] sm:$0xff] }
 0x2b3   :  { %1848 = vmatpush.msrb.mxu0 %v1394_v22  ;;  %1868 = vmatpush.msrb.mxu1 %v1458_v23  ;;  %v1954_v20 = vld [vmem:[%s5243_s5 + $0xc0] sm:$0xff]  ;;  %v1937_v22 = vld [vmem:[%s5243_s5 + $0x38] sm:$0xff]  ;;  %v1936_v23 = vld [vmem:[%s5243_s5 + $0x30] sm:$0xff] }
 0x2b4   :  { %1888 = vmatpush.msrb.mxu2 %v1395_v24  ;;  %1908 = vmatpush.msrb.mxu3 %v1459_v28  ;;  %v1935_v24 = vld [vmem:[%s5243_s5 + $0x28] sm:$0xff]  ;;  %v1934_v28 = vld [vmem:[%s5243_s5 + $0x20] sm:$0xff] }
 0x2b5   :  { %1849 = vmatpush.msrb.mxu0 %v1390_v36  ;;  %1869 = vmatpush.msrb.mxu1 %v1454_v29  ;;  %v1953_v36 = vld [vmem:[%s5243_s5 + $0xb8] sm:$0xff] }
 0x2b6   :  { %1889 = vmatpush.msrb.mxu2 %v1391_v46  ;;  %1909 = vmatpush.msrb.mxu3 %v1455_v25  ;;  %v1933_v29 = vld [vmem:[%s5243_s5 + $0x18] sm:$0xff]  ;;  %v1952_v46 = vld [vmem:[%s5243_s5 + $0xb0] sm:$0xff] }
 0x2b7   :  { %1850 = vmatpush.msrb.mxu0 %v1386_v57  ;;  %1870 = vmatpush.msrb.mxu1 %v1450_v47  ;;  %v1932_v25 = vld [vmem:[%s5243_s5 + $0x10] sm:$0xff]  ;;  %v1951_v57 = vld [vmem:[%s5243_s5 + $0xa8] sm:$0xff] }
 0x2b8   :  { %1890 = vmatpush.msrb.mxu2 %v1387_v30  ;;  %1910 = vmatpush.msrb.mxu3 %v1451_v32  ;;  %v1931_v30 = vld [vmem:[%s5243_s5 + $0x8] sm:$0xff]  ;;  %v1950_v32 = vld [vmem:[%s5243_s5 + $0xa0] sm:$0xff] }
 0x2b9   :  { %1851 = vmatpush.msrb.mxu0 %v1382_v33  ;;  %1871 = vmatpush.msrb.mxu1 %v1446_v13  ;;  %v1930_v13 = vld [vmem:[%s5243_s5] sm:$0xff] }
 0x2ba   :  { %1891 = vmatpush.msrb.mxu2 %v1383_v2  ;;  %1911 = vmatpush.msrb.mxu3 %v1447_v34  ;;  %v1949_v2 = vld [vmem:[%s5243_s5 + $0x98] sm:$0xff]  ;;  %v1948_v34 = vld [vmem:[%s5243_s5 + $0x90] sm:$0xff] }
 0x2bb   :  { %1852 = vmatpush.msrb.mxu0 %v1378_v35  ;;  %1872 = vmatpush.msrb.mxu1 %v1442_v31  ;;  %v1947_v35 = vld [vmem:[%s5243_s5 + $0x88] sm:$0xff] }
 0x2bc   :  { %1892 = vmatpush.msrb.mxu2 %v1379_v16  ;;  %1912 = vmatpush.msrb.mxu3 %v1443_v26  ;;  %v1946_v16 = vld [vmem:[%s5243_s5 + $0x80] sm:$0xff] }
 0x2bd   :  { %1853 = vmatpush.msrb.mxu0 %v1374_v58  ;;  %1873 = vmatpush.msrb.mxu1 %v1438_v15 }
 0x2be   :  { %1893 = vmatpush.msrb.mxu2 %v1375_v27  ;;  %1913 = vmatpush.msrb.mxu3 %v1439_v37 }
 0x2bf   :  { %1854 = vmatpush.msrb.mxu0 %v1370_v9  ;;  %1874 = vmatpush.msrb.mxu1 %v1434_v18 }
 0x2c0   :  { %1894 = vmatpush.msrb.mxu2 %v1371_v4  ;;  %1914 = vmatpush.msrb.mxu3 %v1435_v17 }
 0x2c1   :  { %1855 = vmatpush.msrb.mxu0 %v1366_v49  ;;  %1875 = vmatpush.msrb.mxu1 %v1430_v50 }
 0x2c2   :  { %1895 = vmatpush.msrb.mxu2 %v1367_v51  ;;  %1915 = vmatpush.msrb.mxu3 %v1431_v52 }
 0x2c3   :  { %1856 = vmatpush.msrb.mxu0 %v1362_v53  ;;  %1876 = vmatpush.msrb.mxu1 %v1426_v54 }
 0x2c4   :  { %1896 = vmatpush.msrb.mxu2 %v1363_v55  ;;  %1916 = vmatpush.msrb.mxu3 %v1427_v56 }
 0x2c5   :  { %1857 = vmatpush.msrb.mxu0 %v1358_v59  ;;  %1877 = vmatpush.msrb.mxu1 %v1422_v60 }
 0x2c6   :  { %1897 = vmatpush.msrb.mxu2 %v1359_v61  ;;  %1917 = vmatpush.msrb.mxu3 %v1423_v62 }
 0x2c7   :  { %1858 = vmatpush.msrb.mxu0 %v1354_v63  ;;  %1878 = vmatpush.msrb.mxu1 %v1418_v0 }
 0x2c8   :  { %1898 = vmatpush.msrb.mxu2 %v1355_v14  ;;  %1918 = vmatpush.msrb.mxu3 %v1419_v38 }
 0x2c9   :  { %1859 = vmatpush.msrb.mxu0 %v1350_v3  ;;  %1879 = vmatpush.msrb.mxu1 %v1414_v5 }
 0x2ca   :  { %1899 = vmatpush.msrb.mxu2 %v1351_v40  ;;  %1919 = vmatpush.msrb.mxu3 %v1415_v1 }
 0x2cb   :  { %1860 = vmatmul.f32.vlgmr.msrb.gmra.mxu0 %v4792_v12  ;;  %1880 = vmatmul.f32.vlgmr.msrb.gmra.mxu1 %v4794_v39 }
 0x2cc   :  { %1900 = vmatmul.f32.vlgmr.msrb.gmra.mxu2 %v4792_v12  ;;  %1920 = vmatmul.f32.vlgmr.msrb.gmra.mxu3 %v4794_v39  ;;  %v1960_v12 = vld [vmem:[%s5243_s5 + $0xf0] sm:$0xff]  ;;  %v1959_v39 = vld [vmem:[%s5243_s5 + $0xe8] sm:$0xff]  ;;  %s3759_s5 = smov 120  }
 0x2cd   :  { %1962 = vmatpush.msra.mxu0 %v1945_v11  ;;  %1982 = vmatpush.msra.mxu1 %v1961_v6 }
 0x2cf   :  { %1963 = vmatpush.msra.mxu0 %v1944_v45  ;;  %1983 = vmatpush.msra.mxu1 %v1960_v12 }
 0x2d1   :  { %1964 = vmatpush.msra.mxu0 %v1943_v7  ;;  %1984 = vmatpush.msra.mxu1 %v1959_v39 }
 0x2d3   :  { %1965 = vmatpush.msra.mxu0 %v1942_v8  ;;  %1985 = vmatpush.msra.mxu1 %v1958_v48 }
 0x2d5   :  { %1966 = vmatpush.msra.mxu0 %v1941_v10  ;;  %1986 = vmatpush.msra.mxu1 %v1957_v41 }
 0x2d7   :  { %1967 = vmatpush.msra.mxu0 %v1940_v42  ;;  %1987 = vmatpush.msra.mxu1 %v1956_v21 }
 0x2d9   :  { %1968 = vmatpush.msra.mxu0 %v1939_v19  ;;  %1988 = vmatpush.msra.mxu1 %v1955_v43 }
 0x2db   :  { %1969 = vmatpush.msra.mxu0 %v1938_v44  ;;  %1989 = vmatpush.msra.mxu1 %v1954_v20 }
 0x2dd   :  { %1970 = vmatpush.msra.mxu0 %v1937_v22  ;;  %1990 = vmatpush.msra.mxu1 %v1953_v36 }
 0x2df   :  { %1971 = vmatpush.msra.mxu0 %v1936_v23  ;;  %1991 = vmatpush.msra.mxu1 %v1952_v46  ;;  %v5475_v23 = vmov 683565275   ;;  %v5477_v46 = vmov 2131351028  }
 0x2e1   :  { %1972 = vmatpush.msra.mxu0 %v1935_v24  ;;  %1992 = vmatpush.msra.mxu1 %v1951_v57 }
 0x2e3   :  { %1973 = vmatpush.msra.mxu0 %v1934_v28  ;;  %1993 = vmatpush.msra.mxu1 %v1950_v32  ;;  %v5476_v28 = vmov 2475754826  }
 0x2e5   :  { %1974 = vmatpush.msra.mxu0 %v1933_v29  ;;  %1994 = vmatpush.msra.mxu1 %v1949_v2 }
 0x2e7   :  { %1975 = vmatpush.msra.mxu0 %v1932_v25  ;;  %1995 = vmatpush.msra.mxu1 %v1948_v34  ;;  %v5480_v34 = vmov 1326507024  }
 0x2e9   :  { %1976 = vmatpush.msra.mxu0 %v1931_v30  ;;  %1996 = vmatpush.msra.mxu1 %v1947_v35 }
 0x2eb   :  { %1977 = vmatpush.msra.mxu0 %v1930_v13  ;;  %1997 = vmatpush.msra.mxu1 %v1946_v16 }
 0x302   :  { %v1621_v47 = vpop.f32.mrf.mxu0 }
 0x303   :  { %v1641_v33 = vpop.f32.mrf.mxu1 }
 0x304   :  { %v1642_v4 = vadd.f32 %v1641_v33, %v1621_v47  ;;  %v5478_v47 = vmov 2102212464   ;;  %v5479_v33 = vmov 920167782  }
 0x308   :  { %v1661_v31 = vpop.f32.mrf.mxu2 }
 0x309   :  { %v1681_v26 = vpop.f32.mrf.mxu3 }
 0x30a   :  { %v1682_v55 = vadd.f32 %v1681_v26, %v1661_v31 }
 0x30c   :  { %v1701_v58 = vpop.f32.mrf.mxu0  ;;  %v1721_v15 = vpop.f32.mrf.mxu1 }
 0x30d   :  { %v1722_v49 = vadd.f32 %v1721_v15, %v1701_v58 }
 0x313   :  { %v1741_v27 = vpop.f32.mrf.mxu2  ;;  %v1761_v9 = vpop.f32.mrf.mxu3 }
 0x314   :  { %v1762_v63 = vadd.f32 %v1761_v9, %v1741_v27 }
 0x326   :  { %v1781_v37 = vpop.f32.mrf.mxu0  ;;  %v1801_v18 = vpop.f32.mrf.mxu1 }
 0x327   :  { %v1782_v17 = vadd.f32 %v1781_v37, %v1642_v4 }
 0x329   :  { %v1802_v52 = vadd.f32 %v1801_v18, %v1782_v17 }
 0x32b   :  { %v1924_v61 = vmul.f32 %v1802_v52, %v1802_v52 }
 0x32d   :  { %v1821_v50 = vpop.f32.mrf.mxu2  ;;  %v1841_v53 = vpop.f32.mrf.mxu3 }
 0x32e   :  { %v1822_v60 = vadd.f32 %v1821_v50, %v1682_v55 }
 0x330   :  { %v1842_v38 = vadd.f32 %v1841_v53, %v1822_v60 }
 0x332   :  { %v1925_v1 = vmul.f32 %v1842_v38, %v1842_v38 }
 0x348   :  { %v1861_v51 = vpop.f32.mrf.mxu0  ;;  %v1881_v56 = vpop.f32.mrf.mxu1 }
 0x349   :  { %v1862_v54 = vadd.f32 %v1861_v51, %v1722_v49 }
 0x34b   :  { %v1882_v59 = vadd.f32 %v1881_v56, %v1862_v54 }
 0x34d   :  { %v1926_v62 = vmul.f32 %v1882_v59, %v1882_v59 }
 0x34f   :  { %v1928_v0 = vadd.f32 %v1926_v62, %v1924_v61  ;;  %v1901_v14 = vpop.f32.mrf.mxu2  ;;  %v1921_v5 = vpop.f32.mrf.mxu3 }
 0x350   :  { %v1902_v3 = vadd.f32 %v1901_v14, %v1762_v63 }
 0x351   :  { %1978 = vmatmul.f32.vlgmr.msra.gmra.mxu0 %v1928_v0 }
 0x352   :  { %v1922_v40 = vadd.f32 %v1921_v5, %v1902_v3 }
 0x354   :  { %v1927_v11 = vmul.f32 %v1922_v40, %v1922_v40 }
 0x356   :  { %v1929_v45 = vadd.f32 %v1927_v11, %v1925_v1 }
 0x358   :  { %1998 = vmatmul.f32.vlgmr.msra.gmra.mxu1 %v1929_v45  ;;  %v5481_v45 = vmov 0  }
 0x3ce   :  { %v1979_v6 = vpop.f32.mrf.mxu0 }
 0x3d5   :  { %v1999_v7 = vpop.f32.mrf.mxu1 }
 0x3d6   :  { %v2000_v12 = vadd.f32 %v1999_v7, %v1979_v6 }
 0x3d8   :  { %v4900_v39 = vmul.f32 0.5, %v2000_v12 }
 0x3da   :  { %v2006_v8 = vand.u32 2139095040, %v4900_v39  ;;  %v2003_v41 = vand.u32 2147483647, %v4900_v39  ;;  %vm2005_vm2 = vcmp.lt.s32.totalorder %v4900_v39, 0 }
 0x3dc   :  { %v2007_v48 = vshrl.u32 %v2006_v8, 23  ;;  %v2010_v21 = vand.u32 8388607, %v2003_v41  ;;  %vm2004_vm3 = vcmp.le.f32.partialorder %v2003_v41, 0.7853982 }
 0x3de   :  { %v3502_v10 = vadd.s32 4294967169, %v2007_v48  ;;  %v2011_v20 = vor.u32 8388608, %v2010_v21 }
 0x3e0   :  { %v2013_v42 = vadd.s32 1, %v3502_v10  ;;  %v4919_v27 = vshll.u32 %v2011_v20, 8 }
 0x3e2   :  { %vm2014_vm6 = vcmp.gt.s32.totalorder %v2013_v42, 0  ;;  %v2052_v52 = vand.u32 65535, %v4919_v27  ;;  %v2053_v53 = vshrl.u32 %v4919_v27, 16 }
 0x3e3   :  { %v2015_v19 = vsel %vm2014_vm6, %v2013_v42, 0 }
 0x3e4   :  { %v2017_v43 = vand.u32 31, %v2015_v19  ;;  %v4906_v22 = vshrl.u32 %v2015_v19, 5 }
 0x3e6   :  { %v2018_v44 = vsub.s32 32, %v2017_v43  ;;  %v2020_v24 = vshll.u32 %v5475_v23, %v2017_v43  ;;  %v2023_v36 = vshll.u32 %v5476_v28, %v2017_v43  ;;  %v2026_v57 = vshll.u32 %v5477_v46, %v2017_v43 }
 0x3e7   :  { %v2029_v32 = vshll.u32 %v5478_v47, %v2017_v43  ;;  %v2032_v2 = vshll.u32 %v5479_v33, %v2017_v43  ;;  %vm2035_vm7 = vcmp.lt.s32.totalorder %v4906_v22, 1  ;;  %vm2038_vm8 = vcmp.lt.s32.totalorder %v4906_v22, 4 }
 0x3e8   :  { %v2021_v29 = vshrl.u32 %v5476_v28, %v2018_v44  ;;  %v2024_v25 = vshrl.u32 %v5477_v46, %v2018_v44  ;;  %v2027_v30 = vshrl.u32 %v5478_v47, %v2018_v44  ;;  %v2030_v13 = vshrl.u32 %v5479_v33, %v2018_v44 }
 0x3e9   :  { %v2033_v35 = vshrl.u32 %v5480_v34, %v2018_v44  ;;  %vm2037_vm9 = vcmp.lt.s32.totalorder %v4906_v22, 3  ;;  %vm2036_vm10 = vcmp.lt.s32.totalorder %v4906_v22, 2  ;;  %v2019_v19 = vshrl.u32 %v5475_v23, %v2018_v44 }
 0x3ea   :  { %v2022_v31 = vor.u32 %v2021_v29, %v2020_v24  ;;  %v2025_v16 = vor.u32 %v2024_v25, %v2023_v36  ;;  %v2028_v26 = vor.u32 %v2027_v30, %v2026_v57  ;;  %v2031_v58 = vor.u32 %v2030_v13, %v2029_v32 }
 0x3eb   :  { %v2034_v15 = vor.u32 %v2033_v35, %v2032_v2 }
 0x3ec   :  { %v2043_v37 = vsel %vm2035_vm7, %v2022_v31, %v2025_v16  ;;  %v2047_v9 = vsel %vm2035_vm7, %v2025_v16, %v2028_v26  ;;  %v2044_v18 = vsel %vm2038_vm8, %v2031_v58, 920167782  ;;  %v2040_v10 = vsel %vm2038_vm8, %v2028_v26, 2102212464 }
 0x3ed   :  { %v2048_v4 = vsel %vm2038_vm8, %v2034_v15, 1326507024  ;;  %v2045_v17 = vsel %vm2037_vm9, %v2028_v26, %v2044_v18  ;;  %v2039_v29 = vsel %vm2035_vm7, %v2019_v19, %v2022_v31  ;;  %v2041_v46 = vsel %vm2037_vm9, %v2025_v16, %v2040_v10 }
 0x3ee   :  { %v2049_v49 = vsel %vm2037_vm9, %v2031_v58, %v2048_v4  ;;  %v2046_v50 = vsel %vm2036_vm10, %v2043_v37, %v2045_v17  ;;  %v2042_v44 = vsel %vm2036_vm10, %v2039_v29, %v2041_v46 }
 0x3ef   :  { %v2050_v51 = vsel %vm2036_vm10, %v2047_v9, %v2049_v49  ;;  %v2076_v56 = vand.u32 65535, %v2046_v50  ;;  %v2077_v59 = vshrl.u32 %v2046_v50, 16  ;;  %v2096_v2 = vmul.u32 %v4919_v27, %v2042_v44 }
 0x3f0   :  { %v2054_v54 = vand.u32 65535, %v2050_v51  ;;  %v2055_v55 = vshrl.u32 %v2050_v51, 16  ;;  %vm2146_vm10 = vweird.f32 %v4900_v39 }
 0x3f1   :  { %v2079_v62 = vmul.u32 %v2077_v59, %v2052_v52  ;;  %v2080_v63 = vmul.u32 %v2076_v56, %v2053_v53  ;;  %v2078_v3 = vmul.u32 %v2076_v56, %v2052_v52  ;;  %v2081_v11 = vmul.u32 %v2077_v59, %v2053_v53 }
 0x3f2   :  { %v2057_v60 = vmul.u32 %v2055_v55, %v2052_v52  ;;  %v2058_v61 = vmul.u32 %v2054_v54, %v2053_v53  ;;  %v2056_v0 = vmul.u32 %v2054_v54, %v2052_v52  ;;  %v2059_v38 = vmul.u32 %v2055_v55, %v2053_v53 }
 0x3f3   :  { %v2082_v5 = vshll.u32 %v2079_v62, 16  ;;  %v2084_v7 = vshll.u32 %v2080_v63, 16  ;;  %v2083_v28 = vshrl.u32 %v2079_v62, 16  ;;  %v2085_v47 = vshrl.u32 %v2080_v63, 16 }
 0x3f4   :  { %v2060_v14 = vshll.u32 %v2057_v60, 16  ;;  %v2062_v40 = vshll.u32 %v2058_v61, 16  ;;  %v2061_v43 = vshrl.u32 %v2057_v60, 16  ;;  %v2063_v25 = vshrl.u32 %v2058_v61, 16 }
 0x3f5   :  { %vm2086_vm12 = vc.u32 %v2078_v3, %v2082_v5  ;;  %v2088_v12 = vadd.s32 %v2082_v5, %v2078_v3 }
 0x3f6   :  { %vm2064_vm11 = vc.u32 %v2056_v0, %v2060_v14  ;;  %v2066_v1 = vadd.s32 %v2060_v14, %v2056_v0  ;;  %v2087_v48 = vsel %vm2086_vm12, 1, %v5481_v45 }
 0x3f7   :  { %v2065_v6 = vsel %vm2064_vm11, 1, %v5481_v45  ;;  %v2089_v21 = vadd.s32 %v2087_v48, %v2081_v11  ;;  %vm2090_vm14 = vc.u32 %v2088_v12, %v2084_v7  ;;  %v2092_v33 = vadd.s32 %v2088_v12, %v2084_v7 }
 0x3f8   :  { %v2067_v8 = vadd.s32 %v2065_v6, %v2059_v38  ;;  %vm2068_vm13 = vc.u32 %v2066_v1, %v2062_v40  ;;  %v2091_v24 = vsel %vm2090_vm14, 1, %v5481_v45 }
 0x3f9   :  { %v2069_v42 = vsel %vm2068_vm13, 1, %v5481_v45  ;;  %v2093_v36 = vadd.s32 %v2091_v24, %v2089_v21 }
 0x3fa   :  { %v2071_v20 = vadd.s32 %v2069_v42, %v2067_v8 }
 0x3fb   :  { %v2094_v30 = vadd.s32 %v2093_v36, %v2083_v28 }
 0x3fc   :  { %v2072_v57 = vadd.s32 %v2071_v20, %v2061_v43 }
 0x3fd   :  { %v2095_v23 = vadd.s32 %v2094_v30, %v2085_v47 }
 0x3fe   :  { %v2073_v32 = vadd.s32 %v2072_v57, %v2063_v25 }
 0x3ff   :  { %v2099_v13 = vadd.s32 1, %v2095_v23 }
 0x400   :  { %vm2098_vm15 = vc.u32 %v2073_v32, %v2092_v33  ;;  %v2097_v22 = vadd.s32 %v2092_v33, %v2073_v32 }
 0x401   :  { %v2100_v34 = vsel %vm2098_vm15, %v2099_v13, %v2095_v23 }
 0x402   :  { %v2101_v35 = vadd.s32 %v2100_v34, %v2096_v2 }
 0x404   :  { %v2102_v31 = vadd.s32 536870912, %v2101_v35 }
 0x406   :  { %v2103_v26 = vshrl.u32 %v2102_v31, 30 }
 0x408   :  { %v2104_v58 = vshll.u32 %v2103_v26, 30  ;;  %v2127_v62 = vsub.s32 4, %v2103_v26 }
 0x40a   :  { %v2105_v16 = vsub.s32 %v2101_v35, %v2104_v58  ;;  %v2128_v3 = vsel %vm2005_vm2, %v2127_v62, %v2103_v26 }
 0x40b   :  { %v2130_v1 = vsel %vm2004_vm3, 0, %v2128_v3 }
 0x40c   :  { %vm2106_vm0 = vcmp.lt.s32.totalorder %v2105_v16, 0  ;;  %v2107_v15 = vsub.s32 0, %v2105_v16  ;;  %v2301_v12 = vadd.s32 3, %v2130_v1  ;;  %v2147_v42 = vand.u32 3, %v2130_v1 }
 0x40e   :  { %v2108_v37 = vsel %vm2106_vm0, %v2107_v15, %v2105_v16  ;;  %v2302_v21 = vand.u32 3, %v2301_v12  ;;  %vm2148_vm4 = vcmp.lt.s32.totalorder %v2147_v42, 2  ;;  %vm2149_vm5 = vcmp.eq.s32.totalorder %v2147_v42, 0 }
 0x40f   :  { %v2109_v9 = vclz %v2108_v37  ;;  %vm2152_vm6 = vcmp.eq.s32.totalorder %v2147_v42, 2 }
 0x410   :  { %vm2303_vm7 = vcmp.lt.s32.totalorder %v2302_v21, 2  ;;  %vm2304_vm8 = vcmp.eq.s32.totalorder %v2302_v21, 0  ;;  %vm2307_vm9 = vcmp.eq.s32.totalorder %v2302_v21, 2 }
 0x411   :  { %v3503_v18 = vadd.s32 4294967294, %v2109_v9 }
 0x413   :  { %vm3504_vm1 = vcmp.lt.s32.totalorder %v3503_v18, 0 }
 0x414   :  { %v2112_v4 = vsel %vm3504_vm1, 0, %v3503_v18 }
 0x415   :  { %v2113_v17 = vsub.s32 32, %v2112_v4  ;;  %v2117_v49 = vsub.s32 4294967266, %v2112_v4  ;;  %v2114_v50 = vshll.u32 %v2105_v16, %v2112_v4 }
 0x417   :  { %v2115_v51 = vshrl.u32 %v2097_v22, %v2113_v17  ;;  %v2118_v52 = vadd.s32 127, %v2117_v49 }
 0x419   :  { %v2116_v27 = vor.u32 %v2115_v51, %v2114_v50  ;;  %v2119_v53 = vshll.u32 %v2118_v52, 23 }
 0x41b   :  { %v2120_v54 = vor.u32 4788187, %v2119_v53  ;;  %v2123_v56 = vcvt.s32.f32 %v2116_v27 }
 0x41d   :  { %v2121_v55 = vand.u32 2147483647, %v2120_v54 }
 0x41f   :  { %v2124_v59 = vmul.f32 %v2123_v56, %v2121_v55 }
 0x421   :  { %v2125_v60 = vxor.u32 2147483648, %v2124_v59 }
 0x423   :  { %v2126_v61 = vsel %vm2005_vm2, %v2125_v60, %v2124_v59 }
 0x424   :  { %v2129_v63 = vsel %vm2004_vm3, %v4900_v39, %v2126_v61 }
 0x425   :  { %v2131_v0 = vmul.f32 %v2129_v63, %v2129_v63 }
 0x427   :  { %v2132_v14 = vmul.f32 -0.001358992, %v2131_v0  ;;  %v2139_v38 = vmul.f32 -0.00019511016, %v2131_v0 }
 0x429   :  { %v2133_v5 = vadd.f32 0.041655596, %v2132_v14  ;;  %v2140_v40 = vadd.f32 0.008332121, %v2139_v38 }
 0x42b   :  { %v2134_v11 = vmul.f32 %v2133_v5, %v2131_v0  ;;  %v2141_v45 = vmul.f32 %v2140_v40, %v2131_v0 }
 0x42d   :  { %v2135_v6 = vadd.f32 -0.4999988, %v2134_v11  ;;  %v2142_v7 = vadd.f32 -0.16666654, %v2141_v45 }
 0x42f   :  { %v2136_v8 = vmul.f32 %v2135_v6, %v2131_v0  ;;  %v2143_v48 = vmul.f32 %v2142_v7, %v2131_v0 }
 0x431   :  { %v2137_v10 = vadd.f32 1.0, %v2136_v8  ;;  %v2144_v41 = vadd.f32 1.0, %v2143_v48 }
 0x433   :  { %v2145_v19 = vmul.f32 %v2144_v41, %v2129_v63  ;;  %v2153_v43 = vxor.u32 2147483648, %v2137_v10 }
 0x435   :  { %v2150_v20 = vxor.u32 2147483648, %v2145_v19  ;;  %v2154_v28 = vsel %vm2152_vm6, %v2153_v43, %v2145_v19  ;;  %v2309_v29 = vsel %vm2307_vm9, %v2153_v43, %v2145_v19 }
 0x437   :  { %v2151_v24 = vsel %vm2149_vm5, %v2137_v10, %v2150_v20  ;;  %v2306_v36 = vsel %vm2304_vm8, %v2137_v10, %v2150_v20 }
 0x438   :  { %v2155_v46 = vsel %vm2148_vm4, %v2151_v24, %v2154_v28  ;;  %v2310_v25 = vsel %vm2303_vm7, %v2306_v36, %v2309_v29 }
 0x439   :  { %v4961_v57 = vsel %vm2146_vm10, nan, %v2155_v46  ;;  %v4963_v47 = vsel %vm2146_vm10, nan, %v2310_v25 }
 0x43a   :  { %v2315_v30 = vmul.f32 0.0, %v4961_v57  ;;  %v2316_v32 = vmul.f32 0.70710677, %v4963_v47  ;;  %v2312_v33 = vmul.f32 0.70710677, %v4961_v57  ;;  %v2313_v44 = vmul.f32 0.0, %v4963_v47 }
 0x43c   :  { %v2319_v23 = vadd.f32 %v2316_v32, %v2315_v30  ;;  %v2317_v13 = vsub.f32 %v2315_v30, %v2316_v32  ;;  %v2314_v2 = vadd.f32 %v2313_v44, %v2312_v33  ;;  %v2318_v39 = vsub.f32 %v2312_v33, %v2313_v44 }
 0x43e   :  { %2326 = vrot.lane.b32.xlu2 %v2319_v23, %s3751_s25  ;;  %2332 = vrot.lane.b32.xlu0 %v2317_v13, %s3751_s25 }
 0x43f   :  { %2321 = vrot.lane.b32.xlu1 %v2314_v2, %s3751_s25 }
 0x446   :  { %2349 = vrot.lane.b32.xlu2 %v4961_v57, %s3759_s5  ;;  %2354 = vrot.lane.b32.xlu0 %v4963_v47, %s3759_s5 }
 0x447   :  { %2337 = vrot.lane.b32.xlu1 %v2318_v39, %s3751_s25  ;;  %s3760_s25 = smov 16  }
 0x498   :  { %v2327_v31 = vpop.permute.xlu2 %2326 }
 0x499   :  { %v2329_v16 = vmul.f32 %v2327_v31, %v4963_v47  ;;  %v2345_v15 = vmul.f32 %v2327_v31, %v4961_v57 }
 0x4a0   :  { %v4985_v51 = vpop.permute.xlu2 %2349 }
 0x4b0   :  { %v2333_v34 = vpop.permute.xlu0 %2332 }
 0x4b1   :  { %v2322_v35 = vpop.permute.xlu1 %2321  ;;  %v2335_v4 = vmul.f32 %v2333_v34, %v4961_v57  ;;  %v2343_v22 = vmul.f32 %v2333_v34, %v4963_v47 }
 0x4b2   :  { %v2324_v26 = vmul.f32 %v2322_v35, %v4961_v57  ;;  %v2346_v58 = vmul.f32 %v2322_v35, %v4963_v47 }
 0x4b4   :  { %v2330_v37 = vadd.f32 %v2329_v16, %v2324_v26  ;;  %v2347_v9 = vsub.f32 %v2345_v15, %v2346_v58 }
 0x4b6   :  { %v2352_v53 = vmul.f32 %v4985_v51, %v2330_v37  ;;  %v2365_v54 = vmul.f32 %v4985_v51, %v2347_v9 }
 0x4b8   :  { %v4983_v50 = vpop.permute.xlu0 %2354 }
 0x4b9   :  { %v2338_v18 = vpop.permute.xlu1 %2337  ;;  %v2360_v60 = vmul.f32 %v4983_v50, %v2330_v37  ;;  %v2363_v14 = vmul.f32 %v4983_v50, %v2347_v9 }
 0x4ba   :  { %v2340_v17 = vmul.f32 %v2338_v18, %v4963_v47  ;;  %v2342_v49 = vmul.f32 %v2338_v18, %v4961_v57 }
 0x4bc   :  { %v2341_v52 = vsub.f32 %v2335_v4, %v2340_v17  ;;  %v2344_v27 = vadd.f32 %v2343_v22, %v2342_v49 }
 0x4be   :  { %v2357_v55 = vmul.f32 %v4983_v50, %v2341_v52  ;;  %v2359_v56 = vmul.f32 %v4985_v51, %v2341_v52  ;;  %v2366_v59 = vmul.f32 %v4983_v50, %v2344_v27  ;;  %v2362_v0 = vmul.f32 %v4985_v51, %v2344_v27 }
 0x4c0   :  { %v2367_v61 = vadd.f32 %v2366_v59, %v2365_v54  ;;  %v2361_v62 = vsub.f32 %v2359_v56, %v2360_v60  ;;  %v2358_v63 = vadd.f32 %v2357_v55, %v2352_v53  ;;  %v2364_v38 = vsub.f32 %v2362_v0, %v2363_v14 }
 0x4c2   :  { %2374 = vrot.lane.b32.xlu2 %v2367_v61, %s3760_s25  ;;  %2380 = vrot.lane.b32.xlu0 %v2361_v62, %s3760_s25 }
 0x4c3   :  { %2369 = vrot.lane.b32.xlu1 %v2358_v63, %s3760_s25  ;;  %v3761_v63 = vmov 56  }
 0x4c4   :  { %3540 = vset.pattern.permute.xlu0 %v3761_v63  ;;  %3539 = vset.pattern.permute.xlu2 %v3761_v63 }
 0x4c5   :  { %3538 = vset.pattern.permute.xlu1 %v3761_v63 }
 0x4cb   :  { %2385 = vrot.lane.b32.xlu1 %v2364_v38, %s3760_s25 }
 0x51c   :  { %v2375_v5 = vpop.permute.xlu2 %2374 }
 0x51d   :  { %v2377_v45 = vmul.f32 %v2375_v5, %v4963_v47  ;;  %v2393_v6 = vmul.f32 %v2375_v5, %v4961_v57 }
 0x534   :  { %v2381_v1 = vpop.permute.xlu0 %2380 }
 0x535   :  { %v2370_v3 = vpop.permute.xlu1 %2369  ;;  %v2383_v7 = vmul.f32 %v2381_v1, %v4961_v57  ;;  %v2391_v48 = vmul.f32 %v2381_v1, %v4963_v47 }
 0x536   :  { %v2372_v40 = vmul.f32 %v2370_v3, %v4961_v57  ;;  %v2394_v11 = vmul.f32 %v2370_v3, %v4963_v47 }
 0x538   :  { %v2378_v12 = vadd.f32 %v2377_v45, %v2372_v40  ;;  %v2395_v10 = vsub.f32 %v2393_v6, %v2394_v11 }
 0x53a   :  { %v2396_v43 = vmul.f32 %v2378_v12, %v4985_v51  ;;  %v2400_v20 = vmul.f32 %v2378_v12, %v4983_v50  ;;  %v2405_v24 = vmul.f32 %v2395_v10, %v4985_v51  ;;  %v2403_v33 = vmul.f32 %v2395_v10, %v4983_v50 }
 0x53d   :  { %v2386_v8 = vpop.permute.xlu1 %2385 }
 0x53e   :  { %v2388_v41 = vmul.f32 %v2386_v8, %v4963_v47  ;;  %v2390_v42 = vmul.f32 %v2386_v8, %v4961_v57 }
 0x540   :  { %v2389_v21 = vsub.f32 %v2383_v7, %v2388_v41  ;;  %v2392_v19 = vadd.f32 %v2391_v48, %v2390_v42 }
 0x542   :  { %v2397_v28 = vmul.f32 %v2389_v21, %v4983_v50  ;;  %v2399_v36 = vmul.f32 %v2389_v21, %v4985_v51  ;;  %v2406_v29 = vmul.f32 %v2392_v19, %v4983_v50  ;;  %v2402_v32 = vmul.f32 %v2392_v19, %v4985_v51 }
 0x544   :  { %v2407_v46 = vadd.f32 %v2406_v29, %v2405_v24  ;;  %v2401_v25 = vsub.f32 %v2399_v36, %v2400_v20  ;;  %v2398_v30 = vadd.f32 %v2397_v28, %v2396_v43  ;;  %v2404_v44 = vsub.f32 %v2402_v32, %v2403_v33 }
 0x545   :  { %v3764_v32 = vmov 58   ;;  %v3767_v33 = vmov 62  }
 0x546   :  { %2414 = vrot.lane.b32.xlu0 %v2407_v46, %s3760_s25  ;;  %2420 = vrot.lane.b32.xlu1 %v2401_v25, %s3760_s25  ;;  %v3762_v25 = vmov 57  }
 0x547   :  { %2409 = vrot.lane.b32.xlu2 %v2398_v30, %s3760_s25  ;;  %v3763_v30 = vmov 59  }
 0x54f   :  { %2425 = vrot.lane.b32.xlu2 %v2404_v44, %s3760_s25  ;;  %v3768_v44 = vmov 63  }
 0x5a1   :  { %v2410_v23 = vpop.permute.xlu2 %2409 }
 0x5a2   :  { %v2412_v2 = vmul.f32 %v2410_v23, %v4961_v57  ;;  %v2434_v39 = vmul.f32 %v2410_v23, %v4963_v47  ;;  %v2488_v23 = vlaneseq }
 0x5a9   :  { %v2426_v13 = vpop.permute.xlu2 %2425 }
 0x5aa   :  { %v2428_v34 = vmul.f32 %v2426_v13, %v4963_v47  ;;  %v2430_v35 = vmul.f32 %v2426_v13, %v4961_v57  ;;  %v5064_v13 = vand.u32 127, %v2488_v23  ;;  %v2957_v23 = vld [vmem:[#allocation10 + $0x160] sm:$0xff] }
 0x5b8   :  { %v2415_v31 = vpop.permute.xlu0 %2414  ;;  %v2421_v26 = vpop.permute.xlu1 %2420 }
 0x5b9   :  { %v2417_v58 = vmul.f32 %v2415_v31, %v4963_v47  ;;  %v2433_v16 = vmul.f32 %v2415_v31, %v4961_v57  ;;  %v2423_v15 = vmul.f32 %v2421_v26, %v4961_v57  ;;  %v2431_v37 = vmul.f32 %v2421_v26, %v4963_v47 }
 0x5bb   :  { %v2418_v9 = vadd.f32 %v2417_v58, %v2412_v2  ;;  %v2435_v18 = vsub.f32 %v2433_v16, %v2434_v39  ;;  %v2429_v4 = vsub.f32 %v2423_v15, %v2428_v34  ;;  %v2432_v22 = vadd.f32 %v2431_v37, %v2430_v35 }
 0x5bc   :  { %v5067_v39 = vadd.s32 128, %v5064_v13  ;;  %v2491_v34 = vshra.s32 %v5064_v13, 7  ;;  %v2521_v16 = vshra.s32 %v5064_v13, 6 }
 0x5bd   :  { %v2436_v17 = vmul.f32 %v2418_v9, %v4985_v51  ;;  %v2440_v49 = vmul.f32 %v2418_v9, %v4983_v50  ;;  %v2445_v52 = vmul.f32 %v2435_v18, %v4985_v51  ;;  %v2437_v27 = vmul.f32 %v2429_v4, %v4983_v50 }
 0x5be   :  { %v2439_v53 = vmul.f32 %v2429_v4, %v4985_v51  ;;  %v2446_v54 = vmul.f32 %v2432_v22, %v4983_v50  ;;  %v2443_v60 = vmul.f32 %v2435_v18, %v4983_v50  ;;  %v2442_v61 = vmul.f32 %v2432_v22, %v4985_v51 }
 0x5bf   :  { %v2438_v59 = vadd.f32 %v2437_v27, %v2436_v17  ;;  %v2492_v35 = vshra.s32 %v5067_v39, 7  ;;  %v2493_v26 = vand.u32 1, %v2491_v34  ;;  %v2522_v15 = vshra.s32 %v5067_v39, 6  ;;  %v2958_v34 = vld [vmem:[#allocation10 + $0x168] sm:$0xff] }
 0x5c0   :  { %v2447_v55 = vadd.f32 %v2446_v54, %v2445_v52  ;;  %v2441_v56 = vsub.f32 %v2439_v53, %v2440_v49  ;;  %v2444_v62 = vsub.f32 %v2442_v61, %v2443_v60  ;;  %v2523_v22 = vand.u32 1, %v2521_v16  ;;  %v3018_v16 = vld [vmem:[#allocation10 + $0x348] sm:$0xff] }
 0x5c1   :  { %2449 = vrot.lane.b32.xlu0 %v2438_v59, %s3760_s25  ;;  %v2494_v58 = vand.u32 1, %v2492_v35  ;;  %vm2495_vm11 = vcmp.eq.s32.totalorder %v2493_v26, 0  ;;  %v2524_v17 = vand.u32 1, %v2522_v15  ;;  %v3022_v35 = vld [vmem:[#allocation10 + $0x368] sm:$0xff]  ;;  %v3017_v26 = vld [vmem:[#allocation10 + $0x340] sm:$0xff] }
 0x5c2   :  { %2454 = vrot.lane.b32.xlu1 %v2447_v55, %s3760_s25  ;;  %2460 = vrot.lane.b32.xlu2 %v2441_v56, %s3760_s25  ;;  %vm2525_vm13 = vcmp.eq.s32.totalorder %v2523_v22, 0  ;;  %v3014_v22 = vld [vmem:[#allocation10 + $0x328] sm:$0xff] }
 0x5c3   :  { %vm2496_vm12 = vcmp.eq.s32.totalorder %v2494_v58, 0  ;;  %vm2526_vm14 = vcmp.eq.s32.totalorder %v2524_v17, 0  ;;  %v2954_v58 = vld [vmem:[#allocation10 + $0x148] sm:$0xff] }
 0x5c9   :  { %2465 = vrot.lane.b32.xlu0 %v2444_v62, %s3760_s25 }
 0x61c   :  { %v2461_v5 = vpop.permute.xlu2 %2460 }
 0x61d   :  { %v2463_v11 = vmul.f32 %v2461_v5, %v4961_v57  ;;  %v2471_v7 = vmul.f32 %v2461_v5, %v4963_v47 }
 0x633   :  { %v2450_v0 = vpop.permute.xlu0 %2449 }
 0x634   :  { %v2455_v14 = vpop.permute.xlu1 %2454  ;;  %v2452_v3 = vmul.f32 %v2450_v0, %v4961_v57  ;;  %v2474_v1 = vmul.f32 %v2450_v0, %v4963_v47  ;;  %v2559_v0 = vshra.s32 %v5064_v13, 5 }
 0x635   :  { %v2457_v38 = vmul.f32 %v2455_v14, %v4963_v47  ;;  %v2473_v40 = vmul.f32 %v2455_v14, %v4961_v57  ;;  %v2560_v14 = vshra.s32 %v5067_v39, 5 }
 0x637   :  { %v2458_v45 = vadd.f32 %v2457_v38, %v2452_v3  ;;  %v2475_v12 = vsub.f32 %v2473_v40, %v2474_v1 }
 0x639   :  { %v2476_v42 = vmul.f32 %v2458_v45, %v4985_v51  ;;  %v2480_v21 = vmul.f32 %v2458_v45, %v4983_v50  ;;  %v2483_v19 = vmul.f32 %v2475_v12, %v4983_v50  ;;  %v2485_v29 = vmul.f32 %v2475_v12, %v4985_v51 }
 0x63b   :  { %v2466_v6 = vpop.permute.xlu0 %2465 }
 0x63c   :  { %v2468_v8 = vmul.f32 %v2466_v6, %v4963_v47  ;;  %v2470_v48 = vmul.f32 %v2466_v6, %v4961_v57  ;;  %v5080_v6 = vand.u32 1, %v2559_v0  ;;  %v3001_v0 = vld [vmem:[#allocation10 + $0x2c0] sm:$0xff] }
 0x63e   :  { %v2469_v10 = vsub.f32 %v2463_v11, %v2468_v8  ;;  %v2472_v41 = vadd.f32 %v2471_v7, %v2470_v48  ;;  %v5082_v7 = vand.u32 1, %v2560_v14  ;;  %vm2563_vm15 = vcmp.eq.s32.totalorder %v5080_v6, 0 }
 0x640   :  { %v2477_v43 = vmul.f32 %v2469_v10, %v4983_v50  ;;  %v2479_v20 = vmul.f32 %v2469_v10, %v4985_v51  ;;  %v2482_v24 = vmul.f32 %v2472_v41, %v4985_v51  ;;  %v2486_v57 = vmul.f32 %v2472_v41, %v4983_v50 }
 0x641   :  { %v3765_v50 = vmov 60   ;;  %v3766_v51 = vmov 61   ;;  %vm2564_vm0 = vcmp.eq.s32.totalorder %v5082_v7, 0  ;;  %v2998_v7 = vld [vmem:[#allocation10 + $0x2a8] sm:$0xff] }
 0x642   :  { %v2478_v28 = vadd.f32 %v2477_v43, %v2476_v42  ;;  %v5053_v36 = vsub.f32 %v2479_v20, %v2480_v21  ;;  %v2484_v47 = vsub.f32 %v2482_v24, %v2483_v19  ;;  %v2487_v46 = vadd.f32 %v2486_v57, %v2485_v29  ;;  %v2973_v42 = vld [vmem:[#allocation10 + $0x1e0] sm:$0xff]  ;;  %v2974_v19 = vld [vmem:[#allocation10 + $0x1e8] sm:$0xff] }
 0x643   :  { %v3037_v21 = vld [vmem:[#allocation10 + $0x3e0] sm:$0xff]  ;;  %3041 = vmatpush.msra.mxu2 %v2973_v42  ;;  %v3038_v43 = vld [vmem:[#allocation10 + $0x3e8] sm:$0xff]  ;;  %3081 = vmatpush.msrb.mxu0 %v2974_v19 }
 0x644   :  { %2504 = vperm.xlu2 %3539, %v2484_v47   ;;  %2511 = vperm.xlu0 %3540, %v5053_v36   ;;  %v2969_v20 = vld [vmem:[#allocation10 + $0x1c0] sm:$0xff]  ;;  %v2994_v19 = vld [vmem:[#allocation10 + $0x288] sm:$0xff] }
 0x645   :  { %2499 = vperm.xlu1 %3538, %v2478_v28   ;;  %3061 = vmatpush.msra.mxu3 %v3037_v21  ;;  %v3033_v24 = vld [vmem:[#allocation10 + $0x3c0] sm:$0xff]  ;;  %v2930_v21 = vld [vmem:[#allocation10 + $0x88] sm:$0xff] }
 0x646   :  { %3101 = vmatpush.msrb.mxu1 %v3038_v43  ;;  %3042 = vmatpush.msra.mxu2 %v2969_v20  ;;  %v2993_v42 = vld [vmem:[#allocation10 + $0x280] sm:$0xff] }
 0x647   :  { %3062 = vmatpush.msra.mxu3 %v3033_v24  ;;  %v2925_v20 = vld [vmem:[#allocation10 + $0x60] sm:$0xff] }
 0x648   :  { %v2989_v24 = vld [vmem:[#allocation10 + $0x260] sm:$0xff] }
 0x64c   :  { %3541 = vset.pattern.permute.xlu2 %v3762_v25  ;;  %3543 = vset.pattern.permute.xlu0 %v3762_v25 }
 0x64d   :  { %2516 = vperm.xlu1 %3538, %v2487_v46   ;;  %2542 = vperm.xlu0 %3543, %v2487_v46  }
 0x64e   :  { %2528 = vperm.xlu2 %3541, %v2478_v28  }
 0x655   :  { %3542 = vset.pattern.permute.xlu1 %v3762_v25  ;;  %3546 = vset.pattern.permute.xlu0 %v3763_v30  ;;  %v3029_v25 = vld [vmem:[#allocation10 + $0x3a0] sm:$0xff] }
 0x656   :  { %2538 = vperm.xlu2 %3541, %v5053_v36   ;;  %2532 = vperm.xlu1 %3542, %v2484_v47  }
 0x657   :  { %2592 = vperm.xlu0 %3546, %v2478_v28   ;;  %3063 = vmatpush.msra.mxu3 %v3029_v25  ;;  %v2921_v25 = vld [vmem:[#allocation10 + $0x40] sm:$0xff] }
 0x65e   :  { %3545 = vset.pattern.permute.xlu2 %v3764_v32  ;;  %3544 = vset.pattern.permute.xlu1 %v3764_v32  ;;  %v3030_v32 = vld [vmem:[#allocation10 + $0x3a8] sm:$0xff] }
 0x65f   :  { %3550 = vset.pattern.permute.xlu0 %v3765_v50  ;;  %2570 = vperm.xlu2 %3545, %v2484_v47  }
 0x660   :  { %2566 = vperm.xlu1 %3544, %v2478_v28   ;;  %2646 = vperm.xlu0 %3550, %v2484_v47  }
 0x667   :  { %2580 = vperm.xlu2 %3545, %v2487_v46  }
 0x668   :  { %2576 = vperm.xlu1 %3544, %v5053_v36   ;;  %3554 = vset.pattern.permute.xlu0 %v3766_v51 }
 0x669   :  { %2678 = vperm.xlu0 %3554, %v5053_v36  }
 0x66f   :  { %3548 = vset.pattern.permute.xlu2 %v3763_v30 }
 0x670   :  { %3547 = vset.pattern.permute.xlu1 %v3763_v30  ;;  %2602 = vperm.xlu2 %3548, %v5053_v36   ;;  %v2966_v30 = vld [vmem:[#allocation10 + $0x1a8] sm:$0xff] }
 0x671   :  { %2596 = vperm.xlu1 %3547, %v2484_v47   ;;  %3557 = vset.pattern.permute.xlu0 %v3767_v33 }
 0x672   :  { %2720 = vperm.xlu0 %3557, %v2487_v46  }
 0x678   :  { %3549 = vset.pattern.permute.xlu2 %v3765_v50 }
 0x679   :  { %2606 = vperm.xlu1 %3547, %v2487_v46   ;;  %2642 = vperm.xlu2 %3549, %v2478_v28  }
 0x67a   :  { %3560 = vset.pattern.permute.xlu0 %v3768_v44 }
 0x681   :  { %3551 = vset.pattern.permute.xlu1 %v3765_v50  ;;  %2656 = vperm.xlu2 %3549, %v2487_v46   ;;  %v2961_v50 = vld [vmem:[#allocation10 + $0x180] sm:$0xff] }
 0x682   :  { %2652 = vperm.xlu1 %3551, %v5053_v36  }
 0x689   :  { %3553 = vset.pattern.permute.xlu2 %v3766_v51 }
 0x68a   :  { %3552 = vset.pattern.permute.xlu1 %v3766_v51  ;;  %2672 = vperm.xlu2 %3553, %v2484_v47   ;;  %v3025_v51 = vld [vmem:[#allocation10 + $0x380] sm:$0xff] }
 0x68b   :  { %2668 = vperm.xlu1 %3552, %v2478_v28   ;;  %3064 = vmatpush.msra.mxu3 %v3025_v51  ;;  %v2917_v51 = vld [vmem:[#allocation10 + $0x20] sm:$0xff] }
 0x692   :  { %3555 = vset.pattern.permute.xlu2 %v3767_v33 }
 0x693   :  { %2682 = vperm.xlu1 %3552, %v2487_v46   ;;  %2706 = vperm.xlu2 %3555, %v2478_v28  }
 0x69b   :  { %3556 = vset.pattern.permute.xlu1 %v3767_v33  ;;  %2716 = vperm.xlu2 %3555, %v5053_v36   ;;  %v2962_v33 = vld [vmem:[#allocation10 + $0x188] sm:$0xff] }
 0x69c   :  { %2710 = vperm.xlu1 %3556, %v2484_v47  }
 0x69e   :  { %v2505_v2 = vpop.permute.xlu2 %2504 }
 0x6a3   :  { %3559 = vset.pattern.permute.xlu2 %v3768_v44 }
 0x6a4   :  { %3558 = vset.pattern.permute.xlu1 %v3768_v44  ;;  %2734 = vperm.xlu2 %3559, %v2484_v47   ;;  %v3034_v47 = vld [vmem:[#allocation10 + $0x3c8] sm:$0xff] }
 0x6a5   :  { %2730 = vperm.xlu1 %3558, %v2478_v28   ;;  %v2970_v28 = vld [vmem:[#allocation10 + $0x1c8] sm:$0xff]  ;;  %3102 = vmatpush.msrb.mxu1 %v3034_v47 }
 0x6a6   :  { %3082 = vmatpush.msrb.mxu0 %v2970_v28  ;;  %v3026_v44 = vld [vmem:[#allocation10 + $0x388] sm:$0xff] }
 0x6a7   :  { %3103 = vmatpush.msrb.mxu1 %v3030_v32  ;;  %v2926_v28 = vld [vmem:[#allocation10 + $0x68] sm:$0xff] }
 0x6a8   :  { %v2529_v31 = vpop.permute.xlu2 %2528  ;;  %3083 = vmatpush.msrb.mxu0 %v2966_v30  ;;  %v2985_v30 = vld [vmem:[#allocation10 + $0x240] sm:$0xff]  ;;  %v2922_v32 = vld [vmem:[#allocation10 + $0x48] sm:$0xff] }
 0x6a9   :  { %3104 = vmatpush.msrb.mxu1 %v3026_v44 }
 0x6aa   :  { %3084 = vmatpush.msrb.mxu0 %v2962_v33  ;;  %v2981_v33 = vld [vmem:[#allocation10 + $0x220] sm:$0xff] }
 0x6ab   :  { %3105 = vmatpush.msrb.mxu1 %v3022_v35  ;;  %v2918_v35 = vld [vmem:[#allocation10 + $0x28] sm:$0xff] }
 0x6ac   :  { %2744 = vperm.xlu2 %3559, %v2487_v46   ;;  %v2965_v46 = vld [vmem:[#allocation10 + $0x1a0] sm:$0xff]  ;;  %3085 = vmatpush.msrb.mxu0 %v2958_v34 }
 0x6ad   :  { %2740 = vperm.xlu1 %3558, %v5053_v36   ;;  %3043 = vmatpush.msra.mxu2 %v2965_v46  ;;  %v2990_v46 = vld [vmem:[#allocation10 + $0x268] sm:$0xff] }
 0x6ae   :  { %3086 = vmatpush.msrb.mxu0 %v2954_v58  ;;  %3106 = vmatpush.msrb.mxu1 %v3018_v16 }
 0x6af   :  { %3044 = vmatpush.msra.mxu2 %v2961_v50  ;;  %v2986_v50 = vld [vmem:[#allocation10 + $0x248] sm:$0xff] }
 0x6b0   :  { %v2539_v49 = vpop.permute.xlu2 %2538  ;;  %3107 = vmatpush.msrb.mxu1 %v3014_v22 }
 0x6b1   :  { %3045 = vmatpush.msra.mxu2 %v2957_v23 }
 0x6b6   :  { %v2512_v37 = vpop.permute.xlu0 %2511 }
 0x6b7   :  { %v2500_v9 = vpop.permute.xlu1 %2499 }
 0x6b8   :  { %v2507_v18 = vsel %vm2495_vm11, %v2500_v9, %v2505_v2  ;;  %v2508_v4 = vsel %vm2496_vm12, %v2500_v9, %v2505_v2  ;;  %v3021_v2 = vld [vmem:[#allocation10 + $0x360] sm:$0xff] }
 0x6b9   :  { %v2571_v63 = vpop.permute.xlu2 %2570  ;;  %3065 = vmatpush.msra.mxu3 %v3021_v2  ;;  %v3013_v9 = vld [vmem:[#allocation10 + $0x320] sm:$0xff] }
 0x6bb   :  { %3066 = vmatpush.msra.mxu3 %v3017_v26 }
 0x6bd   :  { %3067 = vmatpush.msra.mxu3 %v3013_v9 }
 0x6bf   :  { %v2517_v52 = vpop.permute.xlu1 %2516  ;;  %v2543_v27 = vpop.permute.xlu0 %2542 }
 0x6c0   :  { %v2519_v53 = vsel %vm2495_vm11, %v2512_v37, %v2517_v52  ;;  %v2520_v54 = vsel %vm2496_vm12, %v2512_v37, %v2517_v52  ;;  %v2545_v55 = vsel %vm2525_vm13, %v2539_v49, %v2543_v27  ;;  %v2546_v56 = vsel %vm2526_vm14, %v2539_v49, %v2543_v27  ;;  %v2949_v37 = vld [vmem:[#allocation10 + $0x120] sm:$0xff] }
 0x6c1   :  { %v2549_v59 = vmul.f32 %v2545_v55, %v2519_v53  ;;  %v2550_v60 = vmul.f32 %v2546_v56, %v2520_v54  ;;  %v2553_v61 = vmul.f32 %v2545_v55, %v2507_v18  ;;  %v2554_v62 = vmul.f32 %v2546_v56, %v2508_v4  ;;  %v2581_v41 = vpop.permute.xlu2 %2580  ;;  %v2945_v52 = vld [vmem:[#allocation10 + $0x100] sm:$0xff] }
 0x6c2   :  { %v3009_v27 = vld [vmem:[#allocation10 + $0x300] sm:$0xff]  ;;  %v2585_v55 = vshra.s32 %v5064_v13, 4  ;;  %v2586_v56 = vshra.s32 %v5067_v39, 4 }
 0x6c3   :  { %3068 = vmatpush.msra.mxu3 %v3009_v27  ;;  %v2977_v27 = vld [vmem:[#allocation10 + $0x200] sm:$0xff] }
 0x6c4   :  { %v2587_v14 = vand.u32 1, %v2585_v55 }
 0x6c6   :  { %vm2589_vm1 = vcmp.eq.s32.totalorder %v2587_v14, 0 }
 0x6c8   :  { %v2533_v38 = vpop.permute.xlu1 %2532 }
 0x6c9   :  { %v2535_v3 = vsel %vm2525_vm13, %v2529_v31, %v2533_v38  ;;  %v2536_v5 = vsel %vm2526_vm14, %v2529_v31, %v2533_v38  ;;  %v2953_v31 = vld [vmem:[#allocation10 + $0x140] sm:$0xff]  ;;  %v2588_v38 = vand.u32 1, %v2586_v56  ;;  %v2593_v43 = vpop.permute.xlu0 %2592 }
 0x6ca   :  { %v2547_v40 = vmul.f32 %v2535_v3, %v2507_v18  ;;  %v2548_v1 = vmul.f32 %v2536_v5, %v2508_v4  ;;  %v2555_v11 = vmul.f32 %v2535_v3, %v2519_v53  ;;  %v2556_v45 = vmul.f32 %v2536_v5, %v2520_v54  ;;  %v5102_v15 = vpop.permute.xlu2 %2602  ;;  %3046 = vmatpush.msra.mxu2 %v2953_v31  ;;  %v2950_v4 = vld [vmem:[#allocation10 + $0x128] sm:$0xff] }
 0x6cb   :  { %v2946_v53 = vld [vmem:[#allocation10 + $0x108] sm:$0xff]  ;;  %3087 = vmatpush.msrb.mxu0 %v2950_v4  ;;  %vm2590_vm2 = vcmp.eq.s32.totalorder %v2588_v38, 0 }
 0x6cc   :  { %v5084_v12 = vsub.f32 %v2547_v40, %v2549_v59  ;;  %v5086_v8 = vsub.f32 %v2548_v1, %v2550_v60  ;;  %v5088_v48 = vadd.f32 %v2555_v11, %v2553_v61  ;;  %v5090_v10 = vadd.f32 %v2556_v45, %v2554_v62  ;;  %3047 = vmatpush.msra.mxu2 %v2949_v37  ;;  %v3010_v54 = vld [vmem:[#allocation10 + $0x308] sm:$0xff]  ;;  %v2941_v59 = vld [vmem:[#allocation10 + $0xe0] sm:$0xff] }
 0x6cd   :  { %3088 = vmatpush.msrb.mxu0 %v2946_v53  ;;  %3108 = vmatpush.msrb.mxu1 %v3010_v54  ;;  %v3005_v60 = vld [vmem:[#allocation10 + $0x2e0] sm:$0xff]  ;;  %v2942_v61 = vld [vmem:[#allocation10 + $0xe8] sm:$0xff] }
 0x6ce   :  { %3048 = vmatpush.msra.mxu2 %v2945_v52  ;;  %3069 = vmatpush.msra.mxu3 %v3005_v60  ;;  %v3006_v62 = vld [vmem:[#allocation10 + $0x2e8] sm:$0xff]  ;;  %v2933_v40 = vld [vmem:[#allocation10 + $0xa0] sm:$0xff]  ;;  %v2975_v60 = vld [vmem:[#allocation10 + $0x1f0] sm:$0xff] }
 0x6cf   :  { %3089 = vmatpush.msrb.mxu0 %v2942_v61  ;;  %3109 = vmatpush.msrb.mxu1 %v3006_v62  ;;  %v2938_v3 = vld [vmem:[#allocation10 + $0xc8] sm:$0xff]  ;;  %v2997_v1 = vld [vmem:[#allocation10 + $0x2a0] sm:$0xff] }
 0x6d0   :  { %3049 = vmatpush.msra.mxu2 %v2941_v59  ;;  %v3002_v5 = vld [vmem:[#allocation10 + $0x2c8] sm:$0xff]  ;;  %3070 = vmatpush.msra.mxu3 %v3001_v0  ;;  %v2913_v37 = vld [vmem:[#allocation10] sm:$0xff]  ;;  %v2971_v0 = vld [vmem:[#allocation10 + $0x1d0] sm:$0xff] }
 0x6d1   :  { %v2934_v11 = vld [vmem:[#allocation10 + $0xa8] sm:$0xff]  ;;  %3090 = vmatpush.msrb.mxu0 %v2938_v3  ;;  %3110 = vmatpush.msrb.mxu1 %v3002_v5 }
 0x6d2   :  { %v2567_v36 = vpop.permute.xlu1 %2566  ;;  %3071 = vmatpush.msra.mxu3 %v2997_v1  ;;  %v2982_v31 = vld [vmem:[#allocation10 + $0x228] sm:$0xff]  ;;  %v2972_v1 = vld [vmem:[#allocation10 + $0x1d8] sm:$0xff] }
 0x6d3   :  { %v5096_v57 = vsel %vm2563_vm15, %v2567_v36, %v2571_v63  ;;  %v5100_v29 = vsel %vm2564_vm0, %v2567_v36, %v2571_v63  ;;  %v2937_v63 = vld [vmem:[#allocation10 + $0xc0] sm:$0xff]  ;;  %v5114_v45 = vpop.permute.xlu2 %2642  ;;  %3091 = vmatpush.msrb.mxu0 %v2934_v11  ;;  %3111 = vmatpush.msrb.mxu1 %v2998_v7  ;;  %v2914_v53 = vld [vmem:[#allocation10 + $0x8] sm:$0xff]  ;;  %v3036_v7 = vld [vmem:[#allocation10 + $0x3d8] sm:$0xff] }
 0x6d4   :  { %3050 = vmatpush.msra.mxu2 %v2937_v63  ;;  %3072 = vmatpush.msra.mxu3 %v2993_v42  ;;  %v2978_v54 = vld [vmem:[#allocation10 + $0x208] sm:$0xff]  ;;  %v3040_v63 = vld [vmem:[#allocation10 + $0x3f8] sm:$0xff] }
 0x6d5   :  { %3092 = vmatpush.msrb.mxu0 %v2930_v21  ;;  %3112 = vmatpush.msrb.mxu1 %v2994_v19  ;;  %v3032_v21 = vld [vmem:[#allocation10 + $0x3b8] sm:$0xff]  ;;  %v2963_v19 = vld [vmem:[#allocation10 + $0x190] sm:$0xff] }
 0x6d6   :  { %3051 = vmatpush.msra.mxu2 %v2933_v40  ;;  %3073 = vmatpush.msra.mxu3 %v2989_v24  ;;  %v3035_v40 = vld [vmem:[#allocation10 + $0x3d0] sm:$0xff] }
 0x6d7   :  { %3093 = vmatpush.msrb.mxu0 %v2926_v28  ;;  %3113 = vmatpush.msrb.mxu1 %v2990_v46  ;;  %v3028_v28 = vld [vmem:[#allocation10 + $0x398] sm:$0xff] }
 0x6d8   :  { %3074 = vmatpush.msra.mxu3 %v2985_v30  ;;  %v2960_v46 = vld [vmem:[#allocation10 + $0x178] sm:$0xff]  ;;  %v2955_v30 = vld [vmem:[#allocation10 + $0x150] sm:$0xff] }
 0x6d9   :  { %3094 = vmatpush.msrb.mxu0 %v2922_v32  ;;  %3114 = vmatpush.msrb.mxu1 %v2986_v50  ;;  %v3019_v32 = vld [vmem:[#allocation10 + $0x350] sm:$0xff]  ;;  %v2956_v50 = vld [vmem:[#allocation10 + $0x158] sm:$0xff] }
 0x6da   :  { %v2577_v18 = vpop.permute.xlu1 %2576  ;;  %3075 = vmatpush.msra.mxu3 %v2981_v33  ;;  %v2951_v33 = vld [vmem:[#allocation10 + $0x130] sm:$0xff] }
 0x6db   :  { %v5106_v17 = vsel %vm2563_vm15, %v2577_v18, %v2581_v41  ;;  %v5110_v49 = vsel %vm2564_vm0, %v2577_v18, %v2581_v41  ;;  %v2929_v41 = vld [vmem:[#allocation10 + $0x80] sm:$0xff]  ;;  %v5126_v9 = vpop.permute.xlu2 %2656  ;;  %3095 = vmatpush.msrb.mxu0 %v2918_v35  ;;  %3115 = vmatpush.msrb.mxu1 %v2982_v31  ;;  %v2947_v35 = vld [vmem:[#allocation10 + $0x110] sm:$0xff] }
 0x6dc   :  { %3052 = vmatpush.msra.mxu2 %v2929_v41  ;;  %3076 = vmatpush.msra.mxu3 %v2977_v27  ;;  %v2967_v41 = vld [vmem:[#allocation10 + $0x1b0] sm:$0xff] }
 0x6dd   :  { %3096 = vmatpush.msrb.mxu0 %v2914_v53  ;;  %3116 = vmatpush.msrb.mxu1 %v2978_v54  ;;  %v3011_v31 = vld [vmem:[#allocation10 + $0x310] sm:$0xff]  ;;  %v2940_v53 = vld [vmem:[#allocation10 + $0xd8] sm:$0xff] }
 0x6de   :  { %3053 = vmatpush.msra.mxu2 %v2925_v20  ;;  %v2964_v20 = vld [vmem:[#allocation10 + $0x198] sm:$0xff]  ;;  %v3003_v27 = vld [vmem:[#allocation10 + $0x2d0] sm:$0xff] }
 0x6df   :  { %3181 = vmatpush.msra.mxu1 %v3040_v63  ;;  %v3004_v54 = vld [vmem:[#allocation10 + $0x2d8] sm:$0xff]  ;;  %v2991_v63 = vld [vmem:[#allocation10 + $0x270] sm:$0xff] }
 0x6e0   :  { %3054 = vmatpush.msra.mxu2 %v2921_v25  ;;  %v3024_v25 = vld [vmem:[#allocation10 + $0x378] sm:$0xff] }
 0x6e1   :  { %3182 = vmatpush.msra.mxu1 %v3036_v7  ;;  %v2919_v7 = vld [vmem:[#allocation10 + $0x30] sm:$0xff] }
 0x6e2   :  { %3055 = vmatpush.msra.mxu2 %v2917_v51  ;;  %v3020_v51 = vld [vmem:[#allocation10 + $0x358] sm:$0xff] }
 0x6e3   :  { %v2597_v6 = vpop.permute.xlu1 %2596  ;;  %3183 = vmatpush.msra.mxu1 %v3032_v21  ;;  %v2984_v21 = vld [vmem:[#allocation10 + $0x238] sm:$0xff] }
 0x6e4   :  { %v2599_v36 = vsel %vm2589_vm1, %v2593_v43, %v2597_v6  ;;  %v2600_v47 = vsel %vm2590_vm2, %v2593_v43, %v2597_v6  ;;  %3056 = vmatpush.msra.mxu2 %v2913_v37  ;;  %v3027_v43 = vld [vmem:[#allocation10 + $0x390] sm:$0xff]  ;;  %v5150_v24 = vpop.permute.xlu2 %2672 }
 0x6e5   :  { %v2611_v44 = vmul.f32 %v2599_v36, %v5096_v57  ;;  %v2612_v23 = vmul.f32 %v2600_v47, %v5100_v29  ;;  %v2619_v2 = vmul.f32 %v2599_v36, %v5106_v17  ;;  %v2620_v26 = vmul.f32 %v2600_v47, %v5110_v49  ;;  %v2959_v36 = vld [vmem:[#allocation10 + $0x170] sm:$0xff]  ;;  %3184 = vmatpush.msra.mxu1 %v3028_v28 }
 0x6e6   :  { %3121 = vmatpush.msrb.mxu2 %v2975_v60  ;;  %v3023_v47 = vld [vmem:[#allocation10 + $0x370] sm:$0xff]  ;;  %v3000_v60 = vld [vmem:[#allocation10 + $0x2b8] sm:$0xff] }
 0x6e7   :  { %3185 = vmatpush.msra.mxu1 %v3024_v25  ;;  %v3007_v37 = vld [vmem:[#allocation10 + $0x2f0] sm:$0xff]  ;;  %v2980_v25 = vld [vmem:[#allocation10 + $0x218] sm:$0xff] }
 0x6e8   :  { %3122 = vmatpush.msrb.mxu2 %v2971_v0  ;;  %v2928_v0 = vld [vmem:[#allocation10 + $0x78] sm:$0xff]  ;;  %v2979_v28 = vld [vmem:[#allocation10 + $0x210] sm:$0xff] }
 0x6e9   :  { %3186 = vmatpush.msra.mxu1 %v3020_v51 }
 0x6ea   :  { %3123 = vmatpush.msrb.mxu2 %v2967_v41  ;;  %v2983_v41 = vld [vmem:[#allocation10 + $0x230] sm:$0xff] }
 0x6eb   :  { %v2607_v34 = vpop.permute.xlu1 %2606 }
 0x6ec   :  { %v2609_v58 = vsel %vm2589_vm1, %v5102_v15, %v2607_v34  ;;  %v2610_v16 = vsel %vm2590_vm2, %v5102_v15, %v2607_v34  ;;  %3124 = vmatpush.msrb.mxu2 %v2963_v19  ;;  %v3016_v34 = vld [vmem:[#allocation10 + $0x338] sm:$0xff]  ;;  %v2661_v19 = vshra.s32 %v5064_v13, 2 }
 0x6ed   :  { %v2613_v18 = vmul.f32 %v2609_v58, %v5106_v17  ;;  %v2614_v4 = vmul.f32 %v2610_v16, %v5110_v49  ;;  %v2617_v22 = vmul.f32 %v2609_v58, %v5096_v57  ;;  %v2618_v52 = vmul.f32 %v2610_v16, %v5100_v29  ;;  %v3039_v17 = vld [vmem:[#allocation10 + $0x3f0] sm:$0xff]  ;;  %v2976_v49 = vld [vmem:[#allocation10 + $0x1f8] sm:$0xff]  ;;  %3187 = vmatpush.msra.mxu1 %v3016_v34 }
 0x6ee   :  { %3141 = vmatpush.msrb.mxu3 %v3039_v17  ;;  %3161 = vmatpush.msra.mxu0 %v2976_v49  ;;  %v3012_v58 = vld [vmem:[#allocation10 + $0x318] sm:$0xff]  ;;  %v2943_v16 = vld [vmem:[#allocation10 + $0xf0] sm:$0xff]  ;;  %v5158_v17 = vpop.permute.xlu0 %2646  ;;  %v2663_v51 = vand.u32 1, %v2661_v19 }
 0x6ef   :  { %v2615_v15 = vsub.f32 %v2611_v44, %v2613_v18  ;;  %v2616_v55 = vsub.f32 %v2612_v23, %v2614_v4  ;;  %v2621_v56 = vadd.f32 %v2619_v2, %v2617_v22  ;;  %v2622_v59 = vadd.f32 %v2620_v26, %v2618_v52  ;;  %3125 = vmatpush.msrb.mxu2 %v2959_v36  ;;  %v3015_v44 = vld [vmem:[#allocation10 + $0x330] sm:$0xff]  ;;  %v2952_v2 = vld [vmem:[#allocation10 + $0x138] sm:$0xff]  ;;  %v5154_v18 = vpop.permute.xlu2 %2706 }
 0x6f0   :  { %3142 = vmatpush.msrb.mxu3 %v3035_v40  ;;  %3162 = vmatpush.msra.mxu0 %v2972_v1  ;;  %v2948_v26 = vld [vmem:[#allocation10 + $0x118] sm:$0xff]  ;;  %v2939_v52 = vld [vmem:[#allocation10 + $0xd0] sm:$0xff]  ;;  %v2635_v36 = vshra.s32 %v5064_v13, 3  ;;  %vm2665_vm3 = vcmp.eq.s32.totalorder %v2663_v51, 0 }
 0x6f1   :  { %v2623_v57 = vmul.f32 %v2615_v15, %v5084_v12  ;;  %v2624_v29 = vmul.f32 %v2616_v55, %v5086_v8  ;;  %v2625_v61 = vmul.f32 %v2621_v56, %v5088_v48  ;;  %v2626_v62 = vmul.f32 %v2622_v59, %v5090_v10  ;;  %3126 = vmatpush.msrb.mxu2 %v2955_v30  ;;  %v2944_v4 = vld [vmem:[#allocation10 + $0xf8] sm:$0xff]  ;;  %v2931_v49 = vld [vmem:[#allocation10 + $0x90] sm:$0xff] }
 0x6f2   :  { %v2629_v14 = vmul.f32 %v2621_v56, %v5084_v12  ;;  %v2630_v38 = vmul.f32 %v2622_v59, %v5086_v8  ;;  %v2631_v3 = vmul.f32 %v2615_v15, %v5088_v48  ;;  %v2632_v5 = vmul.f32 %v2616_v55, %v5090_v10  ;;  %v3031_v48 = vld [vmem:[#allocation10 + $0x3b0] sm:$0xff]  ;;  %v2968_v10 = vld [vmem:[#allocation10 + $0x1b8] sm:$0xff]  ;;  %3188 = vmatpush.msra.mxu1 %v3012_v58 }
 0x6f3   :  { %v5140_v11 = vsub.f32 %v2623_v57, %v2625_v61  ;;  %v5142_v6 = vsub.f32 %v2624_v29, %v2626_v62  ;;  %3143 = vmatpush.msrb.mxu3 %v3031_v48  ;;  %3163 = vmatpush.msra.mxu0 %v2968_v10  ;;  %v3008_v22 = vld [vmem:[#allocation10 + $0x2f8] sm:$0xff]  ;;  %v2935_v15 = vld [vmem:[#allocation10 + $0xb0] sm:$0xff]  ;;  %v2726_v58 = vand.u32 1, %v5067_v39 }
 0x6f4   :  { %v5144_v42 = vadd.f32 %v2631_v3, %v2629_v14  ;;  %v5146_v12 = vadd.f32 %v2632_v5, %v2630_v38  ;;  %v5148_v8 = vpop.permute.xlu1 %2652  ;;  %3127 = vmatpush.msrb.mxu2 %v2951_v33  ;;  %3189 = vmatpush.msra.mxu1 %v3008_v22  ;;  %v2999_v56 = vld [vmem:[#allocation10 + $0x2b0] sm:$0xff]  ;;  %v2936_v59 = vld [vmem:[#allocation10 + $0xb8] sm:$0xff] }
 0x6f5   :  { %3144 = vmatpush.msrb.mxu3 %v3027_v43  ;;  %3164 = vmatpush.msra.mxu0 %v2964_v20  ;;  %v2995_v57 = vld [vmem:[#allocation10 + $0x290] sm:$0xff]  ;;  %v2932_v29 = vld [vmem:[#allocation10 + $0x98] sm:$0xff]  ;;  %v2662_v43 = vshra.s32 %v5067_v39, 2  ;;  %vm5176_vm10 = vcmp.eq.s32.totalorder %v2726_v58, 0 }
 0x6f6   :  { %3128 = vmatpush.msrb.mxu2 %v2947_v35  ;;  %3190 = vmatpush.msra.mxu1 %v3004_v54  ;;  %v2996_v61 = vld [vmem:[#allocation10 + $0x298] sm:$0xff]  ;;  %v2927_v62 = vld [vmem:[#allocation10 + $0x70] sm:$0xff]  ;;  %v2679_v30 = vpop.permute.xlu0 %2678 }
 0x6f7   :  { %3145 = vmatpush.msrb.mxu3 %v3023_v47  ;;  %3165 = vmatpush.msra.mxu0 %v2960_v46  ;;  %v2992_v14 = vld [vmem:[#allocation10 + $0x278] sm:$0xff]  ;;  %v5160_v38 = vpop.permute.xlu2 %2716  ;;  %v2923_v3 = vld [vmem:[#allocation10 + $0x50] sm:$0xff]  ;;  %v2636_v47 = vshra.s32 %v5067_v39, 3  ;;  %v2664_v33 = vand.u32 1, %v2662_v43 }
 0x6f8   :  { %3129 = vmatpush.msrb.mxu2 %v2943_v16  ;;  %3191 = vmatpush.msra.mxu1 %v3000_v60  ;;  %v2987_v5 = vld [vmem:[#allocation10 + $0x250] sm:$0xff]  ;;  %v2924_v40 = vld [vmem:[#allocation10 + $0x58] sm:$0xff] }
 0x6f9   :  { %3146 = vmatpush.msrb.mxu3 %v3019_v32  ;;  %3166 = vmatpush.msra.mxu0 %v2956_v50  ;;  %v2988_v1 = vld [vmem:[#allocation10 + $0x258] sm:$0xff]  ;;  %v2915_v20 = vld [vmem:[#allocation10 + $0x10] sm:$0xff]  ;;  %v2699_v32 = vshra.s32 %v5064_v13, 1  ;;  %v2700_v50 = vshra.s32 %v5067_v39, 1  ;;  %vm2666_vm4 = vcmp.eq.s32.totalorder %v2664_v33, 0 }
 0x6fa   :  { %3130 = vmatpush.msrb.mxu2 %v2939_v52  ;;  %3192 = vmatpush.msra.mxu1 %v2996_v61  ;;  %v2920_v10 = vld [vmem:[#allocation10 + $0x38] sm:$0xff] }
 0x6fb   :  { %3147 = vmatpush.msrb.mxu3 %v3015_v44  ;;  %3167 = vmatpush.msra.mxu0 %v2952_v2  ;;  %v2916_v46 = vld [vmem:[#allocation10 + $0x18] sm:$0xff]  ;;  %v2637_v44 = vand.u32 1, %v2635_v36  ;;  %v2638_v2 = vand.u32 1, %v2636_v47  ;;  %v2701_v34 = vand.u32 1, %v2699_v32  ;;  %v2702_v35 = vand.u32 1, %v2700_v50 }
 0x6fc   :  { %3131 = vmatpush.msrb.mxu2 %v2935_v15  ;;  %3193 = vmatpush.msra.mxu1 %v2992_v14 }
 0x6fd   :  { %v5152_v23 = vpop.permute.xlu1 %2668  ;;  %3148 = vmatpush.msrb.mxu3 %v3011_v31  ;;  %3168 = vmatpush.msra.mxu0 %v2948_v26  ;;  %v2725_v26 = vand.u32 1, %v5064_v13  ;;  %vm2639_vm5 = vcmp.eq.s32.totalorder %v2637_v44, 0  ;;  %vm2640_vm6 = vcmp.eq.s32.totalorder %v2638_v2, 0  ;;  %vm2703_vm7 = vcmp.eq.s32.totalorder %v2701_v34, 0 }
 0x6fe   :  { %3132 = vmatpush.msrb.mxu2 %v2931_v49  ;;  %3194 = vmatpush.msra.mxu1 %v2988_v1  ;;  %vm2704_vm8 = vcmp.eq.s32.totalorder %v2702_v35, 0  ;;  %v2675_v13 = vsel %vm2665_vm3, %v5152_v23, %v5150_v24  ;;  %v2676_v39 = vsel %vm2666_vm4, %v5152_v23, %v5150_v24  ;;  %v2721_v54 = vpop.permute.xlu0 %2720  ;;  %v2659_v15 = vsel %vm2639_vm5, %v5148_v8, %v5126_v9 }
 0x6ff   :  { %3149 = vmatpush.msrb.mxu3 %v3007_v37  ;;  %3169 = vmatpush.msra.mxu0 %v2944_v4  ;;  %v2735_v31 = vpop.permute.xlu2 %2734  ;;  %vm5172_vm9 = vcmp.eq.s32.totalorder %v2725_v26, 0  ;;  %v2723_v24 = vsel %vm2703_vm7, %v5160_v38, %v2721_v54  ;;  %v2724_v23 = vsel %vm2704_vm8, %v5160_v38, %v2721_v54  ;;  %v2695_v61 = vmul.f32 %v2675_v13, %v2659_v15 }
 0x700   :  { %3133 = vmatpush.msrb.mxu2 %v2927_v62  ;;  %3195 = vmatpush.msra.mxu1 %v2984_v21 }
 0x701   :  { %3150 = vmatpush.msrb.mxu3 %v3003_v27  ;;  %3170 = vmatpush.msra.mxu0 %v2940_v53  ;;  %v2649_v27 = vsel %vm2639_vm5, %v5114_v45, %v5158_v17  ;;  %v2650_v53 = vsel %vm2640_vm6, %v5114_v45, %v5158_v17 }
 0x702   :  { %3134 = vmatpush.msrb.mxu2 %v2923_v3  ;;  %3196 = vmatpush.msra.mxu1 %v2980_v25  ;;  %v2687_v45 = vmul.f32 %v2675_v13, %v2649_v27  ;;  %v2688_v60 = vmul.f32 %v2676_v39, %v2650_v53 }
 0x703   :  { %3151 = vmatpush.msrb.mxu3 %v2999_v56  ;;  %3171 = vmatpush.msra.mxu0 %v2936_v59  ;;  %v2660_v56 = vsel %vm2640_vm6, %v5148_v8, %v5126_v9 }
 0x704   :  { %3135 = vmatpush.msrb.mxu2 %v2919_v7  ;;  %v2696_v62 = vmul.f32 %v2676_v39, %v2660_v56 }
 0x705   :  { %v5156_v55 = vpop.permute.xlu1 %2682  ;;  %3152 = vmatpush.msrb.mxu3 %v2995_v57  ;;  %3172 = vmatpush.msra.mxu0 %v2932_v29 }
 0x706   :  { %3136 = vmatpush.msrb.mxu2 %v2915_v20  ;;  %v2685_v22 = vsel %vm2665_vm3, %v2679_v30, %v5156_v55  ;;  %v2686_v52 = vsel %vm2666_vm4, %v2679_v30, %v5156_v55 }
 0x707   :  { %3153 = vmatpush.msrb.mxu3 %v2991_v63  ;;  %3173 = vmatpush.msra.mxu0 %v2928_v0  ;;  %v2689_v17 = vmul.f32 %v2685_v22, %v2659_v15  ;;  %v2690_v49 = vmul.f32 %v2686_v52, %v2660_v56  ;;  %v2693_v57 = vmul.f32 %v2685_v22, %v2649_v27  ;;  %v2745_v63 = vpop.permute.xlu2 %2744  ;;  %v2845_v15 = vld [vmem:[#allocation8 + $0x1e0] sm:$0xff] }
 0x708   :  { %v2694_v29 = vmul.f32 %v2686_v52, %v2650_v53  ;;  %v2909_v56 = vld [vmem:[#allocation8 + $0x3e0] sm:$0xff] }
 0x709   :  { %3154 = vmatpush.msrb.mxu3 %v2987_v5  ;;  %3174 = vmatpush.msra.mxu0 %v2924_v40  ;;  %v2691_v19 = vsub.f32 %v2687_v45, %v2689_v17  ;;  %v2838_v45 = vld [vmem:[#allocation8 + $0x1a8] sm:$0xff]  ;;  %v2833_v17 = vld [vmem:[#allocation8 + $0x180] sm:$0xff] }
 0x70a   :  { %v2698_v43 = vadd.f32 %v2696_v62, %v2694_v29  ;;  %v2898_v29 = vld [vmem:[#allocation8 + $0x388] sm:$0xff] }
 0x70b   :  { %3155 = vmatpush.msrb.mxu3 %v2983_v41  ;;  %3175 = vmatpush.msra.mxu0 %v2920_v10  ;;  %v2894_v62 = vld [vmem:[#allocation8 + $0x368] sm:$0xff] }
 0x70d   :  { %3156 = vmatpush.msrb.mxu3 %v2979_v28  ;;  %3176 = vmatpush.msra.mxu0 %v2916_v46 }
 0x70e   :  { %v5162_v48 = vpop.permute.xlu1 %2710 }
 0x70f   :  { %v2713_v9 = vsel %vm2703_vm7, %v5154_v18, %v5162_v48  ;;  %v2714_v8 = vsel %vm2704_vm8, %v5154_v18, %v5162_v48  ;;  %v2692_v18 = vsub.f32 %v2688_v60, %v2690_v49  ;;  %v2697_v48 = vadd.f32 %v2695_v61, %v2693_v57  ;;  %v2902_v60 = vld [vmem:[#allocation8 + $0x3a8] sm:$0xff]  ;;  %v2897_v49 = vld [vmem:[#allocation8 + $0x380] sm:$0xff] }
 0x710   :  { %v2834_v57 = vld [vmem:[#allocation8 + $0x188] sm:$0xff] }
 0x711   :  { %v2830_v61 = vld [vmem:[#allocation8 + $0x168] sm:$0xff] }
 0x717   :  { %v2731_v16 = vpop.permute.xlu1 %2730 }
 0x718   :  { %v2737_v55 = vsel %vm5172_vm9, %v2731_v16, %v2735_v31  ;;  %v2738_v59 = vsel %vm5176_vm10, %v2731_v16, %v2735_v31 }
 0x719   :  { %v2749_v0 = vmul.f32 %v2737_v55, %v2713_v9  ;;  %v2750_v14 = vmul.f32 %v2738_v59, %v2714_v8  ;;  %v2757_v3 = vmul.f32 %v2737_v55, %v2723_v24  ;;  %v2758_v5 = vmul.f32 %v2738_v59, %v2724_v23  ;;  %v2837_v55 = vld [vmem:[#allocation8 + $0x1a0] sm:$0xff] }
 0x71a   :  { %v2901_v59 = vld [vmem:[#allocation8 + $0x3a0] sm:$0xff] }
 0x71f   :  { %v2741_v38 = vpop.permute.xlu1 %2740 }
 0x720   :  { %v2747_v40 = vsel %vm5172_vm9, %v2741_v38, %v2745_v63  ;;  %v2748_v1 = vsel %vm5176_vm10, %v2741_v38, %v2745_v63  ;;  %v2825_v63 = vld [vmem:[#allocation8 + $0x140] sm:$0xff]  ;;  %v2890_v38 = vld [vmem:[#allocation8 + $0x348] sm:$0xff] }
 0x721   :  { %v2751_v7 = vmul.f32 %v2747_v40, %v2723_v24  ;;  %v2752_v41 = vmul.f32 %v2748_v1, %v2724_v23  ;;  %v2755_v10 = vmul.f32 %v2747_v40, %v2713_v9  ;;  %v2756_v21 = vmul.f32 %v2748_v1, %v2714_v8  ;;  %v2846_v24 = vld [vmem:[#allocation8 + $0x1e8] sm:$0xff]  ;;  %v2829_v9 = vld [vmem:[#allocation8 + $0x160] sm:$0xff] }
 0x722   :  { %v2910_v23 = vld [vmem:[#allocation8 + $0x3e8] sm:$0xff]  ;;  %v2893_v8 = vld [vmem:[#allocation8 + $0x360] sm:$0xff] }
 0x723   :  { %v2753_v20 = vsub.f32 %v2749_v0, %v2751_v7  ;;  %v2754_v28 = vsub.f32 %v2750_v14, %v2752_v41  ;;  %v2759_v36 = vadd.f32 %v2757_v3, %v2755_v10  ;;  %v2760_v47 = vadd.f32 %v2758_v5, %v2756_v21  ;;  %v2889_v0 = vld [vmem:[#allocation8 + $0x340] sm:$0xff]  ;;  %v2826_v14 = vld [vmem:[#allocation8 + $0x148] sm:$0xff] }
 0x724   :  { %v2821_v3 = vld [vmem:[#allocation8 + $0x120] sm:$0xff]  ;;  %v2822_v40 = vld [vmem:[#allocation8 + $0x128] sm:$0xff] }
 0x725   :  { %v2761_v46 = vmul.f32 %v2753_v20, %v2691_v19  ;;  %v2762_v25 = vmul.f32 %v2754_v28, %v2692_v18  ;;  %v2763_v30 = vmul.f32 %v2759_v36, %v2697_v48  ;;  %v2764_v32 = vmul.f32 %v2760_v47, %v2698_v43  ;;  %v2885_v5 = vld [vmem:[#allocation8 + $0x320] sm:$0xff]  ;;  %v2886_v1 = vld [vmem:[#allocation8 + $0x328] sm:$0xff] }
 0x726   :  { %v2767_v50 = vmul.f32 %v2759_v36, %v2691_v19  ;;  %v2768_v51 = vmul.f32 %v2760_v47, %v2692_v18  ;;  %v2769_v33 = vmul.f32 %v2753_v20, %v2697_v48  ;;  %v2770_v44 = vmul.f32 %v2754_v28, %v2698_v43  ;;  %v2817_v7 = vld [vmem:[#allocation8 + $0x100] sm:$0xff]  ;;  %v2818_v10 = vld [vmem:[#allocation8 + $0x108] sm:$0xff] }
 0x727   :  { %v2765_v2 = vsub.f32 %v2761_v46, %v2763_v30  ;;  %v2766_v34 = vsub.f32 %v2762_v25, %v2764_v32  ;;  %v2881_v41 = vld [vmem:[#allocation8 + $0x300] sm:$0xff]  ;;  %v2882_v21 = vld [vmem:[#allocation8 + $0x308] sm:$0xff] }
 0x728   :  { %v2771_v35 = vadd.f32 %v2769_v33, %v2767_v50  ;;  %v2772_v31 = vadd.f32 %v2770_v44, %v2768_v51  ;;  %v2813_v19 = vld [vmem:[#allocation8 + $0xe0] sm:$0xff]  ;;  %v2814_v48 = vld [vmem:[#allocation8 + $0xe8] sm:$0xff] }
 0x729   :  { %v2781_v26 = vmul.f32 %v2765_v2, %v5144_v42  ;;  %v2782_v58 = vmul.f32 %v2766_v34, %v5146_v12  ;;  %v2773_v16 = vmul.f32 %v2765_v2, %v5140_v11  ;;  %v2774_v37 = vmul.f32 %v2766_v34, %v5142_v6  ;;  %v2877_v18 = vld [vmem:[#allocation8 + $0x2e0] sm:$0xff]  ;;  %v2878_v43 = vld [vmem:[#allocation8 + $0x2e8] sm:$0xff] }
 0x72a   :  { %v2779_v4 = vmul.f32 %v2771_v35, %v5140_v11  ;;  %v2780_v13 = vmul.f32 %v2772_v31, %v5142_v6  ;;  %v2775_v39 = vmul.f32 %v2771_v35, %v5144_v42  ;;  %v2776_v22 = vmul.f32 %v2772_v31, %v5146_v12  ;;  %v2841_v11 = vld [vmem:[#allocation8 + $0x1c0] sm:$0xff]  ;;  %v2842_v42 = vld [vmem:[#allocation8 + $0x1c8] sm:$0xff] }
 0x72b   :  { %v2905_v6 = vld [vmem:[#allocation8 + $0x3c0] sm:$0xff]  ;;  %v2906_v12 = vld [vmem:[#allocation8 + $0x3c8] sm:$0xff] }
 0x72c   :  { %v2783_v52 = vadd.f32 %v2781_v26, %v2779_v4  ;;  %v2784_v27 = vadd.f32 %v2782_v58, %v2780_v13  ;;  %v5220_v53 = vsub.f32 %v2773_v16, %v2775_v39  ;;  %v5222_v54 = vsub.f32 %v2774_v37, %v2776_v22  ;;  %v2809_v20 = vld [vmem:[#allocation8 + $0xc0] sm:$0xff]  ;;  %v2810_v36 = vld [vmem:[#allocation8 + $0xc8] sm:$0xff] }
 0x72d   :  { %v2873_v28 = vld [vmem:[#allocation8 + $0x2c0] sm:$0xff]  ;;  %v2874_v47 = vld [vmem:[#allocation8 + $0x2c8] sm:$0xff] }
 0x72e   :  { %3057 = vmatmul.f32.vlgmr.msra.gmra.mxu2 %v2783_v52  ;;  %3077 = vmatmul.f32.vlgmr.msra.gmra.mxu3 %v2784_v27  ;;  %v2805_v46 = vld [vmem:[#allocation8 + $0xa0] sm:$0xff]  ;;  %v2806_v30 = vld [vmem:[#allocation8 + $0xa8] sm:$0xff] }
 0x72f   :  { %3097 = vmatmul.f32.vlgmr.msrb.gmra.mxu0 %v2783_v52  ;;  %3117 = vmatmul.f32.vlgmr.msrb.gmra.mxu1 %v2784_v27  ;;  %v2869_v25 = vld [vmem:[#allocation8 + $0x2a0] sm:$0xff]  ;;  %v2870_v32 = vld [vmem:[#allocation8 + $0x2a8] sm:$0xff] }
 0x730   :  { %3201 = vmatpush.msra.mxu2 %v2845_v15  ;;  %3221 = vmatpush.msra.mxu3 %v2909_v56  ;;  %v2801_v50 = vld [vmem:[#allocation8 + $0x80] sm:$0xff]  ;;  %v2802_v33 = vld [vmem:[#allocation8 + $0x88] sm:$0xff] }
 0x731   :  { %3241 = vmatpush.msrb.mxu0 %v2846_v24  ;;  %3261 = vmatpush.msrb.mxu1 %v2910_v23  ;;  %v2865_v51 = vld [vmem:[#allocation8 + $0x280] sm:$0xff]  ;;  %v2866_v44 = vld [vmem:[#allocation8 + $0x288] sm:$0xff]  ;;  %v2847_v24 = vld [vmem:[#allocation8 + $0x1f0] sm:$0xff] }
 0x732   :  { %3202 = vmatpush.msra.mxu2 %v2841_v11  ;;  %3222 = vmatpush.msra.mxu3 %v2905_v6  ;;  %v2797_v2 = vld [vmem:[#allocation8 + $0x60] sm:$0xff]  ;;  %v2798_v35 = vld [vmem:[#allocation8 + $0x68] sm:$0xff]  ;;  %v2911_v23 = vld [vmem:[#allocation8 + $0x3f0] sm:$0xff] }
 0x733   :  { %3242 = vmatpush.msrb.mxu0 %v2842_v42  ;;  %3262 = vmatpush.msrb.mxu1 %v2906_v12  ;;  %v2861_v34 = vld [vmem:[#allocation8 + $0x260] sm:$0xff]  ;;  %v2862_v31 = vld [vmem:[#allocation8 + $0x268] sm:$0xff]  ;;  %v2848_v11 = vld [vmem:[#allocation8 + $0x1f8] sm:$0xff] }
 0x734   :  { %3203 = vmatpush.msra.mxu2 %v2837_v55  ;;  %3223 = vmatpush.msra.mxu3 %v2901_v59  ;;  %v2793_v26 = vld [vmem:[#allocation8 + $0x40] sm:$0xff]  ;;  %v2794_v16 = vld [vmem:[#allocation8 + $0x48] sm:$0xff]  ;;  %v2912_v6 = vld [vmem:[#allocation8 + $0x3f8] sm:$0xff] }
 0x735   :  { %3243 = vmatpush.msrb.mxu0 %v2838_v45  ;;  %3263 = vmatpush.msrb.mxu1 %v2902_v60  ;;  %v2857_v58 = vld [vmem:[#allocation8 + $0x240] sm:$0xff]  ;;  %v2858_v37 = vld [vmem:[#allocation8 + $0x248] sm:$0xff]  ;;  %v2843_v42 = vld [vmem:[#allocation8 + $0x1d0] sm:$0xff] }
 0x736   :  { %3204 = vmatpush.msra.mxu2 %v2833_v17  ;;  %3224 = vmatpush.msra.mxu3 %v2897_v49  ;;  %v2789_v4 = vld [vmem:[#allocation8 + $0x20] sm:$0xff]  ;;  %v2790_v39 = vld [vmem:[#allocation8 + $0x28] sm:$0xff]  ;;  %v2907_v12 = vld [vmem:[#allocation8 + $0x3d0] sm:$0xff] }
 0x737   :  { %3244 = vmatpush.msrb.mxu0 %v2834_v57  ;;  %3264 = vmatpush.msrb.mxu1 %v2898_v29  ;;  %v2853_v13 = vld [vmem:[#allocation8 + $0x220] sm:$0xff]  ;;  %v2854_v22 = vld [vmem:[#allocation8 + $0x228] sm:$0xff]  ;;  %v2844_v55 = vld [vmem:[#allocation8 + $0x1d8] sm:$0xff] }
 0x738   :  { %3137 = vmatmul.f32.vlgmr.msrb.gmra.mxu2 %v2783_v52  ;;  %3157 = vmatmul.f32.vlgmr.msrb.gmra.mxu3 %v2784_v27  ;;  %v2786_v15 = vld [vmem:[#allocation8 + $0x8] sm:$0xff]  ;;  %v2908_v59 = vld [vmem:[#allocation8 + $0x3d8] sm:$0xff]  ;;  %v2839_v45 = vld [vmem:[#allocation8 + $0x1b0] sm:$0xff] }
 0x739   :  { %3177 = vmatmul.f32.vlgmr.msra.gmra.mxu0 %v2783_v52  ;;  %3197 = vmatmul.f32.vlgmr.msra.gmra.mxu1 %v2784_v27  ;;  %v2785_v52 = vld [vmem:[#allocation8] sm:$0xff]  ;;  %v2850_v56 = vld [vmem:[#allocation8 + $0x208] sm:$0xff]  ;;  %v2903_v60 = vld [vmem:[#allocation8 + $0x3b0] sm:$0xff] }
 0x73a   :  { %3205 = vmatpush.msra.mxu2 %v2829_v9  ;;  %3225 = vmatpush.msra.mxu3 %v2893_v8  ;;  %v2849_v27 = vld [vmem:[#allocation8 + $0x200] sm:$0xff]  ;;  %v2840_v17 = vld [vmem:[#allocation8 + $0x1b8] sm:$0xff]  ;;  %v2835_v57 = vld [vmem:[#allocation8 + $0x190] sm:$0xff] }
 0x73b   :  { %3245 = vmatpush.msrb.mxu0 %v2830_v61  ;;  %3265 = vmatpush.msrb.mxu1 %v2894_v62  ;;  %v2904_v49 = vld [vmem:[#allocation8 + $0x3b8] sm:$0xff]  ;;  %v2899_v29 = vld [vmem:[#allocation8 + $0x390] sm:$0xff] }
 0x73c   :  { %3206 = vmatpush.msra.mxu2 %v2825_v63  ;;  %3226 = vmatpush.msra.mxu3 %v2889_v0  ;;  %v2836_v9 = vld [vmem:[#allocation8 + $0x198] sm:$0xff]  ;;  %v2831_v61 = vld [vmem:[#allocation8 + $0x170] sm:$0xff] }
 0x73d   :  { %3246 = vmatpush.msrb.mxu0 %v2826_v14  ;;  %3266 = vmatpush.msrb.mxu1 %v2890_v38  ;;  %v2900_v8 = vld [vmem:[#allocation8 + $0x398] sm:$0xff]  ;;  %v2895_v62 = vld [vmem:[#allocation8 + $0x370] sm:$0xff] }
 0x73e   :  { %3207 = vmatpush.msra.mxu2 %v2821_v3  ;;  %3227 = vmatpush.msra.mxu3 %v2885_v5  ;;  %v2832_v63 = vld [vmem:[#allocation8 + $0x178] sm:$0xff]  ;;  %v2827_v14 = vld [vmem:[#allocation8 + $0x150] sm:$0xff] }
 0x73f   :  { %3247 = vmatpush.msrb.mxu0 %v2822_v40  ;;  %3267 = vmatpush.msrb.mxu1 %v2886_v1  ;;  %v2896_v0 = vld [vmem:[#allocation8 + $0x378] sm:$0xff]  ;;  %v2891_v38 = vld [vmem:[#allocation8 + $0x350] sm:$0xff] }
 0x740   :  { %3208 = vmatpush.msra.mxu2 %v2817_v7  ;;  %3228 = vmatpush.msra.mxu3 %v2881_v41  ;;  %v2828_v3 = vld [vmem:[#allocation8 + $0x158] sm:$0xff]  ;;  %v2823_v40 = vld [vmem:[#allocation8 + $0x130] sm:$0xff] }
 0x741   :  { %3248 = vmatpush.msrb.mxu0 %v2818_v10  ;;  %3268 = vmatpush.msrb.mxu1 %v2882_v21  ;;  %v2892_v5 = vld [vmem:[#allocation8 + $0x358] sm:$0xff]  ;;  %v2887_v1 = vld [vmem:[#allocation8 + $0x330] sm:$0xff] }
 0x742   :  { %3209 = vmatpush.msra.mxu2 %v2813_v19  ;;  %3229 = vmatpush.msra.mxu3 %v2877_v18  ;;  %v2824_v7 = vld [vmem:[#allocation8 + $0x138] sm:$0xff]  ;;  %v2819_v10 = vld [vmem:[#allocation8 + $0x110] sm:$0xff] }
 0x743   :  { %3249 = vmatpush.msrb.mxu0 %v2814_v48  ;;  %3269 = vmatpush.msrb.mxu1 %v2878_v43  ;;  %v2888_v41 = vld [vmem:[#allocation8 + $0x338] sm:$0xff]  ;;  %v2883_v21 = vld [vmem:[#allocation8 + $0x310] sm:$0xff] }
 0x744   :  { %3210 = vmatpush.msra.mxu2 %v2809_v20  ;;  %3230 = vmatpush.msra.mxu3 %v2873_v28  ;;  %v2820_v19 = vld [vmem:[#allocation8 + $0x118] sm:$0xff]  ;;  %v2815_v48 = vld [vmem:[#allocation8 + $0xf0] sm:$0xff] }
 0x745   :  { %3250 = vmatpush.msrb.mxu0 %v2810_v36  ;;  %3270 = vmatpush.msrb.mxu1 %v2874_v47  ;;  %v2884_v18 = vld [vmem:[#allocation8 + $0x318] sm:$0xff]  ;;  %v2879_v43 = vld [vmem:[#allocation8 + $0x2f0] sm:$0xff] }
 0x746   :  { %3211 = vmatpush.msra.mxu2 %v2805_v46  ;;  %3231 = vmatpush.msra.mxu3 %v2869_v25  ;;  %v2816_v20 = vld [vmem:[#allocation8 + $0xf8] sm:$0xff]  ;;  %v2811_v36 = vld [vmem:[#allocation8 + $0xd0] sm:$0xff] }
 0x747   :  { %3251 = vmatpush.msrb.mxu0 %v2806_v30  ;;  %3271 = vmatpush.msrb.mxu1 %v2870_v32  ;;  %v2880_v28 = vld [vmem:[#allocation8 + $0x2f8] sm:$0xff]  ;;  %v2875_v47 = vld [vmem:[#allocation8 + $0x2d0] sm:$0xff] }
 0x748   :  { %3212 = vmatpush.msra.mxu2 %v2801_v50  ;;  %3232 = vmatpush.msra.mxu3 %v2865_v51  ;;  %v2812_v46 = vld [vmem:[#allocation8 + $0xd8] sm:$0xff]  ;;  %v2807_v30 = vld [vmem:[#allocation8 + $0xb0] sm:$0xff] }
 0x749   :  { %3252 = vmatpush.msrb.mxu0 %v2802_v33  ;;  %3272 = vmatpush.msrb.mxu1 %v2866_v44  ;;  %v2876_v25 = vld [vmem:[#allocation8 + $0x2d8] sm:$0xff]  ;;  %v2871_v32 = vld [vmem:[#allocation8 + $0x2b0] sm:$0xff] }
 0x74a   :  { %3213 = vmatpush.msra.mxu2 %v2797_v2  ;;  %3233 = vmatpush.msra.mxu3 %v2861_v34  ;;  %v2808_v50 = vld [vmem:[#allocation8 + $0xb8] sm:$0xff]  ;;  %v2803_v33 = vld [vmem:[#allocation8 + $0x90] sm:$0xff] }
 0x74b   :  { %3253 = vmatpush.msrb.mxu0 %v2798_v35  ;;  %3273 = vmatpush.msrb.mxu1 %v2862_v31  ;;  %v2872_v51 = vld [vmem:[#allocation8 + $0x2b8] sm:$0xff]  ;;  %v2867_v44 = vld [vmem:[#allocation8 + $0x290] sm:$0xff] }
 0x74c   :  { %3214 = vmatpush.msra.mxu2 %v2793_v26  ;;  %3234 = vmatpush.msra.mxu3 %v2857_v58  ;;  %v2804_v2 = vld [vmem:[#allocation8 + $0x98] sm:$0xff]  ;;  %v2799_v35 = vld [vmem:[#allocation8 + $0x70] sm:$0xff] }
 0x74d   :  { %3254 = vmatpush.msrb.mxu0 %v2794_v16  ;;  %3274 = vmatpush.msrb.mxu1 %v2858_v37  ;;  %v2868_v34 = vld [vmem:[#allocation8 + $0x298] sm:$0xff]  ;;  %v2863_v31 = vld [vmem:[#allocation8 + $0x270] sm:$0xff] }
 0x74e   :  { %3215 = vmatpush.msra.mxu2 %v2789_v4  ;;  %3235 = vmatpush.msra.mxu3 %v2853_v13  ;;  %v2800_v26 = vld [vmem:[#allocation8 + $0x78] sm:$0xff]  ;;  %v2795_v16 = vld [vmem:[#allocation8 + $0x50] sm:$0xff] }
 0x74f   :  { %3255 = vmatpush.msrb.mxu0 %v2790_v39  ;;  %3275 = vmatpush.msrb.mxu1 %v2854_v22  ;;  %v2864_v58 = vld [vmem:[#allocation8 + $0x278] sm:$0xff]  ;;  %v2859_v37 = vld [vmem:[#allocation8 + $0x250] sm:$0xff] }
 0x750   :  { %3216 = vmatpush.msra.mxu2 %v2785_v52  ;;  %3236 = vmatpush.msra.mxu3 %v2849_v27  ;;  %v2796_v4 = vld [vmem:[#allocation8 + $0x58] sm:$0xff]  ;;  %v2791_v39 = vld [vmem:[#allocation8 + $0x30] sm:$0xff] }
 0x751   :  { %3256 = vmatpush.msrb.mxu0 %v2786_v15  ;;  %3276 = vmatpush.msrb.mxu1 %v2850_v56  ;;  %v2860_v13 = vld [vmem:[#allocation8 + $0x258] sm:$0xff]  ;;  %v2855_v22 = vld [vmem:[#allocation8 + $0x230] sm:$0xff] }
 0x752   :  { %3217 = vmatmul.f32.vlgmr.msra.gmra.mxu2 %v5220_v53  ;;  %3237 = vmatmul.f32.vlgmr.msra.gmra.mxu3 %v5222_v54  ;;  %v2792_v52 = vld [vmem:[#allocation8 + $0x38] sm:$0xff]  ;;  %v2787_v15 = vld [vmem:[#allocation8 + $0x10] sm:$0xff] }
 0x753   :  { %3257 = vmatmul.f32.vlgmr.msrb.gmra.mxu0 %v5220_v53  ;;  %3277 = vmatmul.f32.vlgmr.msrb.gmra.mxu1 %v5222_v54  ;;  %v2856_v27 = vld [vmem:[#allocation8 + $0x238] sm:$0xff]  ;;  %v2851_v56 = vld [vmem:[#allocation8 + $0x210] sm:$0xff] }
 0x754   :  { %3281 = vmatpush.msrb.mxu2 %v2847_v24  ;;  %3301 = vmatpush.msrb.mxu3 %v2911_v23  ;;  %v2788_v24 = vld [vmem:[#allocation8 + $0x18] sm:$0xff] }
 0x755   :  { %3321 = vmatpush.msra.mxu0 %v2848_v11  ;;  %3341 = vmatpush.msra.mxu1 %v2912_v6  ;;  %v2852_v23 = vld [vmem:[#allocation8 + $0x218] sm:$0xff]  ;;  %v3397_v6 = vld [vmem:[#allocation11 + $0xf0] sm:$0xff] }
 0x756   :  { %3282 = vmatpush.msrb.mxu2 %v2843_v42  ;;  %3302 = vmatpush.msrb.mxu3 %v2907_v12  ;;  %v3398_v11 = vld [vmem:[#allocation11 + $0xf8] sm:$0xff]  ;;  %v3381_v12 = vld [vmem:[#allocation11 + $0x70] sm:$0xff] }
 0x757   :  { %3322 = vmatpush.msra.mxu0 %v2844_v55  ;;  %3342 = vmatpush.msra.mxu1 %v2908_v59  ;;  %v3382_v42 = vld [vmem:[#allocation11 + $0x78] sm:$0xff]  ;;  %v3396_v55 = vld [vmem:[#allocation11 + $0xe8] sm:$0xff] }
 0x758   :  { %3283 = vmatpush.msrb.mxu2 %v2839_v45  ;;  %3303 = vmatpush.msrb.mxu3 %v2903_v60  ;;  %v3380_v59 = vld [vmem:[#allocation11 + $0x68] sm:$0xff]  ;;  %v3395_v45 = vld [vmem:[#allocation11 + $0xe0] sm:$0xff] }
 0x759   :  { %3323 = vmatpush.msra.mxu0 %v2840_v17  ;;  %3343 = vmatpush.msra.mxu1 %v2904_v49  ;;  %v3379_v60 = vld [vmem:[#allocation11 + $0x60] sm:$0xff]  ;;  %v3394_v17 = vld [vmem:[#allocation11 + $0xd8] sm:$0xff] }
 0x75a   :  { %3284 = vmatpush.msrb.mxu2 %v2835_v57  ;;  %3304 = vmatpush.msrb.mxu3 %v2899_v29  ;;  %v3378_v49 = vld [vmem:[#allocation11 + $0x58] sm:$0xff]  ;;  %v3392_v57 = vld [vmem:[#allocation11 + $0xc8] sm:$0xff] }
 0x75b   :  { %3324 = vmatpush.msra.mxu0 %v2836_v9  ;;  %3344 = vmatpush.msra.mxu1 %v2900_v8  ;;  %v3376_v29 = vld [vmem:[#allocation11 + $0x48] sm:$0xff]  ;;  %v3391_v9 = vld [vmem:[#allocation11 + $0xc0] sm:$0xff] }
 0x75c   :  { %3285 = vmatpush.msrb.mxu2 %v2831_v61  ;;  %3305 = vmatpush.msrb.mxu3 %v2895_v62  ;;  %v3375_v8 = vld [vmem:[#allocation11 + $0x40] sm:$0xff]  ;;  %v3390_v61 = vld [vmem:[#allocation11 + $0xb8] sm:$0xff]  ;;  %v3389_v62 = vld [vmem:[#allocation11 + $0xb0] sm:$0xff] }
 0x75d   :  { %3325 = vmatpush.msra.mxu0 %v2832_v63  ;;  %3345 = vmatpush.msra.mxu1 %v2896_v0  ;;  %v3388_v63 = vld [vmem:[#allocation11 + $0xa8] sm:$0xff]  ;;  %v3374_v0 = vld [vmem:[#allocation11 + $0x38] sm:$0xff] }
 0x75e   :  { %3286 = vmatpush.msrb.mxu2 %v2827_v14  ;;  %3306 = vmatpush.msrb.mxu3 %v2891_v38  ;;  %v3387_v14 = vld [vmem:[#allocation11 + $0xa0] sm:$0xff]  ;;  %v3373_v38 = vld [vmem:[#allocation11 + $0x30] sm:$0xff] }
 0x75f   :  { %3326 = vmatpush.msra.mxu0 %v2828_v3  ;;  %3346 = vmatpush.msra.mxu1 %v2892_v5  ;;  %v3386_v3 = vld [vmem:[#allocation11 + $0x98] sm:$0xff]  ;;  %v3372_v5 = vld [vmem:[#allocation11 + $0x28] sm:$0xff] }
 0x760   :  { %3287 = vmatpush.msrb.mxu2 %v2823_v40  ;;  %3307 = vmatpush.msrb.mxu3 %v2887_v1  ;;  %v3385_v40 = vld [vmem:[#allocation11 + $0x90] sm:$0xff]  ;;  %v3371_v1 = vld [vmem:[#allocation11 + $0x20] sm:$0xff] }
 0x761   :  { %3327 = vmatpush.msra.mxu0 %v2824_v7  ;;  %3347 = vmatpush.msra.mxu1 %v2888_v41  ;;  %v3384_v7 = vld [vmem:[#allocation11 + $0x88] sm:$0xff] }
 0x762   :  { %3288 = vmatpush.msrb.mxu2 %v2819_v10  ;;  %3308 = vmatpush.msrb.mxu3 %v2883_v21  ;;  %v3370_v10 = vld [vmem:[#allocation11 + $0x18] sm:$0xff]  ;;  %v3383_v21 = vld [vmem:[#allocation11 + $0x80] sm:$0xff] }
 0x763   :  { %3328 = vmatpush.msra.mxu0 %v2820_v19  ;;  %3348 = vmatpush.msra.mxu1 %v2884_v18  ;;  %v3369_v18 = vld [vmem:[#allocation11 + $0x10] sm:$0xff] }
 0x764   :  { %3289 = vmatpush.msrb.mxu2 %v2815_v48  ;;  %3309 = vmatpush.msrb.mxu3 %v2879_v43  ;;  %v3368_v43 = vld [vmem:[#allocation11 + $0x8] sm:$0xff] }
 0x765   :  { %3329 = vmatpush.msra.mxu0 %v2816_v20  ;;  %3349 = vmatpush.msra.mxu1 %v2880_v28  ;;  %v3367_v20 = vld [vmem:[#allocation11] sm:$0xff] }
 0x766   :  { %3290 = vmatpush.msrb.mxu2 %v2811_v36  ;;  %3310 = vmatpush.msrb.mxu3 %v2875_v47 }
 0x767   :  { %3330 = vmatpush.msra.mxu0 %v2812_v46  ;;  %3350 = vmatpush.msra.mxu1 %v2876_v25 }
 0x768   :  { %3291 = vmatpush.msrb.mxu2 %v2807_v30  ;;  %3311 = vmatpush.msrb.mxu3 %v2871_v32 }
 0x769   :  { %3331 = vmatpush.msra.mxu0 %v2808_v50  ;;  %3351 = vmatpush.msra.mxu1 %v2872_v51 }
 0x76a   :  { %3292 = vmatpush.msrb.mxu2 %v2803_v33  ;;  %3312 = vmatpush.msrb.mxu3 %v2867_v44 }
 0x76b   :  { %3332 = vmatpush.msra.mxu0 %v2804_v2  ;;  %3352 = vmatpush.msra.mxu1 %v2868_v34 }
 0x76c   :  { %3293 = vmatpush.msrb.mxu2 %v2799_v35  ;;  %3313 = vmatpush.msrb.mxu3 %v2863_v31 }
 0x76d   :  { %3333 = vmatpush.msra.mxu0 %v2800_v26  ;;  %3353 = vmatpush.msra.mxu1 %v2864_v58 }
 0x76e   :  { %3294 = vmatpush.msrb.mxu2 %v2795_v16  ;;  %3314 = vmatpush.msrb.mxu3 %v2859_v37 }
 0x76f   :  { %3334 = vmatpush.msra.mxu0 %v2796_v4  ;;  %3354 = vmatpush.msra.mxu1 %v2860_v13 }
 0x770   :  { %3295 = vmatpush.msrb.mxu2 %v2791_v39  ;;  %3315 = vmatpush.msrb.mxu3 %v2855_v22 }
 0x771   :  { %3335 = vmatpush.msra.mxu0 %v2792_v52  ;;  %3355 = vmatpush.msra.mxu1 %v2856_v27 }
 0x772   :  { %3296 = vmatpush.msrb.mxu2 %v2787_v15  ;;  %3316 = vmatpush.msrb.mxu3 %v2851_v56 }
 0x773   :  { %3336 = vmatpush.msra.mxu0 %v2788_v24  ;;  %3356 = vmatpush.msra.mxu1 %v2852_v23 }
 0x774   :  { %3297 = vmatmul.f32.vlgmr.msrb.gmra.mxu2 %v5220_v53  ;;  %3317 = vmatmul.f32.vlgmr.msrb.gmra.mxu3 %v5222_v54 }
 0x775   :  { %3337 = vmatmul.f32.vlgmr.msra.gmra.mxu0 %v5220_v53  ;;  %3357 = vmatmul.f32.vlgmr.msra.gmra.mxu1 %v5222_v54  ;;  %v3393_v53 = vld [vmem:[#allocation11 + $0xd0] sm:$0xff] }
 0x776   :  { %3423 = vmatpush.msra.mxu3 %v3398_v11  ;;  %3403 = vmatpush.msra.mxu2 %v3382_v42  ;;  %v3377_v54 = vld [vmem:[#allocation11 + $0x50] sm:$0xff]  ;;  %v3561_v42 = vld [vmem:[%s5247_s9] ss:$0 sm:$0xff] }
 0x778   :  { %3424 = vmatpush.msra.mxu3 %v3397_v6  ;;  %3404 = vmatpush.msra.mxu2 %v3381_v12 }
 0x77a   :  { %3425 = vmatpush.msra.mxu3 %v3396_v55  ;;  %3405 = vmatpush.msra.mxu2 %v3380_v59 }
 0x77c   :  { %3426 = vmatpush.msra.mxu3 %v3395_v45  ;;  %3406 = vmatpush.msra.mxu2 %v3379_v60 }
 0x77e   :  { %3427 = vmatpush.msra.mxu3 %v3394_v17  ;;  %3407 = vmatpush.msra.mxu2 %v3378_v49 }
 0x780   :  { %3428 = vmatpush.msra.mxu3 %v3393_v53  ;;  %3408 = vmatpush.msra.mxu2 %v3377_v54 }
 0x782   :  { %3429 = vmatpush.msra.mxu3 %v3392_v57  ;;  %3409 = vmatpush.msra.mxu2 %v3376_v29 }
 0x784   :  { %3430 = vmatpush.msra.mxu3 %v3391_v9  ;;  %3410 = vmatpush.msra.mxu2 %v3375_v8 }
 0x786   :  { %3431 = vmatpush.msra.mxu3 %v3390_v61  ;;  %3411 = vmatpush.msra.mxu2 %v3374_v0 }
 0x788   :  { %3432 = vmatpush.msra.mxu3 %v3389_v62  ;;  %3412 = vmatpush.msra.mxu2 %v3373_v38 }
 0x78a   :  { %3433 = vmatpush.msra.mxu3 %v3388_v63  ;;  %3413 = vmatpush.msra.mxu2 %v3372_v5 }
 0x78c   :  { %3434 = vmatpush.msra.mxu3 %v3387_v14  ;;  %3414 = vmatpush.msra.mxu2 %v3371_v1 }
 0x78e   :  { %3435 = vmatpush.msra.mxu3 %v3386_v3  ;;  %3415 = vmatpush.msra.mxu2 %v3370_v10 }
 0x790   :  { %3436 = vmatpush.msra.mxu3 %v3385_v40  ;;  %3416 = vmatpush.msra.mxu2 %v3369_v18 }
 0x792   :  { %3437 = vmatpush.msra.mxu3 %v3384_v7  ;;  %3417 = vmatpush.msra.mxu2 %v3368_v43 }
 0x794   :  { %3438 = vmatpush.msra.mxu3 %v3383_v21  ;;  %3418 = vmatpush.msra.mxu2 %v3367_v20 }
 0x7ac   :  { %v3098_v41 = vpop.f32.mrf.mxu0  ;;  %v3118_v19 = vpop.f32.mrf.mxu1 }
 0x7ad   :  { %v3119_v50 = vadd.f32 %v3118_v19, %v3098_v41 }
 0x7b1   :  { %v3058_v48 = vpop.f32.mrf.mxu2  ;;  %v3078_v28 = vpop.f32.mrf.mxu3 }
 0x7b2   :  { %v3079_v34 = vadd.f32 %v3078_v28, %v3058_v48 }
 0x7b6   :  { %v3178_v36 = vpop.f32.mrf.mxu0  ;;  %v3198_v47 = vpop.f32.mrf.mxu1 }
 0x7b7   :  { %v3199_v44 = vadd.f32 %v3198_v47, %v3178_v36 }
 0x7bb   :  { %v3138_v46 = vpop.f32.mrf.mxu2  ;;  %v3158_v25 = vpop.f32.mrf.mxu3 }
 0x7bc   :  { %v3159_v4 = vadd.f32 %v3158_v25, %v3138_v46 }
 0x7d0   :  { %v3258_v30 = vpop.f32.mrf.mxu0  ;;  %v3278_v32 = vpop.f32.mrf.mxu1 }
 0x7d1   :  { %v3259_v51 = vadd.f32 %v3258_v30, %v3119_v50 }
 0x7d3   :  { %v3279_v31 = vadd.f32 %v3278_v32, %v3259_v51 }
 0x7d5   :  { %v3218_v33 = vpop.f32.mrf.mxu2  ;;  %v3238_v2 = vpop.f32.mrf.mxu3  ;;  %v3362_v13 = vmul.f32 %v3279_v31, %v3279_v31 }
 0x7d6   :  { %v3219_v58 = vadd.f32 %v3218_v33, %v3079_v34 }
 0x7d8   :  { %v3239_v52 = vadd.f32 %v3238_v2, %v3219_v58 }
 0x7da   :  { %v3361_v23 = vmul.f32 %v3239_v52, %v3239_v52 }
 0x7f2   :  { %v3338_v35 = vpop.f32.mrf.mxu0  ;;  %v3358_v16 = vpop.f32.mrf.mxu1 }
 0x7f3   :  { %v3339_v26 = vadd.f32 %v3338_v35, %v3199_v44 }
 0x7f5   :  { %v3359_v37 = vadd.f32 %v3358_v16, %v3339_v26 }
 0x7f7   :  { %v3364_v39 = vmul.f32 %v3359_v37, %v3359_v37  ;;  %v3298_v22 = vpop.f32.mrf.mxu2  ;;  %v3318_v56 = vpop.f32.mrf.mxu3 }
 0x7f8   :  { %v3299_v27 = vadd.f32 %v3298_v22, %v3159_v4 }
 0x7f9   :  { %v3366_v15 = vadd.f32 %v3364_v39, %v3362_v13 }
 0x7fa   :  { %v3319_v24 = vadd.f32 %v3318_v56, %v3299_v27 }
 0x7fb   :  { %3439 = vmatmul.f32.vlgmr.msra.gmra.mxu3 %v3366_v15 }
 0x7fc   :  { %v3363_v11 = vmul.f32 %v3319_v24, %v3319_v24 }
 0x7fe   :  { %v3365_v6 = vadd.f32 %v3363_v11, %v3361_v23 }
 0x800   :  { %3419 = vmatmul.f32.vlgmr.msra.gmra.mxu2 %v3365_v6 }
 0x87e   :  { %v3440_v59 = vpop.f32.mrf.mxu3 }
 0x883   :  { %v3420_v12 = vpop.f32.mrf.mxu2 }
 0x884   :  { %v3421_v55 = vadd.f32 %v3561_v42, %v3420_v12 }
 0x886   :  { %v3441_v45 = vadd.f32 %v3440_v59, %v3421_v55 }
 0x888   :  { %3443 = vst [vmem:[#allocation13] sm:$0x3] %v3441_v45 }
 0x889   :  { %3454 = dma.vmem_to_hbm [thread:$0]  %s3450_s12, 32, %s3452_s14, [#allocation4]  }
 0x88a   :  { %3738 = dma.done.wait [#allocation4], 32  }
 0x88b   :  { %3739 = vsyncadd [#allocation4], 4294967264 }
 0x88c   :  { %3459 = vsyncpa [#allocation3], 1 }
 0x88d   :  { %3460 = vsyncpa [#allocation6], 1 }
 0x88e   :  { %3461 = vsyncpa [#allocation9], 1 }
 0x88f   :  { %3462 = vsyncpa [#allocation12], 1 }
 0x890   :  { %3463 = vsyncpa [#allocation4], 1 }

</bundles_post_ra>
